<compile_context>
chip_gen: v7x
topology: tpu7x:2x2x1
jax: 0.10.0
libtpu: 0.0.40
codegen_flags: <defaults>
</compile_context>

<pallas_src>
import functools
import math

import jax
import jax.numpy as jnp
from jax.experimental import pallas as pl
from jax.experimental.pallas import tpu as pltpu

MXU_DTYPE = jnp.bfloat16
LN_EPS = 1e-12


def _device_kind():
    try:
        return jax.devices()[0].device_kind.lower()
    except Exception:  # pragma: no cover - defensive
        return ""


_KIND = _device_kind()
if "v7" in _KIND:
    # v7x: 64 MiB physical VMEM per TensorCore -> keep clear headroom.
    VMEM_LIMIT = 48 * 1024 * 1024
elif ("v5" in _KIND) or ("v6" in _KIND):
    # v5e / v6e: 128 MiB physical VMEM.
    VMEM_LIMIT = 96 * 1024 * 1024
else:
    VMEM_LIMIT = 64 * 1024 * 1024

# bf16 EUP path only exists on v6e / v7x; keep f32 transcendental math elsewhere.
_GELU_LOW_PRECISION = ("v6" in _KIND) or ("v7" in _KIND)


def _pick_tile(dim, target, align=128):
    """Largest multiple of `align` that divides `dim` and is <= `target`; else full dim.

    Falling back to the full dimension is always legal for the (8,128) BlockSpec rule (a block
    equal to the full array dim is allowed); for pathological large prime-ish dims it may cost
    VMEM, but all BERT shapes divide cleanly.
    """
    if dim <= target:
        return dim
    t = (target // align) * align
    while t >= align:
        if dim % t == 0:
            return t
        t -= align
    return dim


def _gelu(y):
    # tanh-approx GELU.
    # TODO(synk): HF BERT default is erf-GELU; tanh approximation differs at the ~1e-3 level.
    c = math.sqrt(2.0 / math.pi)
    return 0.5 * y * (1.0 + jnp.tanh(c * (y + 0.044715 * y * y * y)))


# ---------------------------------------------------------------------------
# Tiled matmul + bias (+ optional GELU) with f32 accumulator epilogue.
# Weights arrive in bf16; activations are cast to bf16 in-kernel when needed.
# ---------------------------------------------------------------------------
def _matmul_bias_kernel(x_ref, w_ref, b_ref, o_ref, acc_ref, *, activation):
    @pl.when(pl.program_id(2) == 0)
    def _():
        acc_ref[...] = jnp.zeros_like(acc_ref)

    acc_ref[...] += jnp.dot(
        x_ref[...].astype(MXU_DTYPE), w_ref[...],
        preferred_element_type=jnp.float32)

    @pl.when(pl.program_id(2) == pl.num_programs(2) - 1)
    def _():
        y = acc_ref[...] + b_ref[...].astype(jnp.float32)
        if activation == "gelu":
            if _GELU_LOW_PRECISION and o_ref.dtype == jnp.bfloat16:
                y = _gelu(y.astype(jnp.bfloat16))   # bf16 EUP tanh on v6e/v7x
            else:
                y = _gelu(y)
        o_ref[...] = y.astype(o_ref.dtype)


def matmul_bias(x, w, b, activation=None, out_dtype=None, *, tm=512, tn=1024, tk=1024):
    """y = act(x @ w + b), tiled over (M/tm, N/tn, K/tk).  ~1 GFLOP of MXU work per step."""
    M, K = x.shape
    N = w.shape[1]
    out_dtype = x.dtype if out_dtype is None else out_dtype
    tm = _pick_tile(M, tm)
    tn = _pick_tile(N, tn)
    tk = _pick_tile(K, tk)
    grid = (M // tm, N // tn, K // tk)
    cost = pl.CostEstimate(
        flops=2 * M * N * K,
        transcendentals=M * N if activation == "gelu" else 0,
        bytes_accessed=x.dtype.itemsize * M * K + w.dtype.itemsize * K * N
        + jnp.dtype(out_dtype).itemsize * M * N)
    return pl.pallas_call(
        functools.partial(_matmul_bias_kernel, activation=activation),
        out_shape=jax.ShapeDtypeStruct((M, N), out_dtype),
        grid_spec=pltpu.PrefetchScalarGridSpec(
            num_scalar_prefetch=0,
            grid=grid,
            in_specs=[
                pl.BlockSpec((tm, tk), lambda i, j, k: (i, k)),
                pl.BlockSpec((tk, tn), lambda i, j, k: (k, j)),
                pl.BlockSpec((1, tn), lambda i, j, k: (0, j)),
            ],
            out_specs=pl.BlockSpec((tm, tn), lambda i, j, k: (i, j)),
            scratch_shapes=[pltpu.VMEM((tm, tn), jnp.float32)],
        ),
        compiler_params=pltpu.CompilerParams(
            dimension_semantics=("parallel", "parallel", "arbitrary"),
            vmem_limit_bytes=VMEM_LIMIT),
        cost_estimate=cost,
    )(x, w, b.reshape(1, N))


# ---------------------------------------------------------------------------
# Tiled matmul with fused bias + residual + LayerNorm (+ optional extra add) epilogue.
# ---------------------------------------------------------------------------
def _matmul_res_ln_kernel(*refs, eps, has_extra):
    if has_extra:
        (x_ref, w_ref, b_ref, res_ref, g_ref, beta_ref, extra_ref,
         o_ref, acc_ref) = refs
    else:
        x_ref, w_ref, b_ref, res_ref, g_ref, beta_ref, o_ref, acc_ref = refs
        extra_ref = None

    @pl.when(pl.program_id(1) == 0)
    def _():
        acc_ref[...] = jnp.zeros_like(acc_ref)

    acc_ref[...] += jnp.dot(
        x_ref[...].astype(MXU_DTYPE), w_ref[...],
        preferred_element_type=jnp.float32)

    @pl.when(pl.program_id(1) == pl.num_programs(1) - 1)
    def _():
        y = (acc_ref[...] + b_ref[...].astype(jnp.float32)
             + res_ref[...].astype(jnp.float32))
        mu = jnp.mean(y, axis=-1, keepdims=True)
        yc = y - mu
        var = jnp.mean(yc * yc, axis=-1, keepdims=True)
        out = (yc * jax.lax.rsqrt(var + eps) * g_ref[...].astype(jnp.float32)
               + beta_ref[...].astype(jnp.float32))
        if extra_ref is not None:
            out = out + extra_ref[...].astype(jnp.float32)
        o_ref[...] = out.astype(o_ref.dtype)


def matmul_bias_residual_ln(x, w, b, residual, gamma, beta, extra=None,
                            *, eps=LN_EPS, tm=512, tk=1024):
    """LayerNorm((x @ w + b) + residual) * gamma + beta  [+ extra].

    Grid (M/tm, K/tk); the full output width N (= hidden size) stays in one tile so the
    LN row-reduction runs in-kernel.  residual/gamma/beta/extra block indices are constant
    across K so they are not re-DMA'd inside the reduction loop.
    """
    M, K = x.shape
    N = w.shape[1]
    out_dtype = residual.dtype
    tm = _pick_tile(M, tm)
    tk = _pick_tile(K, tk)
    grid = (M // tm, K // tk)

    in_specs = [
        pl.BlockSpec((tm, tk), lambda i, k: (i, k)),
        pl.BlockSpec((tk, N), lambda i, k: (k, 0)),
        pl.BlockSpec((1, N), lambda i, k: (0, 0)),
        pl.BlockSpec((tm, N), lambda i, k: (i, 0)),
        pl.BlockSpec((1, N), lambda i, k: (0, 0)),
        pl.BlockSpec((1, N), lambda i, k: (0, 0)),
    ]
    args = [x, w, b.reshape(1, N), residual, gamma.reshape(1, N), beta.reshape(1, N)]
    if extra is not None:
        in_specs.append(pl.BlockSpec((tm, N), lambda i, k: (i, 0)))
        args.append(extra)

    cost = pl.CostEstimate(
        flops=2 * M * N * K + 10 * M * N,
        transcendentals=0,
        bytes_accessed=x.dtype.itemsize * M * K + w.dtype.itemsize * K * N + 12 * M * N)
    return pl.pallas_call(
        functools.partial(_matmul_res_ln_kernel, eps=eps, has_extra=extra is not None),
        out_shape=jax.ShapeDtypeStruct((M, N), out_dtype),
        grid_spec=pltpu.PrefetchScalarGridSpec(
            num_scalar_prefetch=0,
            grid=grid,
            in_specs=in_specs,
            out_specs=pl.BlockSpec((tm, N), lambda i, k: (i, 0)),
            scratch_shapes=[pltpu.VMEM((tm, N), jnp.float32)],
        ),
        compiler_params=pltpu.CompilerParams(
            dimension_semantics=("parallel", "arbitrary"),
            vmem_limit_bytes=VMEM_LIMIT),
        cost_estimate=cost,
    )(*args)


# ---------------------------------------------------------------------------
# Row-tiled LayerNorm (no residual) — used for the embedding output only.
# ---------------------------------------------------------------------------
def _layernorm_kernel(x_ref, g_ref, b_ref, o_ref, *, eps):
    x = x_ref[...].astype(jnp.float32)
    mu = jnp.mean(x, axis=-1, keepdims=True)
    xc = x - mu
    var = jnp.mean(xc * xc, axis=-1, keepdims=True)
    o_ref[...] = (xc * jax.lax.rsqrt(var + eps) * g_ref[...] + b_ref[...]).astype(o_ref.dtype)


def layernorm(x, gamma, beta, *, eps=LN_EPS, tm=1024):
    M, H = x.shape
    tm = _pick_tile(M, tm, align=8)
    grid = (M // tm,)
    return pl.pallas_call(
        functools.partial(_layernorm_kernel, eps=eps),
        out_shape=jax.ShapeDtypeStruct((M, H), x.dtype),
        grid_spec=pltpu.PrefetchScalarGridSpec(
            num_scalar_prefetch=0,
            grid=grid,
            in_specs=[
                pl.BlockSpec((tm, H), lambda i: (i, 0)),
                pl.BlockSpec((1, H), lambda i: (0, 0)),
                pl.BlockSpec((1, H), lambda i: (0, 0)),
            ],
            out_specs=pl.BlockSpec((tm, H), lambda i: (i, 0)),
        ),
        compiler_params=pltpu.CompilerParams(
            dimension_semantics=("parallel",),
            vmem_limit_bytes=VMEM_LIMIT),
    )(x, gamma.reshape(1, H), beta.reshape(1, H))


# ---------------------------------------------------------------------------
# Fused multi-head attention, transpose-free.
#
# Q/K/V blocks are read straight from the (B, S, 3, heads, Dh) view of the fused QKV
# projection output; grid is (B, S/tq), the whole K/V (all heads, full S) is resident in VMEM
# for each step, so there is no kv axis and no online-softmax rescale.  The 1/sqrt(Dh) scale is
# already folded into the Q projection weights.  The context is written lane-dense as
# (B, S, heads, Dh), which reshapes for free to (B*S, H).
# ---------------------------------------------------------------------------
def _attention_kernel(q_ref, k_ref, v_ref, o_ref, *, num_heads):
    for h in range(num_heads):  # static unroll; <= 16 heads for BERT-sized models
        q_h = q_ref[0, :, 0, h, :]           # (tq, Dh), bf16, already scaled
        k_h = k_ref[0, :, 0, h, :]           # (S,  Dh)
        v_h = v_ref[0, :, 0, h, :]           # (S,  Dh)
        s = jnp.einsum("qd,kd->qk", q_h, k_h, preferred_element_type=jnp.float32)
        m = jnp.max(s, axis=-1, keepdims=True)
        p = jnp.exp(s - m)
        l = jnp.sum(p, axis=-1, keepdims=True)
        ctx = jnp.einsum("qk,kd->qd", p.astype(MXU_DTYPE), v_h,
                         preferred_element_type=jnp.float32)
        o_ref[0, :, h, :] = (ctx * pl.reciprocal(l, approx=True)).astype(o_ref.dtype)


def fused_attention(qkv, B, S, num_heads, head_dim, *, tq=512):
    """qkv: (B, S, 3, num_heads, head_dim) view of the fused QKV projection output.

    Returns the attention context as (B, S, num_heads, head_dim).
    TODO(synk): no additive padding mask — the reference module only feeds token ids to
    BertModel, so HF defaults to an all-ones attention mask (no-op); padded batches differ.
    """
    tq = _pick_tile(S, tq, align=8)
    grid = (B, S // tq)
    H = num_heads * head_dim
    cost = pl.CostEstimate(
        flops=4 * B * num_heads * S * S * head_dim,
        transcendentals=B * num_heads * S * S,
        bytes_accessed=qkv.dtype.itemsize * (3 * B * S * H + B * S * H))
    return pl.pallas_call(
        functools.partial(_attention_kernel, num_heads=num_heads),
        out_shape=jax.ShapeDtypeStruct((B, S, num_heads, head_dim), MXU_DTYPE),
        grid_spec=pltpu.PrefetchScalarGridSpec(
            num_scalar_prefetch=0,
            grid=grid,
            in_specs=[
                # Q tile: (tq, all heads, Dh)
                pl.BlockSpec((1, tq, 1, num_heads, head_dim),
                             lambda b, qi: (b, qi, 0, 0, 0)),
                # K: full S, all heads
                pl.BlockSpec((1, S, 1, num_heads, head_dim),
                             lambda b, qi: (b, 0, 1, 0, 0)),
                # V: full S, all heads
                pl.BlockSpec((1, S, 1, num_heads, head_dim),
                             lambda b, qi: (b, 0, 2, 0, 0)),
            ],
            out_specs=pl.BlockSpec((1, tq, num_heads, head_dim),
                                   lambda b, qi: (b, qi, 0, 0)),
        ),
        compiler_params=pltpu.CompilerParams(
            dimension_semantics=("parallel", "parallel"),
            vmem_limit_bytes=VMEM_LIMIT),
        cost_estimate=cost,
    )(qkv, qkv, qkv)


# ---------------------------------------------------------------------------
# Synthetic BERT parameters (deterministic init — no checkpoint load) + TPU prep.
# ---------------------------------------------------------------------------
def init_bert_params(key, *, vocab, max_pos, type_vocab, hidden, num_layers,
                     num_heads, intermediate):
    def norm(k, shape):
        return (0.02 * jax.random.normal(k, shape)).astype(jnp.float32)

    keys = jax.random.split(key, 4 + num_layers)
    params = {
        "word_emb": norm(keys[0], (vocab, hidden)),
        "pos_emb": norm(keys[1], (max_pos, hidden)),
        "type_emb": norm(keys[2], (type_vocab, hidden)),
        "emb_ln_g": jnp.ones((hidden,), jnp.float32),
        "emb_ln_b": jnp.zeros((hidden,), jnp.float32),
        "layers": [],
    }
    for li in range(num_layers):
        lk = jax.random.split(keys[4 + li], 4)
        params["layers"].append({
            # Fused QKV weight: columns [0:H]=Q, [H:2H]=K, [2H:3H]=V.
            "wqkv": norm(lk[0], (hidden, 3 * hidden)),
            "bqkv": jnp.zeros((3 * hidden,), jnp.float32),
            "wo": norm(lk[1], (hidden, hidden)), "bo": jnp.zeros((hidden,), jnp.float32),
            "ln1_g": jnp.ones((hidden,), jnp.float32), "ln1_b": jnp.zeros((hidden,), jnp.float32),
            "w1": norm(lk[2], (hidden, intermediate)), "b1": jnp.zeros((intermediate,), jnp.float32),
            "w2": norm(lk[3], (intermediate, hidden)), "b2": jnp.zeros((hidden,), jnp.float32),
            "ln2_g": jnp.ones((hidden,), jnp.float32), "ln2_b": jnp.zeros((hidden,), jnp.float32),
        })
    return params


def prepare_params_for_tpu(params, *, num_heads):
    """One-time parameter prep: fold 1/sqrt(Dh) into Q, store matmul weights as bf16 in HBM."""
    H = params["word_emb"].shape[1]
    head_dim = H // num_heads
    scale = 1.0 / math.sqrt(head_dim)
    out = {k: v for k, v in params.items() if k != "layers"}
    out["layers"] = []
    for layer in params["layers"]:
        wqkv = layer["wqkv"].at[:, :H].multiply(scale)   # fold attention scale into Q cols
        bqkv = layer["bqkv"].at[:H].multiply(scale)
        out["layers"].append({
            "wqkv": wqkv.astype(MXU_DTYPE), "bqkv": bqkv,
            "wo": layer["wo"].astype(MXU_DTYPE), "bo": layer["bo"],
            "ln1_g": layer["ln1_g"], "ln1_b": layer["ln1_b"],
            "w1": layer["w1"].astype(MXU_DTYPE), "b1": layer["b1"],
            "w2": layer["w2"].astype(MXU_DTYPE), "b2": layer["b2"],
            "ln2_g": layer["ln2_g"], "ln2_b": layer["ln2_b"],
        })
    return out


# ---------------------------------------------------------------------------
# Forward pass: BERT encoder; output = hidden_states[-2] + hidden_states[-1].
# ---------------------------------------------------------------------------
def bert_mid_layer_forward(params, input_ids, *, num_heads):
    B, S = input_ids.shape
    H = params["word_emb"].shape[1]
    Dh = H // num_heads

    # Embeddings: gather + broadcast-add are plain-JAX glue (non-rectangular gather).
    # token_type_ids fixed to 0, positions 0..S-1 (the reference only feeds token ids).
    emb = (params["word_emb"][input_ids]
           + params["pos_emb"][:S][None, :, :]
           + params["type_emb"][0][None, None, :]).reshape(B * S, H)
    hidden = layernorm(emb, params["emb_ln_g"], params["emb_ln_b"])

    n_layers = len(params["layers"])
    for li, layer in enumerate(params["layers"]):
        h = hidden  # hidden_states[li]; also needed for the final hidden[-2] + hidden[-1].

        # Fused Q|K|V projection: activation read once, lane-dense (B*S, 3H) bf16 output.
        qkv = matmul_bias(h, layer["wqkv"], layer["bqkv"], out_dtype=MXU_DTYPE)
        qkv5 = qkv.reshape(B, S, 3, num_heads, Dh)          # free reshape, no transpose

        # Transpose-free multi-head attention; context already laid out as (B*S, H).
        ctx = fused_attention(qkv5, B, S, num_heads, Dh).reshape(B * S, H)

        # Attention output projection with fused bias + residual + LayerNorm (f32 hidden out).
        h1 = matmul_bias_residual_ln(ctx, layer["wo"], layer["bo"], h,
                                     layer["ln1_g"], layer["ln1_b"])

        # FFN: up-projection with fused GELU (bf16 intermediate), down-projection with fused
        # bias + residual + LayerNorm.  On the last layer also fold in `h`, which yields
        # hidden_states[-2] + hidden_states[-1] directly in the epilogue.
        ff = matmul_bias(h1, layer["w1"], layer["b1"], activation="gelu",
                         out_dtype=MXU_DTYPE)
        extra = h if li == n_layers - 1 else None
        hidden = matmul_bias_residual_ln(ff, layer["w2"], layer["b2"], h1,
                                         layer["ln2_g"], layer["ln2_b"], extra=extra)

    # `hidden` already equals hidden_states[-2] + hidden_states[-1].
    return hidden.reshape(B, S, H)


# ---------------------------------------------------------------------------
if __name__ == "__main__":
    # Small synthetic config consistent with a BERT encoder.
    VOCAB, MAX_POS, TYPE_VOCAB = 64, 32, 2
    HIDDEN, NUM_LAYERS, NUM_HEADS, INTERMEDIATE = 32, 2, 2, 64
    B, S = 2, 8

    key = jax.random.PRNGKey(0)
    pkey, dkey = jax.random.split(key)
    raw_params = init_bert_params(
        pkey, vocab=VOCAB, max_pos=MAX_POS, type_vocab=TYPE_VOCAB,
        hidden=HIDDEN, num_layers=NUM_LAYERS, num_heads=NUM_HEADS,
        intermediate=INTERMEDIATE)
    params = prepare_params_for_tpu(raw_params, num_heads=NUM_HEADS)

    input_ids = jax.random.randint(dkey, (B, S), 0, VOCAB, dtype=jnp.int32)

    fwd = jax.jit(functools.partial(bert_mid_layer_forward, num_heads=NUM_HEADS))
    out = fwd(params, input_ids)
    jax.block_until_ready(out)
    assert out.shape == (B, S, HIDDEN) and out.dtype == jnp.float32
    print("KERNEL_OK")
</pallas_src>

<mosaic_0001>
module attributes {stable_mosaic.version = 11 : i64} {
  func.func @_layernorm_kernel(%arg0: i32, %arg1: memref<16x32xf32, #tpu.memory_space<vmem>>, %arg2: memref<1x32xf32, #tpu.memory_space<vmem>>, %arg3: memref<1x32xf32, #tpu.memory_space<vmem>>, %arg4: memref<16x32xf32, #tpu.memory_space<vmem>>) attributes {dimension_semantics = [#tpu.dimension_semantics<parallel>], iteration_bounds = array<i64: 1>, scalar_prefetch = 0 : i64, scratch_operands = 0 : i64, tpu.core_type = #tpu.core_type<tc>, window_params = [{transform_indices = @transform_0, window_bounds = array<i64: 16, 32>}, {pipeline_mode = #tpu.pipeline_mode<synchronous>, transform_indices = @transform_1, window_bounds = array<i64: 1, 32>}, {pipeline_mode = #tpu.pipeline_mode<synchronous>, transform_indices = @transform_2, window_bounds = array<i64: 1, 32>}, {transform_indices = @transform_3, window_bounds = array<i64: 16, 32>}]} {
    %c0 = arith.constant 0 : index
    %c0_0 = arith.constant 0 : index
    %0 = vector.load %arg1[%c0, %c0_0] : memref<16x32xf32, #tpu.memory_space<vmem>>, vector<16x32xf32>
    %cst = arith.constant dense<0.000000e+00> : vector<16xf32>
    %1 = vector.multi_reduction <add>, %0, %cst [1] : vector<16x32xf32> to vector<16xf32>
    %2 = vector.shape_cast %1 : vector<16xf32> to vector<16x1xf32>
    %cst_1 = arith.constant 3.200000e+01 : f32
    %3 = vector.broadcast %cst_1 : f32 to vector<16x1xf32>
    %4 = arith.divf %2, %3 : vector<16x1xf32>
    %5 = vector.broadcast %4 : vector<16x1xf32> to vector<16x32xf32>
    %6 = arith.subf %0, %5 : vector<16x32xf32>
    %7 = arith.mulf %6, %6 : vector<16x32xf32>
    %cst_2 = arith.constant dense<0.000000e+00> : vector<16xf32>
    %8 = vector.multi_reduction <add>, %7, %cst_2 [1] : vector<16x32xf32> to vector<16xf32>
    %9 = vector.shape_cast %8 : vector<16xf32> to vector<16x1xf32>
    %cst_3 = arith.constant 3.200000e+01 : f32
    %10 = vector.broadcast %cst_3 : f32 to vector<16x1xf32>
    %11 = arith.divf %9, %10 : vector<16x1xf32>
    %cst_4 = arith.constant 9.99999996E-13 : f32
    %12 = vector.broadcast %cst_4 : f32 to vector<16x1xf32>
    %13 = arith.addf %11, %12 : vector<16x1xf32>
    %14 = math.rsqrt %13 : vector<16x1xf32>
    %15 = vector.broadcast %14 : vector<16x1xf32> to vector<16x32xf32>
    %16 = arith.mulf %6, %15 : vector<16x32xf32>
    %c0_5 = arith.constant 0 : index
    %c0_6 = arith.constant 0 : index
    %17 = vector.load %arg2[%c0_5, %c0_6] : memref<1x32xf32, #tpu.memory_space<vmem>>, vector<1x32xf32>
    %18 = vector.broadcast %17 : vector<1x32xf32> to vector<16x32xf32>
    %19 = arith.mulf %16, %18 : vector<16x32xf32>
    %c0_7 = arith.constant 0 : index
    %c0_8 = arith.constant 0 : index
    %20 = vector.load %arg3[%c0_7, %c0_8] : memref<1x32xf32, #tpu.memory_space<vmem>>, vector<1x32xf32>
    %21 = vector.broadcast %20 : vector<1x32xf32> to vector<16x32xf32>
    %22 = arith.addf %19, %21 : vector<16x32xf32>
    %c0_9 = arith.constant 0 : index
    %c0_10 = arith.constant 0 : index
    %23 = vector.load %arg4[%c0_9, %c0_10] : memref<16x32xf32, #tpu.memory_space<vmem>>, vector<16x32xf32>
    tpu.vector_store %arg4[%c0_9, %c0_10], %22 {strides = array<i32>} : memref<16x32xf32, #tpu.memory_space<vmem>>, vector<16x32xf32>,
    return
  }
  func.func @transform_0(%arg0: i32) -> (i32, i32) {
    %c0_i32 = arith.constant 0 : i32
    %c0_i32_0 = arith.constant 0 : i32
    return %arg0, %c0_i32 : i32, i32
  }
  func.func @transform_1(%arg0: i32) -> (i32, i32) {
    %c0_i32 = arith.constant 0 : i32
    %c0_i32_0 = arith.constant 0 : i32
    %c0_i32_1 = arith.constant 0 : i32
    return %c0_i32, %c0_i32_0 : i32, i32
  }
  func.func @transform_2(%arg0: i32) -> (i32, i32) {
    %c0_i32 = arith.constant 0 : i32
    %c0_i32_0 = arith.constant 0 : i32
    %c0_i32_1 = arith.constant 0 : i32
    return %c0_i32, %c0_i32_0 : i32, i32
  }
  func.func @transform_3(%arg0: i32) -> (i32, i32) {
    %c0_i32 = arith.constant 0 : i32
    %c0_i32_0 = arith.constant 0 : i32
    return %arg0, %c0_i32 : i32, i32
  }
}

module attributes {stable_mosaic.version = 11 : i64} {
  func.func @_matmul_bias_kernel(%arg0: i32, %arg1: i32, %arg2: i32, %arg3: memref<16x32xf32, #tpu.memory_space<vmem>>, %arg4: memref<32x96xbf16, #tpu.memory_space<vmem>>, %arg5: memref<1x96xf32, #tpu.memory_space<vmem>>, %arg6: memref<16x96xbf16, #tpu.memory_space<vmem>>, %arg7: memref<16x96xf32, #tpu.memory_space<vmem>>) attributes {dimension_semantics = [#tpu.dimension_semantics<parallel>, #tpu.dimension_semantics<parallel>, #tpu.dimension_semantics<arbitrary>], iteration_bounds = array<i64: 1, 1, 1>, scalar_prefetch = 0 : i64, scratch_operands = 1 : i64, tpu.core_type = #tpu.core_type<tc>, window_params = [{transform_indices = @transform_0, window_bounds = array<i64: 16, 32>}, {transform_indices = @transform_1, window_bounds = array<i64: 32, 96>}, {transform_indices = @transform_2, window_bounds = array<i64: 1, 96>}, {transform_indices = @transform_3, window_bounds = array<i64: 16, 96>}]} {
    %c0_i32 = arith.constant 0 : i32
    %0 = arith.cmpi eq, %arg2, %c0_i32 : i32
    %1 = arith.extui %0 : i1 to i32
    %c0_i32_0 = arith.constant 0 : i32
    %2 = arith.cmpi ne, %1, %c0_i32_0 : i32
    scf.if %2 {
      %cst_10 = arith.constant 0.000000e+00 : f32
      %13 = vector.broadcast %cst_10 : f32 to vector<16x96xf32>
      %c0_11 = arith.constant 0 : index
      %c0_12 = arith.constant 0 : index
      %14 = vector.load %arg7[%c0_11, %c0_12] : memref<16x96xf32, #tpu.memory_space<vmem>>, vector<16x96xf32>
      tpu.vector_store %arg7[%c0_11, %c0_12], %13 {strides = array<i32>} : memref<16x96xf32, #tpu.memory_space<vmem>>, vector<16x96xf32>,
    } else {
    }
    %c0 = arith.constant 0 : index
    %c0_1 = arith.constant 0 : index
    %3 = vector.load %arg7[%c0, %c0_1] : memref<16x96xf32, #tpu.memory_space<vmem>>, vector<16x96xf32>
    %c0_2 = arith.constant 0 : index
    %c0_3 = arith.constant 0 : index
    %4 = vector.load %arg3[%c0_2, %c0_3] : memref<16x32xf32, #tpu.memory_space<vmem>>, vector<16x32xf32>
    %5 = arith.truncf %4 : vector<16x32xf32> to vector<16x32xbf16>
    %c0_4 = arith.constant 0 : index
    %c0_5 = arith.constant 0 : index
    %6 = vector.load %arg4[%c0_4, %c0_5] : memref<32x96xbf16, #tpu.memory_space<vmem>>, vector<32x96xbf16>
    %cst = arith.constant dense<0.000000e+00> : vector<16x96xf32>
    %7 = tpu.matmul %5, %6, %cst {dimension_numbers = #tpu.dot_dimension_numbers<[1], [0], [0], [1], [0, 0, 1, 1], [], []>} : vector<16x32xbf16>, vector<32x96xbf16>, vector<16x96xf32> -> vector<16x96xf32>
    %8 = arith.addf %3, %7 : vector<16x96xf32>
    %c0_6 = arith.constant 0 : index
    %c0_7 = arith.constant 0 : index
    %9 = vector.load %arg7[%c0_6, %c0_7] : memref<16x96xf32, #tpu.memory_space<vmem>>, vector<16x96xf32>
    tpu.vector_store %arg7[%c0_6, %c0_7], %8 {strides = array<i32>} : memref<16x96xf32, #tpu.memory_space<vmem>>, vector<16x96xf32>,
    %c0_i32_8 = arith.constant 0 : i32
    %10 = arith.cmpi eq, %arg2, %c0_i32_8 : i32
    %11 = arith.extui %10 : i1 to i32
    %c0_i32_9 = arith.constant 0 : i32
    %12 = arith.cmpi ne, %11, %c0_i32_9 : i32
    scf.if %12 {
      %c0_10 = arith.constant 0 : index
      %c0_11 = arith.constant 0 : index
      %13 = vector.load %arg7[%c0_10, %c0_11] : memref<16x96xf32, #tpu.memory_space<vmem>>, vector<16x96xf32>
      %c0_12 = arith.constant 0 : index
      %c0_13 = arith.constant 0 : index
      %14 = vector.load %arg5[%c0_12, %c0_13] : memref<1x96xf32, #tpu.memory_space<vmem>>, vector<1x96xf32>
      %15 = vector.broadcast %14 : vector<1x96xf32> to vector<16x96xf32>
      %16 = arith.addf %13, %15 : vector<16x96xf32>
      %17 = arith.truncf %16 : vector<16x96xf32> to vector<16x96xbf16>
      %c0_14 = arith.constant 0 : index
      %c0_15 = arith.constant 0 : index
      %18 = vector.load %arg6[%c0_14, %c0_15] : memref<16x96xbf16, #tpu.memory_space<vmem>>, vector<16x96xbf16>
      tpu.vector_store %arg6[%c0_14, %c0_15], %17 {strides = array<i32>} : memref<16x96xbf16, #tpu.memory_space<vmem>>, vector<16x96xbf16>,
    } else {
    }
    return
  }
  func.func @transform_0(%arg0: i32, %arg1: i32, %arg2: i32) -> (i32, i32) {
    %c0_i32 = arith.constant 0 : i32
    return %arg0, %arg2 : i32, i32
  }
  func.func @transform_1(%arg0: i32, %arg1: i32, %arg2: i32) -> (i32, i32) {
    %c0_i32 = arith.constant 0 : i32
    return %arg2, %arg1 : i32, i32
  }
  func.func @transform_2(%arg0: i32, %arg1: i32, %arg2: i32) -> (i32, i32) {
    %c0_i32 = arith.constant 0 : i32
    %c0_i32_0 = arith.constant 0 : i32
    return %c0_i32, %arg1 : i32, i32
  }
  func.func @transform_3(%arg0: i32, %arg1: i32, %arg2: i32) -> (i32, i32) {
    %c0_i32 = arith.constant 0 : i32
    return %arg0, %arg1 : i32, i32
  }
}

module attributes {stable_mosaic.version = 11 : i64} {
  func.func @_attention_kernel(%arg0: i32, %arg1: i32, %arg2: memref<1x8x1x2x16xbf16, #tpu.memory_space<vmem>>, %arg3: memref<1x8x1x2x16xbf16, #tpu.memory_space<vmem>>, %arg4: memref<1x8x1x2x16xbf16, #tpu.memory_space<vmem>>, %arg5: memref<1x8x2x16xbf16, #tpu.memory_space<vmem>>) attributes {dimension_semantics = [#tpu.dimension_semantics<parallel>, #tpu.dimension_semantics<parallel>], iteration_bounds = array<i64: 2, 1>, scalar_prefetch = 0 : i64, scratch_operands = 0 : i64, tpu.core_type = #tpu.core_type<tc>, window_params = [{transform_indices = @transform_0, window_bounds = array<i64: 1, 8, 1, 2, 16>}, {transform_indices = @transform_1, window_bounds = array<i64: 1, 8, 1, 2, 16>}, {transform_indices = @transform_2, window_bounds = array<i64: 1, 8, 1, 2, 16>}, {transform_indices = @transform_3, window_bounds = array<i64: 1, 8, 2, 16>}]} {
    %c0 = arith.constant 0 : index
    %c0_0 = arith.constant 0 : index
    %c0_1 = arith.constant 0 : index
    %c0_2 = arith.constant 0 : index
    %c0_3 = arith.constant 0 : index
    %0 = vector.load %arg2[%c0, %c0_0, %c0_1, %c0_2, %c0_3] : memref<1x8x1x2x16xbf16, #tpu.memory_space<vmem>>, vector<1x8x1x1x16xbf16>
    %1 = vector.shape_cast %0 : vector<1x8x1x1x16xbf16> to vector<8x16xbf16>
    %c0_4 = arith.constant 0 : index
    %c0_5 = arith.constant 0 : index
    %c0_6 = arith.constant 0 : index
    %c0_7 = arith.constant 0 : index
    %c0_8 = arith.constant 0 : index
    %2 = vector.load %arg3[%c0_4, %c0_5, %c0_6, %c0_7, %c0_8] : memref<1x8x1x2x16xbf16, #tpu.memory_space<vmem>>, vector<1x8x1x1x16xbf16>
    %3 = vector.shape_cast %2 : vector<1x8x1x1x16xbf16> to vector<8x16xbf16>
    %c0_9 = arith.constant 0 : index
    %c0_10 = arith.constant 0 : index
    %c0_11 = arith.constant 0 : index
    %c0_12 = arith.constant 0 : index
    %c0_13 = arith.constant 0 : index
    %4 = vector.load %arg4[%c0_9, %c0_10, %c0_11, %c0_12, %c0_13] : memref<1x8x1x2x16xbf16, #tpu.memory_space<vmem>>, vector<1x8x1x1x16xbf16>
    %5 = vector.shape_cast %4 : vector<1x8x1x1x16xbf16> to vector<8x16xbf16>
    "tpu.trace_start"() <{level = 10 : i32, message = "qd,kd->qk"}> : () -> ()
    %cst = arith.constant dense<0.000000e+00> : vector<8x8xf32>
    %6 = tpu.matmul %1, %3, %cst {dimension_numbers = #tpu.dot_dimension_numbers<[1], [1], [0], [0], [0, 0, 1, 0], [], []>} : vector<8x16xbf16>, vector<8x16xbf16>, vector<8x8xf32> -> vector<8x8xf32>
    "tpu.trace_stop"() : () -> ()
    %cst_14 = arith.constant dense<0xFF800000> : vector<8xf32>
    %7 = vector.multi_reduction <maximumf>, %6, %cst_14 [1] : vector<8x8xf32> to vector<8xf32>
    %8 = vector.shape_cast %7 : vector<8xf32> to vector<8x1xf32>
    %9 = vector.broadcast %8 : vector<8x1xf32> to vector<8x8xf32>
    %10 = arith.subf %6, %9 : vector<8x8xf32>
    %11 = math.exp %10 : vector<8x8xf32>
    %cst_15 = arith.constant dense<0.000000e+00> : vector<8xf32>
    %12 = vector.multi_reduction <add>, %11, %cst_15 [1] : vector<8x8xf32> to vector<8xf32>
    %13 = vector.shape_cast %12 : vector<8xf32> to vector<8x1xf32>
    %14 = arith.truncf %11 : vector<8x8xf32> to vector<8x8xbf16>
    "tpu.trace_start"() <{level = 10 : i32, message = "qk,kd->qd"}> : () -> ()
    %cst_16 = arith.constant dense<0.000000e+00> : vector<8x16xf32>
    %15 = tpu.matmul %14, %5, %cst_16 {dimension_numbers = #tpu.dot_dimension_numbers<[1], [0], [0], [1], [0, 0, 1, 1], [], []>} : vector<8x8xbf16>, vector<8x16xbf16>, vector<8x16xf32> -> vector<8x16xf32>
    "tpu.trace_stop"() : () -> ()
    %16 = tpu.reciprocal %13 {approx = true} : vector<8x1xf32> -> vector<8x1xf32>
    %17 = vector.broadcast %16 : vector<8x1xf32> to vector<8x16xf32>
    %18 = arith.mulf %15, %17 : vector<8x16xf32>
    %19 = arith.truncf %18 : vector<8x16xf32> to vector<8x16xbf16>
    %c0_17 = arith.constant 0 : index
    %c0_18 = arith.constant 0 : index
    %c0_19 = arith.constant 0 : index
    %c0_20 = arith.constant 0 : index
    %20 = vector.load %arg5[%c0_17, %c0_18, %c0_19, %c0_20] : memref<1x8x2x16xbf16, #tpu.memory_space<vmem>>, vector<1x8x1x16xbf16>
    %21 = vector.shape_cast %20 : vector<1x8x1x16xbf16> to vector<8x16xbf16>
    %22 = vector.shape_cast %19 : vector<8x16xbf16> to vector<1x8x1x16xbf16>
    tpu.vector_store %arg5[%c0_17, %c0_18, %c0_19, %c0_20], %22 {strides = array<i32>} : memref<1x8x2x16xbf16, #tpu.memory_space<vmem>>, vector<1x8x1x16xbf16>,
    %c0_21 = arith.constant 0 : index
    %c0_22 = arith.constant 0 : index
    %c0_23 = arith.constant 0 : index
    %c1 = arith.constant 1 : index
    %c0_24 = arith.constant 0 : index
    %23 = vector.load %arg2[%c0_21, %c0_22, %c0_23, %c1, %c0_24] : memref<1x8x1x2x16xbf16, #tpu.memory_space<vmem>>, vector<1x8x1x1x16xbf16>
    %24 = vector.shape_cast %23 : vector<1x8x1x1x16xbf16> to vector<8x16xbf16>
    %c0_25 = arith.constant 0 : index
    %c0_26 = arith.constant 0 : index
    %c0_27 = arith.constant 0 : index
    %c1_28 = arith.constant 1 : index
    %c0_29 = arith.constant 0 : index
    %25 = vector.load %arg3[%c0_25, %c0_26, %c0_27, %c1_28, %c0_29] : memref<1x8x1x2x16xbf16, #tpu.memory_space<vmem>>, vector<1x8x1x1x16xbf16>
    %26 = vector.shape_cast %25 : vector<1x8x1x1x16xbf16> to vector<8x16xbf16>
    %c0_30 = arith.constant 0 : index
    %c0_31 = arith.constant 0 : index
    %c0_32 = arith.constant 0 : index
    %c1_33 = arith.constant 1 : index
    %c0_34 = arith.constant 0 : index
    %27 = vector.load %arg4[%c0_30, %c0_31, %c0_32, %c1_33, %c0_34] : memref<1x8x1x2x16xbf16, #tpu.memory_space<vmem>>, vector<1x8x1x1x16xbf16>
    %28 = vector.shape_cast %27 : vector<1x8x1x1x16xbf16> to vector<8x16xbf16>
    "tpu.trace_start"() <{level = 10 : i32, message = "qd,kd->qk"}> : () -> ()
    %cst_35 = arith.constant dense<0.000000e+00> : vector<8x8xf32>
    %29 = tpu.matmul %24, %26, %cst_35 {dimension_numbers = #tpu.dot_dimension_numbers<[1], [1], [0], [0], [0, 0, 1, 0], [], []>} : vector<8x16xbf16>, vector<8x16xbf16>, vector<8x8xf32> -> vector<8x8xf32>
    "tpu.trace_stop"() : () -> ()
    %cst_36 = arith.constant dense<0xFF800000> : vector<8xf32>
    %30 = vector.multi_reduction <maximumf>, %29, %cst_36 [1] : vector<8x8xf32> to vector<8xf32>
    %31 = vector.shape_cast %30 : vector<8xf32> to vector<8x1xf32>
    %32 = vector.broadcast %31 : vector<8x1xf32> to vector<8x8xf32>
    %33 = arith.subf %29, %32 : vector<8x8xf32>
    %34 = math.exp %33 : vector<8x8xf32>
    %cst_37 = arith.constant dense<0.000000e+00> : vector<8xf32>
    %35 = vector.multi_reduction <add>, %34, %cst_37 [1] : vector<8x8xf32> to vector<8xf32>
    %36 = vector.shape_cast %35 : vector<8xf32> to vector<8x1xf32>
    %37 = arith.truncf %34 : vector<8x8xf32> to vector<8x8xbf16>
    "tpu.trace_start"() <{level = 10 : i32, message = "qk,kd->qd"}> : () -> ()
    %cst_38 = arith.constant dense<0.000000e+00> : vector<8x16xf32>
    %38 = tpu.matmul %37, %28, %cst_38 {dimension_numbers = #tpu.dot_dimension_numbers<[1], [0], [0], [1], [0, 0, 1, 1], [], []>} : vector<8x8xbf16>, vector<8x16xbf16>, vector<8x16xf32> -> vector<8x16xf32>
    "tpu.trace_stop"() : () -> ()
    %39 = tpu.reciprocal %36 {approx = true} : vector<8x1xf32> -> vector<8x1xf32>
    %40 = vector.broadcast %39 : vector<8x1xf32> to vector<8x16xf32>
    %41 = arith.mulf %38, %40 : vector<8x16xf32>
    %42 = arith.truncf %41 : vector<8x16xf32> to vector<8x16xbf16>
    %c0_39 = arith.constant 0 : index
    %c0_40 = arith.constant 0 : index
    %c1_41 = arith.constant 1 : index
    %c0_42 = arith.constant 0 : index
    %43 = vector.load %arg5[%c0_39, %c0_40, %c1_41, %c0_42] : memref<1x8x2x16xbf16, #tpu.memory_space<vmem>>, vector<1x8x1x16xbf16>
    %44 = vector.shape_cast %43 : vector<1x8x1x16xbf16> to vector<8x16xbf16>
    %45 = vector.shape_cast %42 : vector<8x16xbf16> to vector<1x8x1x16xbf16>
    tpu.vector_store %arg5[%c0_39, %c0_40, %c1_41, %c0_42], %45 {strides = array<i32>} : memref<1x8x2x16xbf16, #tpu.memory_space<vmem>>, vector<1x8x1x16xbf16>,
    return
  }
  func.func @transform_0(%arg0: i32, %arg1: i32) -> (i32, i32, i32, i32, i32) {
    %c0_i32 = arith.constant 0 : i32
    %c0_i32_0 = arith.constant 0 : i32
    %c0_i32_1 = arith.constant 0 : i32
    %c0_i32_2 = arith.constant 0 : i32
    return %arg0, %arg1, %c0_i32, %c0_i32_0, %c0_i32_1 : i32, i32, i32, i32, i32
  }
  func.func @transform_1(%arg0: i32, %arg1: i32) -> (i32, i32, i32, i32, i32) {
    %c0_i32 = arith.constant 0 : i32
    %c1_i32 = arith.constant 1 : i32
    %c0_i32_0 = arith.constant 0 : i32
    %c0_i32_1 = arith.constant 0 : i32
    %c0_i32_2 = arith.constant 0 : i32
    return %arg0, %c0_i32, %c1_i32, %c0_i32_0, %c0_i32_1 : i32, i32, i32, i32, i32
  }
  func.func @transform_2(%arg0: i32, %arg1: i32) -> (i32, i32, i32, i32, i32) {
    %c0_i32 = arith.constant 0 : i32
    %c2_i32 = arith.constant 2 : i32
    %c0_i32_0 = arith.constant 0 : i32
    %c0_i32_1 = arith.constant 0 : i32
    %c0_i32_2 = arith.constant 0 : i32
    return %arg0, %c0_i32, %c2_i32, %c0_i32_0, %c0_i32_1 : i32, i32, i32, i32, i32
  }
  func.func @transform_3(%arg0: i32, %arg1: i32) -> (i32, i32, i32, i32) {
    %c0_i32 = arith.constant 0 : i32
    %c0_i32_0 = arith.constant 0 : i32
    %c0_i32_1 = arith.constant 0 : i32
    return %arg0, %arg1, %c0_i32, %c0_i32_0 : i32, i32, i32, i32
  }
}

module attributes {stable_mosaic.version = 11 : i64} {
  func.func @_matmul_res_ln_kernel(%arg0: i32, %arg1: i32, %arg2: memref<16x32xbf16, #tpu.memory_space<vmem>>, %arg3: memref<32x32xbf16, #tpu.memory_space<vmem>>, %arg4: memref<1x32xf32, #tpu.memory_space<vmem>>, %arg5: memref<16x32xf32, #tpu.memory_space<vmem>>, %arg6: memref<1x32xf32, #tpu.memory_space<vmem>>, %arg7: memref<1x32xf32, #tpu.memory_space<vmem>>, %arg8: memref<16x32xf32, #tpu.memory_space<vmem>>, %arg9: memref<16x32xf32, #tpu.memory_space<vmem>>) attributes {dimension_semantics = [#tpu.dimension_semantics<parallel>, #tpu.dimension_semantics<arbitrary>], iteration_bounds = array<i64: 1, 1>, scalar_prefetch = 0 : i64, scratch_operands = 1 : i64, tpu.core_type = #tpu.core_type<tc>, window_params = [{transform_indices = @transform_0, window_bounds = array<i64: 16, 32>}, {transform_indices = @transform_1, window_bounds = array<i64: 32, 32>}, {pipeline_mode = #tpu.pipeline_mode<synchronous>, transform_indices = @transform_2, window_bounds = array<i64: 1, 32>}, {transform_indices = @transform_3, window_bounds = array<i64: 16, 32>}, {pipeline_mode = #tpu.pipeline_mode<synchronous>, transform_indices = @transform_4, window_bounds = array<i64: 1, 32>}, {pipeline_mode = #tpu.pipeline_mode<synchronous>, transform_indices = @transform_5, window_bounds = array<i64: 1, 32>}, {transform_indices = @transform_6, window_bounds = array<i64: 16, 32>}]} {
    %c0_i32 = arith.constant 0 : i32
    %0 = arith.cmpi eq, %arg1, %c0_i32 : i32
    %1 = arith.extui %0 : i1 to i32
    %c0_i32_0 = arith.constant 0 : i32
    %2 = arith.cmpi ne, %1, %c0_i32_0 : i32
    scf.if %2 {
      %cst_10 = arith.constant 0.000000e+00 : f32
      %12 = vector.broadcast %cst_10 : f32 to vector<16x32xf32>
      %c0_11 = arith.constant 0 : index
      %c0_12 = arith.constant 0 : index
      %13 = vector.load %arg9[%c0_11, %c0_12] : memref<16x32xf32, #tpu.memory_space<vmem>>, vector<16x32xf32>
      tpu.vector_store %arg9[%c0_11, %c0_12], %12 {strides = array<i32>} : memref<16x32xf32, #tpu.memory_space<vmem>>, vector<16x32xf32>,
    } else {
    }
    %c0 = arith.constant 0 : index
    %c0_1 = arith.constant 0 : index
    %3 = vector.load %arg9[%c0, %c0_1] : memref<16x32xf32, #tpu.memory_space<vmem>>, vector<16x32xf32>
    %c0_2 = arith.constant 0 : index
    %c0_3 = arith.constant 0 : index
    %4 = vector.load %arg2[%c0_2, %c0_3] : memref<16x32xbf16, #tpu.memory_space<vmem>>, vector<16x32xbf16>
    %c0_4 = arith.constant 0 : index
    %c0_5 = arith.constant 0 : index
    %5 = vector.load %arg3[%c0_4, %c0_5] : memref<32x32xbf16, #tpu.memory_space<vmem>>, vector<32x32xbf16>
    %cst = arith.constant dense<0.000000e+00> : vector<16x32xf32>
    %6 = tpu.matmul %4, %5, %cst {dimension_numbers = #tpu.dot_dimension_numbers<[1], [0], [0], [1], [0, 0, 1, 1], [], []>} : vector<16x32xbf16>, vector<32x32xbf16>, vector<16x32xf32> -> vector<16x32xf32>
    %7 = arith.addf %3, %6 : vector<16x32xf32>
    %c0_6 = arith.constant 0 : index
    %c0_7 = arith.constant 0 : index
    %8 = vector.load %arg9[%c0_6, %c0_7] : memref<16x32xf32, #tpu.memory_space<vmem>>, vector<16x32xf32>
    tpu.vector_store %arg9[%c0_6, %c0_7], %7 {strides = array<i32>} : memref<16x32xf32, #tpu.memory_space<vmem>>, vector<16x32xf32>,
    %c0_i32_8 = arith.constant 0 : i32
    %9 = arith.cmpi eq, %arg1, %c0_i32_8 : i32
    %10 = arith.extui %9 : i1 to i32
    %c0_i32_9 = arith.constant 0 : i32
    %11 = arith.cmpi ne, %10, %c0_i32_9 : i32
    scf.if %11 {
      %c0_10 = arith.constant 0 : index
      %c0_11 = arith.constant 0 : index
      %12 = vector.load %arg9[%c0_10, %c0_11] : memref<16x32xf32, #tpu.memory_space<vmem>>, vector<16x32xf32>
      %c0_12 = arith.constant 0 : index
      %c0_13 = arith.constant 0 : index
      %13 = vector.load %arg4[%c0_12, %c0_13] : memref<1x32xf32, #tpu.memory_space<vmem>>, vector<1x32xf32>
      %14 = vector.broadcast %13 : vector<1x32xf32> to vector<16x32xf32>
      %15 = arith.addf %12, %14 : vector<16x32xf32>
      %c0_14 = arith.constant 0 : index
      %c0_15 = arith.constant 0 : index
      %16 = vector.load %arg5[%c0_14, %c0_15] : memref<16x32xf32, #tpu.memory_space<vmem>>, vector<16x32xf32>
      %17 = arith.addf %15, %16 : vector<16x32xf32>
      %cst_16 = arith.constant dense<0.000000e+00> : vector<16xf32>
      %18 = vector.multi_reduction <add>, %17, %cst_16 [1] : vector<16x32xf32> to vector<16xf32>
      %19 = vector.shape_cast %18 : vector<16xf32> to vector<16x1xf32>
      %cst_17 = arith.constant 3.200000e+01 : f32
      %20 = vector.broadcast %cst_17 : f32 to vector<16x1xf32>
      %21 = arith.divf %19, %20 : vector<16x1xf32>
      %22 = vector.broadcast %21 : vector<16x1xf32> to vector<16x32xf32>
      %23 = arith.subf %17, %22 : vector<16x32xf32>
      %24 = arith.mulf %23, %23 : vector<16x32xf32>
      %cst_18 = arith.constant dense<0.000000e+00> : vector<16xf32>
      %25 = vector.multi_reduction <add>, %24, %cst_18 [1] : vector<16x32xf32> to vector<16xf32>
      %26 = vector.shape_cast %25 : vector<16xf32> to vector<16x1xf32>
      %cst_19 = arith.constant 3.200000e+01 : f32
      %27 = vector.broadcast %cst_19 : f32 to vector<16x1xf32>
      %28 = arith.divf %26, %27 : vector<16x1xf32>
      %cst_20 = arith.constant 9.99999996E-13 : f32
      %29 = vector.broadcast %cst_20 : f32 to vector<16x1xf32>
      %30 = arith.addf %28, %29 : vector<16x1xf32>
      %31 = math.rsqrt %30 : vector<16x1xf32>
      %32 = vector.broadcast %31 : vector<16x1xf32> to vector<16x32xf32>
      %33 = arith.mulf %23, %32 : vector<16x32xf32>
      %c0_21 = arith.constant 0 : index
      %c0_22 = arith.constant 0 : index
      %34 = vector.load %arg6[%c0_21, %c0_22] : memref<1x32xf32, #tpu.memory_space<vmem>>, vector<1x32xf32>
      %35 = vector.broadcast %34 : vector<1x32xf32> to vector<16x32xf32>
      %36 = arith.mulf %33, %35 : vector<16x32xf32>
      %c0_23 = arith.constant 0 : index
      %c0_24 = arith.constant 0 : index
      %37 = vector.load %arg7[%c0_23, %c0_24] : memref<1x32xf32, #tpu.memory_space<vmem>>, vector<1x32xf32>
      %38 = vector.broadcast %37 : vector<1x32xf32> to vector<16x32xf32>
      %39 = arith.addf %36, %38 : vector<16x32xf32>
      %c0_25 = arith.constant 0 : index
      %c0_26 = arith.constant 0 : index
      %40 = vector.load %arg8[%c0_25, %c0_26] : memref<16x32xf32, #tpu.memory_space<vmem>>, vector<16x32xf32>
      tpu.vector_store %arg8[%c0_25, %c0_26], %39 {strides = array<i32>} : memref<16x32xf32, #tpu.memory_space<vmem>>, vector<16x32xf32>,
    } else {
    }
    return
  }
  func.func @transform_0(%arg0: i32, %arg1: i32) -> (i32, i32) {
    %c0_i32 = arith.constant 0 : i32
    return %arg0, %arg1 : i32, i32
  }
  func.func @transform_1(%arg0: i32, %arg1: i32) -> (i32, i32) {
    %c0_i32 = arith.constant 0 : i32
    %c0_i32_0 = arith.constant 0 : i32
    return %arg1, %c0_i32 : i32, i32
  }
  func.func @transform_2(%arg0: i32, %arg1: i32) -> (i32, i32) {
    %c0_i32 = arith.constant 0 : i32
    %c0_i32_0 = arith.constant 0 : i32
    %c0_i32_1 = arith.constant 0 : i32
    return %c0_i32, %c0_i32_0 : i32, i32
  }
  func.func @transform_3(%arg0: i32, %arg1: i32) -> (i32, i32) {
    %c0_i32 = arith.constant 0 : i32
    %c0_i32_0 = arith.constant 0 : i32
    return %arg0, %c0_i32 : i32, i32
  }
  func.func @transform_4(%arg0: i32, %arg1: i32) -> (i32, i32) {
    %c0_i32 = arith.constant 0 : i32
    %c0_i32_0 = arith.constant 0 : i32
    %c0_i32_1 = arith.constant 0 : i32
    return %c0_i32, %c0_i32_0 : i32, i32
  }
  func.func @transform_5(%arg0: i32, %arg1: i32) -> (i32, i32) {
    %c0_i32 = arith.constant 0 : i32
    %c0_i32_0 = arith.constant 0 : i32
    %c0_i32_1 = arith.constant 0 : i32
    return %c0_i32, %c0_i32_0 : i32, i32
  }
  func.func @transform_6(%arg0: i32, %arg1: i32) -> (i32, i32) {
    %c0_i32 = arith.constant 0 : i32
    %c0_i32_0 = arith.constant 0 : i32
    return %arg0, %c0_i32 : i32, i32
  }
}

module attributes {stable_mosaic.version = 11 : i64} {
  func.func @_matmul_bias_kernel(%arg0: i32, %arg1: i32, %arg2: i32, %arg3: memref<16x32xf32, #tpu.memory_space<vmem>>, %arg4: memref<32x64xbf16, #tpu.memory_space<vmem>>, %arg5: memref<1x64xf32, #tpu.memory_space<vmem>>, %arg6: memref<16x64xbf16, #tpu.memory_space<vmem>>, %arg7: memref<16x64xf32, #tpu.memory_space<vmem>>) attributes {dimension_semantics = [#tpu.dimension_semantics<parallel>, #tpu.dimension_semantics<parallel>, #tpu.dimension_semantics<arbitrary>], iteration_bounds = array<i64: 1, 1, 1>, scalar_prefetch = 0 : i64, scratch_operands = 1 : i64, tpu.core_type = #tpu.core_type<tc>, window_params = [{transform_indices = @transform_0, window_bounds = array<i64: 16, 32>}, {transform_indices = @transform_1, window_bounds = array<i64: 32, 64>}, {transform_indices = @transform_2, window_bounds = array<i64: 1, 64>}, {transform_indices = @transform_3, window_bounds = array<i64: 16, 64>}]} {
    %c0_i32 = arith.constant 0 : i32
    %0 = arith.cmpi eq, %arg2, %c0_i32 : i32
    %1 = arith.extui %0 : i1 to i32
    %c0_i32_0 = arith.constant 0 : i32
    %2 = arith.cmpi ne, %1, %c0_i32_0 : i32
    scf.if %2 {
      %cst_10 = arith.constant 0.000000e+00 : f32
      %13 = vector.broadcast %cst_10 : f32 to vector<16x64xf32>
      %c0_11 = arith.constant 0 : index
      %c0_12 = arith.constant 0 : index
      %14 = vector.load %arg7[%c0_11, %c0_12] : memref<16x64xf32, #tpu.memory_space<vmem>>, vector<16x64xf32>
      tpu.vector_store %arg7[%c0_11, %c0_12], %13 {strides = array<i32>} : memref<16x64xf32, #tpu.memory_space<vmem>>, vector<16x64xf32>,
    } else {
    }
    %c0 = arith.constant 0 : index
    %c0_1 = arith.constant 0 : index
    %3 = vector.load %arg7[%c0, %c0_1] : memref<16x64xf32, #tpu.memory_space<vmem>>, vector<16x64xf32>
    %c0_2 = arith.constant 0 : index
    %c0_3 = arith.constant 0 : index
    %4 = vector.load %arg3[%c0_2, %c0_3] : memref<16x32xf32, #tpu.memory_space<vmem>>, vector<16x32xf32>
    %5 = arith.truncf %4 : vector<16x32xf32> to vector<16x32xbf16>
    %c0_4 = arith.constant 0 : index
    %c0_5 = arith.constant 0 : index
    %6 = vector.load %arg4[%c0_4, %c0_5] : memref<32x64xbf16, #tpu.memory_space<vmem>>, vector<32x64xbf16>
    %cst = arith.constant dense<0.000000e+00> : vector<16x64xf32>
    %7 = tpu.matmul %5, %6, %cst {dimension_numbers = #tpu.dot_dimension_numbers<[1], [0], [0], [1], [0, 0, 1, 1], [], []>} : vector<16x32xbf16>, vector<32x64xbf16>, vector<16x64xf32> -> vector<16x64xf32>
    %8 = arith.addf %3, %7 : vector<16x64xf32>
    %c0_6 = arith.constant 0 : index
    %c0_7 = arith.constant 0 : index
    %9 = vector.load %arg7[%c0_6, %c0_7] : memref<16x64xf32, #tpu.memory_space<vmem>>, vector<16x64xf32>
    tpu.vector_store %arg7[%c0_6, %c0_7], %8 {strides = array<i32>} : memref<16x64xf32, #tpu.memory_space<vmem>>, vector<16x64xf32>,
    %c0_i32_8 = arith.constant 0 : i32
    %10 = arith.cmpi eq, %arg2, %c0_i32_8 : i32
    %11 = arith.extui %10 : i1 to i32
    %c0_i32_9 = arith.constant 0 : i32
    %12 = arith.cmpi ne, %11, %c0_i32_9 : i32
    scf.if %12 {
      %c0_10 = arith.constant 0 : index
      %c0_11 = arith.constant 0 : index
      %13 = vector.load %arg7[%c0_10, %c0_11] : memref<16x64xf32, #tpu.memory_space<vmem>>, vector<16x64xf32>
      %c0_12 = arith.constant 0 : index
      %c0_13 = arith.constant 0 : index
      %14 = vector.load %arg5[%c0_12, %c0_13] : memref<1x64xf32, #tpu.memory_space<vmem>>, vector<1x64xf32>
      %15 = vector.broadcast %14 : vector<1x64xf32> to vector<16x64xf32>
      %16 = arith.addf %13, %15 : vector<16x64xf32>
      %cst_14 = arith.constant 5.000000e-01 : f32
      %17 = vector.broadcast %cst_14 : f32 to vector<16x64xf32>
      %18 = arith.mulf %17, %16 : vector<16x64xf32>
      %cst_15 = arith.constant 4.471500e-02 : f32
      %19 = vector.broadcast %cst_15 : f32 to vector<16x64xf32>
      %20 = arith.mulf %19, %16 : vector<16x64xf32>
      %21 = arith.mulf %20, %16 : vector<16x64xf32>
      %22 = arith.mulf %21, %16 : vector<16x64xf32>
      %23 = arith.addf %16, %22 : vector<16x64xf32>
      %cst_16 = arith.constant 0.797884583 : f32
      %24 = vector.broadcast %cst_16 : f32 to vector<16x64xf32>
      %25 = arith.mulf %24, %23 : vector<16x64xf32>
      %26 = math.tanh %25 : vector<16x64xf32>
      %cst_17 = arith.constant 1.000000e+00 : f32
      %27 = vector.broadcast %cst_17 : f32 to vector<16x64xf32>
      %28 = arith.addf %27, %26 : vector<16x64xf32>
      %29 = arith.mulf %18, %28 : vector<16x64xf32>
      %30 = arith.truncf %29 : vector<16x64xf32> to vector<16x64xbf16>
      %c0_18 = arith.constant 0 : index
      %c0_19 = arith.constant 0 : index
      %31 = vector.load %arg6[%c0_18, %c0_19] : memref<16x64xbf16, #tpu.memory_space<vmem>>, vector<16x64xbf16>
      tpu.vector_store %arg6[%c0_18, %c0_19], %30 {strides = array<i32>} : memref<16x64xbf16, #tpu.memory_space<vmem>>, vector<16x64xbf16>,
    } else {
    }
    return
  }
  func.func @transform_0(%arg0: i32, %arg1: i32, %arg2: i32) -> (i32, i32) {
    %c0_i32 = arith.constant 0 : i32
    return %arg0, %arg2 : i32, i32
  }
  func.func @transform_1(%arg0: i32, %arg1: i32, %arg2: i32) -> (i32, i32) {
    %c0_i32 = arith.constant 0 : i32
    return %arg2, %arg1 : i32, i32
  }
  func.func @transform_2(%arg0: i32, %arg1: i32, %arg2: i32) -> (i32, i32) {
    %c0_i32 = arith.constant 0 : i32
    %c0_i32_0 = arith.constant 0 : i32
    return %c0_i32, %arg1 : i32, i32
  }
  func.func @transform_3(%arg0: i32, %arg1: i32, %arg2: i32) -> (i32, i32) {
    %c0_i32 = arith.constant 0 : i32
    return %arg0, %arg1 : i32, i32
  }
}

module attributes {stable_mosaic.version = 11 : i64} {
  func.func @_matmul_res_ln_kernel(%arg0: i32, %arg1: i32, %arg2: memref<16x64xbf16, #tpu.memory_space<vmem>>, %arg3: memref<64x32xbf16, #tpu.memory_space<vmem>>, %arg4: memref<1x32xf32, #tpu.memory_space<vmem>>, %arg5: memref<16x32xf32, #tpu.memory_space<vmem>>, %arg6: memref<1x32xf32, #tpu.memory_space<vmem>>, %arg7: memref<1x32xf32, #tpu.memory_space<vmem>>, %arg8: memref<16x32xf32, #tpu.memory_space<vmem>>, %arg9: memref<16x32xf32, #tpu.memory_space<vmem>>) attributes {dimension_semantics = [#tpu.dimension_semantics<parallel>, #tpu.dimension_semantics<arbitrary>], iteration_bounds = array<i64: 1, 1>, scalar_prefetch = 0 : i64, scratch_operands = 1 : i64, tpu.core_type = #tpu.core_type<tc>, window_params = [{transform_indices = @transform_0, window_bounds = array<i64: 16, 64>}, {transform_indices = @transform_1, window_bounds = array<i64: 64, 32>}, {pipeline_mode = #tpu.pipeline_mode<synchronous>, transform_indices = @transform_2, window_bounds = array<i64: 1, 32>}, {transform_indices = @transform_3, window_bounds = array<i64: 16, 32>}, {pipeline_mode = #tpu.pipeline_mode<synchronous>, transform_indices = @transform_4, window_bounds = array<i64: 1, 32>}, {pipeline_mode = #tpu.pipeline_mode<synchronous>, transform_indices = @transform_5, window_bounds = array<i64: 1, 32>}, {transform_indices = @transform_6, window_bounds = array<i64: 16, 32>}]} {
    %c0_i32 = arith.constant 0 : i32
    %0 = arith.cmpi eq, %arg1, %c0_i32 : i32
    %1 = arith.extui %0 : i1 to i32
    %c0_i32_0 = arith.constant 0 : i32
    %2 = arith.cmpi ne, %1, %c0_i32_0 : i32
    scf.if %2 {
      %cst_10 = arith.constant 0.000000e+00 : f32
      %12 = vector.broadcast %cst_10 : f32 to vector<16x32xf32>
      %c0_11 = arith.constant 0 : index
      %c0_12 = arith.constant 0 : index
      %13 = vector.load %arg9[%c0_11, %c0_12] : memref<16x32xf32, #tpu.memory_space<vmem>>, vector<16x32xf32>
      tpu.vector_store %arg9[%c0_11, %c0_12], %12 {strides = array<i32>} : memref<16x32xf32, #tpu.memory_space<vmem>>, vector<16x32xf32>,
    } else {
    }
    %c0 = arith.constant 0 : index
    %c0_1 = arith.constant 0 : index
    %3 = vector.load %arg9[%c0, %c0_1] : memref<16x32xf32, #tpu.memory_space<vmem>>, vector<16x32xf32>
    %c0_2 = arith.constant 0 : index
    %c0_3 = arith.constant 0 : index
    %4 = vector.load %arg2[%c0_2, %c0_3] : memref<16x64xbf16, #tpu.memory_space<vmem>>, vector<16x64xbf16>
    %c0_4 = arith.constant 0 : index
    %c0_5 = arith.constant 0 : index
    %5 = vector.load %arg3[%c0_4, %c0_5] : memref<64x32xbf16, #tpu.memory_space<vmem>>, vector<64x32xbf16>
    %cst = arith.constant dense<0.000000e+00> : vector<16x32xf32>
    %6 = tpu.matmul %4, %5, %cst {dimension_numbers = #tpu.dot_dimension_numbers<[1], [0], [0], [1], [0, 0, 1, 1], [], []>} : vector<16x64xbf16>, vector<64x32xbf16>, vector<16x32xf32> -> vector<16x32xf32>
    %7 = arith.addf %3, %6 : vector<16x32xf32>
    %c0_6 = arith.constant 0 : index
    %c0_7 = arith.constant 0 : index
    %8 = vector.load %arg9[%c0_6, %c0_7] : memref<16x32xf32, #tpu.memory_space<vmem>>, vector<16x32xf32>
    tpu.vector_store %arg9[%c0_6, %c0_7], %7 {strides = array<i32>} : memref<16x32xf32, #tpu.memory_space<vmem>>, vector<16x32xf32>,
    %c0_i32_8 = arith.constant 0 : i32
    %9 = arith.cmpi eq, %arg1, %c0_i32_8 : i32
    %10 = arith.extui %9 : i1 to i32
    %c0_i32_9 = arith.constant 0 : i32
    %11 = arith.cmpi ne, %10, %c0_i32_9 : i32
    scf.if %11 {
      %c0_10 = arith.constant 0 : index
      %c0_11 = arith.constant 0 : index
      %12 = vector.load %arg9[%c0_10, %c0_11] : memref<16x32xf32, #tpu.memory_space<vmem>>, vector<16x32xf32>
      %c0_12 = arith.constant 0 : index
      %c0_13 = arith.constant 0 : index
      %13 = vector.load %arg4[%c0_12, %c0_13] : memref<1x32xf32, #tpu.memory_space<vmem>>, vector<1x32xf32>
      %14 = vector.broadcast %13 : vector<1x32xf32> to vector<16x32xf32>
      %15 = arith.addf %12, %14 : vector<16x32xf32>
      %c0_14 = arith.constant 0 : index
      %c0_15 = arith.constant 0 : index
      %16 = vector.load %arg5[%c0_14, %c0_15] : memref<16x32xf32, #tpu.memory_space<vmem>>, vector<16x32xf32>
      %17 = arith.addf %15, %16 : vector<16x32xf32>
      %cst_16 = arith.constant dense<0.000000e+00> : vector<16xf32>
      %18 = vector.multi_reduction <add>, %17, %cst_16 [1] : vector<16x32xf32> to vector<16xf32>
      %19 = vector.shape_cast %18 : vector<16xf32> to vector<16x1xf32>
      %cst_17 = arith.constant 3.200000e+01 : f32
      %20 = vector.broadcast %cst_17 : f32 to vector<16x1xf32>
      %21 = arith.divf %19, %20 : vector<16x1xf32>
      %22 = vector.broadcast %21 : vector<16x1xf32> to vector<16x32xf32>
      %23 = arith.subf %17, %22 : vector<16x32xf32>
      %24 = arith.mulf %23, %23 : vector<16x32xf32>
      %cst_18 = arith.constant dense<0.000000e+00> : vector<16xf32>
      %25 = vector.multi_reduction <add>, %24, %cst_18 [1] : vector<16x32xf32> to vector<16xf32>
      %26 = vector.shape_cast %25 : vector<16xf32> to vector<16x1xf32>
      %cst_19 = arith.constant 3.200000e+01 : f32
      %27 = vector.broadcast %cst_19 : f32 to vector<16x1xf32>
      %28 = arith.divf %26, %27 : vector<16x1xf32>
      %cst_20 = arith.constant 9.99999996E-13 : f32
      %29 = vector.broadcast %cst_20 : f32 to vector<16x1xf32>
      %30 = arith.addf %28, %29 : vector<16x1xf32>
      %31 = math.rsqrt %30 : vector<16x1xf32>
      %32 = vector.broadcast %31 : vector<16x1xf32> to vector<16x32xf32>
      %33 = arith.mulf %23, %32 : vector<16x32xf32>
      %c0_21 = arith.constant 0 : index
      %c0_22 = arith.constant 0 : index
      %34 = vector.load %arg6[%c0_21, %c0_22] : memref<1x32xf32, #tpu.memory_space<vmem>>, vector<1x32xf32>
      %35 = vector.broadcast %34 : vector<1x32xf32> to vector<16x32xf32>
      %36 = arith.mulf %33, %35 : vector<16x32xf32>
      %c0_23 = arith.constant 0 : index
      %c0_24 = arith.constant 0 : index
      %37 = vector.load %arg7[%c0_23, %c0_24] : memref<1x32xf32, #tpu.memory_space<vmem>>, vector<1x32xf32>
      %38 = vector.broadcast %37 : vector<1x32xf32> to vector<16x32xf32>
      %39 = arith.addf %36, %38 : vector<16x32xf32>
      %c0_25 = arith.constant 0 : index
      %c0_26 = arith.constant 0 : index
      %40 = vector.load %arg8[%c0_25, %c0_26] : memref<16x32xf32, #tpu.memory_space<vmem>>, vector<16x32xf32>
      tpu.vector_store %arg8[%c0_25, %c0_26], %39 {strides = array<i32>} : memref<16x32xf32, #tpu.memory_space<vmem>>, vector<16x32xf32>,
    } else {
    }
    return
  }
  func.func @transform_0(%arg0: i32, %arg1: i32) -> (i32, i32) {
    %c0_i32 = arith.constant 0 : i32
    return %arg0, %arg1 : i32, i32
  }
  func.func @transform_1(%arg0: i32, %arg1: i32) -> (i32, i32) {
    %c0_i32 = arith.constant 0 : i32
    %c0_i32_0 = arith.constant 0 : i32
    return %arg1, %c0_i32 : i32, i32
  }
  func.func @transform_2(%arg0: i32, %arg1: i32) -> (i32, i32) {
    %c0_i32 = arith.constant 0 : i32
    %c0_i32_0 = arith.constant 0 : i32
    %c0_i32_1 = arith.constant 0 : i32
    return %c0_i32, %c0_i32_0 : i32, i32
  }
  func.func @transform_3(%arg0: i32, %arg1: i32) -> (i32, i32) {
    %c0_i32 = arith.constant 0 : i32
    %c0_i32_0 = arith.constant 0 : i32
    return %arg0, %c0_i32 : i32, i32
  }
  func.func @transform_4(%arg0: i32, %arg1: i32) -> (i32, i32) {
    %c0_i32 = arith.constant 0 : i32
    %c0_i32_0 = arith.constant 0 : i32
    %c0_i32_1 = arith.constant 0 : i32
    return %c0_i32, %c0_i32_0 : i32, i32
  }
  func.func @transform_5(%arg0: i32, %arg1: i32) -> (i32, i32) {
    %c0_i32 = arith.constant 0 : i32
    %c0_i32_0 = arith.constant 0 : i32
    %c0_i32_1 = arith.constant 0 : i32
    return %c0_i32, %c0_i32_0 : i32, i32
  }
  func.func @transform_6(%arg0: i32, %arg1: i32) -> (i32, i32) {
    %c0_i32 = arith.constant 0 : i32
    %c0_i32_0 = arith.constant 0 : i32
    return %arg0, %c0_i32 : i32, i32
  }
}

module attributes {stable_mosaic.version = 11 : i64} {
  func.func @_matmul_res_ln_kernel(%arg0: i32, %arg1: i32, %arg2: memref<16x64xbf16, #tpu.memory_space<vmem>>, %arg3: memref<64x32xbf16, #tpu.memory_space<vmem>>, %arg4: memref<1x32xf32, #tpu.memory_space<vmem>>, %arg5: memref<16x32xf32, #tpu.memory_space<vmem>>, %arg6: memref<1x32xf32, #tpu.memory_space<vmem>>, %arg7: memref<1x32xf32, #tpu.memory_space<vmem>>, %arg8: memref<16x32xf32, #tpu.memory_space<vmem>>, %arg9: memref<16x32xf32, #tpu.memory_space<vmem>>, %arg10: memref<16x32xf32, #tpu.memory_space<vmem>>) attributes {dimension_semantics = [#tpu.dimension_semantics<parallel>, #tpu.dimension_semantics<arbitrary>], iteration_bounds = array<i64: 1, 1>, scalar_prefetch = 0 : i64, scratch_operands = 1 : i64, tpu.core_type = #tpu.core_type<tc>, window_params = [{transform_indices = @transform_0, window_bounds = array<i64: 16, 64>}, {transform_indices = @transform_1, window_bounds = array<i64: 64, 32>}, {pipeline_mode = #tpu.pipeline_mode<synchronous>, transform_indices = @transform_2, window_bounds = array<i64: 1, 32>}, {transform_indices = @transform_3, window_bounds = array<i64: 16, 32>}, {pipeline_mode = #tpu.pipeline_mode<synchronous>, transform_indices = @transform_4, window_bounds = array<i64: 1, 32>}, {pipeline_mode = #tpu.pipeline_mode<synchronous>, transform_indices = @transform_5, window_bounds = array<i64: 1, 32>}, {transform_indices = @transform_6, window_bounds = array<i64: 16, 32>}, {transform_indices = @transform_7, window_bounds = array<i64: 16, 32>}]} {
    %c0_i32 = arith.constant 0 : i32
    %0 = arith.cmpi eq, %arg1, %c0_i32 : i32
    %1 = arith.extui %0 : i1 to i32
    %c0_i32_0 = arith.constant 0 : i32
    %2 = arith.cmpi ne, %1, %c0_i32_0 : i32
    scf.if %2 {
      %cst_10 = arith.constant 0.000000e+00 : f32
      %12 = vector.broadcast %cst_10 : f32 to vector<16x32xf32>
      %c0_11 = arith.constant 0 : index
      %c0_12 = arith.constant 0 : index
      %13 = vector.load %arg10[%c0_11, %c0_12] : memref<16x32xf32, #tpu.memory_space<vmem>>, vector<16x32xf32>
      tpu.vector_store %arg10[%c0_11, %c0_12], %12 {strides = array<i32>} : memref<16x32xf32, #tpu.memory_space<vmem>>, vector<16x32xf32>,
    } else {
    }
    %c0 = arith.constant 0 : index
    %c0_1 = arith.constant 0 : index
    %3 = vector.load %arg10[%c0, %c0_1] : memref<16x32xf32, #tpu.memory_space<vmem>>, vector<16x32xf32>
    %c0_2 = arith.constant 0 : index
    %c0_3 = arith.constant 0 : index
    %4 = vector.load %arg2[%c0_2, %c0_3] : memref<16x64xbf16, #tpu.memory_space<vmem>>, vector<16x64xbf16>
    %c0_4 = arith.constant 0 : index
    %c0_5 = arith.constant 0 : index
    %5 = vector.load %arg3[%c0_4, %c0_5] : memref<64x32xbf16, #tpu.memory_space<vmem>>, vector<64x32xbf16>
    %cst = arith.constant dense<0.000000e+00> : vector<16x32xf32>
    %6 = tpu.matmul %4, %5, %cst {dimension_numbers = #tpu.dot_dimension_numbers<[1], [0], [0], [1], [0, 0, 1, 1], [], []>} : vector<16x64xbf16>, vector<64x32xbf16>, vector<16x32xf32> -> vector<16x32xf32>
    %7 = arith.addf %3, %6 : vector<16x32xf32>
    %c0_6 = arith.constant 0 : index
    %c0_7 = arith.constant 0 : index
    %8 = vector.load %arg10[%c0_6, %c0_7] : memref<16x32xf32, #tpu.memory_space<vmem>>, vector<16x32xf32>
    tpu.vector_store %arg10[%c0_6, %c0_7], %7 {strides = array<i32>} : memref<16x32xf32, #tpu.memory_space<vmem>>, vector<16x32xf32>,
    %c0_i32_8 = arith.constant 0 : i32
    %9 = arith.cmpi eq, %arg1, %c0_i32_8 : i32
    %10 = arith.extui %9 : i1 to i32
    %c0_i32_9 = arith.constant 0 : i32
    %11 = arith.cmpi ne, %10, %c0_i32_9 : i32
    scf.if %11 {
      %c0_10 = arith.constant 0 : index
      %c0_11 = arith.constant 0 : index
      %12 = vector.load %arg10[%c0_10, %c0_11] : memref<16x32xf32, #tpu.memory_space<vmem>>, vector<16x32xf32>
      %c0_12 = arith.constant 0 : index
      %c0_13 = arith.constant 0 : index
      %13 = vector.load %arg4[%c0_12, %c0_13] : memref<1x32xf32, #tpu.memory_space<vmem>>, vector<1x32xf32>
      %14 = vector.broadcast %13 : vector<1x32xf32> to vector<16x32xf32>
      %15 = arith.addf %12, %14 : vector<16x32xf32>
      %c0_14 = arith.constant 0 : index
      %c0_15 = arith.constant 0 : index
      %16 = vector.load %arg5[%c0_14, %c0_15] : memref<16x32xf32, #tpu.memory_space<vmem>>, vector<16x32xf32>
      %17 = arith.addf %15, %16 : vector<16x32xf32>
      %cst_16 = arith.constant dense<0.000000e+00> : vector<16xf32>
      %18 = vector.multi_reduction <add>, %17, %cst_16 [1] : vector<16x32xf32> to vector<16xf32>
      %19 = vector.shape_cast %18 : vector<16xf32> to vector<16x1xf32>
      %cst_17 = arith.constant 3.200000e+01 : f32
      %20 = vector.broadcast %cst_17 : f32 to vector<16x1xf32>
      %21 = arith.divf %19, %20 : vector<16x1xf32>
      %22 = vector.broadcast %21 : vector<16x1xf32> to vector<16x32xf32>
      %23 = arith.subf %17, %22 : vector<16x32xf32>
      %24 = arith.mulf %23, %23 : vector<16x32xf32>
      %cst_18 = arith.constant dense<0.000000e+00> : vector<16xf32>
      %25 = vector.multi_reduction <add>, %24, %cst_18 [1] : vector<16x32xf32> to vector<16xf32>
      %26 = vector.shape_cast %25 : vector<16xf32> to vector<16x1xf32>
      %cst_19 = arith.constant 3.200000e+01 : f32
      %27 = vector.broadcast %cst_19 : f32 to vector<16x1xf32>
      %28 = arith.divf %26, %27 : vector<16x1xf32>
      %cst_20 = arith.constant 9.99999996E-13 : f32
      %29 = vector.broadcast %cst_20 : f32 to vector<16x1xf32>
      %30 = arith.addf %28, %29 : vector<16x1xf32>
      %31 = math.rsqrt %30 : vector<16x1xf32>
      %32 = vector.broadcast %31 : vector<16x1xf32> to vector<16x32xf32>
      %33 = arith.mulf %23, %32 : vector<16x32xf32>
      %c0_21 = arith.constant 0 : index
      %c0_22 = arith.constant 0 : index
      %34 = vector.load %arg6[%c0_21, %c0_22] : memref<1x32xf32, #tpu.memory_space<vmem>>, vector<1x32xf32>
      %35 = vector.broadcast %34 : vector<1x32xf32> to vector<16x32xf32>
      %36 = arith.mulf %33, %35 : vector<16x32xf32>
      %c0_23 = arith.constant 0 : index
      %c0_24 = arith.constant 0 : index
      %37 = vector.load %arg7[%c0_23, %c0_24] : memref<1x32xf32, #tpu.memory_space<vmem>>, vector<1x32xf32>
      %38 = vector.broadcast %37 : vector<1x32xf32> to vector<16x32xf32>
      %39 = arith.addf %36, %38 : vector<16x32xf32>
      %c0_25 = arith.constant 0 : index
      %c0_26 = arith.constant 0 : index
      %40 = vector.load %arg8[%c0_25, %c0_26] : memref<16x32xf32, #tpu.memory_space<vmem>>, vector<16x32xf32>
      %41 = arith.addf %39, %40 : vector<16x32xf32>
      %c0_27 = arith.constant 0 : index
      %c0_28 = arith.constant 0 : index
      %42 = vector.load %arg9[%c0_27, %c0_28] : memref<16x32xf32, #tpu.memory_space<vmem>>, vector<16x32xf32>
      tpu.vector_store %arg9[%c0_27, %c0_28], %41 {strides = array<i32>} : memref<16x32xf32, #tpu.memory_space<vmem>>, vector<16x32xf32>,
    } else {
    }
    return
  }
  func.func @transform_0(%arg0: i32, %arg1: i32) -> (i32, i32) {
    %c0_i32 = arith.constant 0 : i32
    return %arg0, %arg1 : i32, i32
  }
  func.func @transform_1(%arg0: i32, %arg1: i32) -> (i32, i32) {
    %c0_i32 = arith.constant 0 : i32
    %c0_i32_0 = arith.constant 0 : i32
    return %arg1, %c0_i32 : i32, i32
  }
  func.func @transform_2(%arg0: i32, %arg1: i32) -> (i32, i32) {
    %c0_i32 = arith.constant 0 : i32
    %c0_i32_0 = arith.constant 0 : i32
    %c0_i32_1 = arith.constant 0 : i32
    return %c0_i32, %c0_i32_0 : i32, i32
  }
  func.func @transform_3(%arg0: i32, %arg1: i32) -> (i32, i32) {
    %c0_i32 = arith.constant 0 : i32
    %c0_i32_0 = arith.constant 0 : i32
    return %arg0, %c0_i32 : i32, i32
  }
  func.func @transform_4(%arg0: i32, %arg1: i32) -> (i32, i32) {
    %c0_i32 = arith.constant 0 : i32
    %c0_i32_0 = arith.constant 0 : i32
    %c0_i32_1 = arith.constant 0 : i32
    return %c0_i32, %c0_i32_0 : i32, i32
  }
  func.func @transform_5(%arg0: i32, %arg1: i32) -> (i32, i32) {
    %c0_i32 = arith.constant 0 : i32
    %c0_i32_0 = arith.constant 0 : i32
    %c0_i32_1 = arith.constant 0 : i32
    return %c0_i32, %c0_i32_0 : i32, i32
  }
  func.func @transform_6(%arg0: i32, %arg1: i32) -> (i32, i32) {
    %c0_i32 = arith.constant 0 : i32
    %c0_i32_0 = arith.constant 0 : i32
    return %arg0, %c0_i32 : i32, i32
  }
  func.func @transform_7(%arg0: i32, %arg1: i32) -> (i32, i32) {
    %c0_i32 = arith.constant 0 : i32
    %c0_i32_0 = arith.constant 0 : i32
    return %arg0, %c0_i32 : i32, i32
  }
}

</mosaic_0001>

<bundles_post_ra>
// kernel: bert_mid_layer_forward.11
= control target key start
LH: loop header
LB: loop body
LE: loop exit
PB: predicated region body
PF: predicated region fallthrough
CT: control target
= control target key end

     0   :  { %8 = vsyncpa [#allocation3], 0  ;;  %s319_s0 = inlined_call_operand.hbm [shape: f32[16,32], index: 0, kind: input, shape index: {}]   ;;  %s320_s1 = inlined_call_operand.hbm [shape: f32[1,32], index: 1, kind: input, shape index: {}]   ;;  %s321_s2 = inlined_call_operand.hbm [shape: f32[1,32], index: 2, kind: input, shape index: {}]   ;;  %s322_s3 = inlined_call_operand.hbm [shape: f32[16,32], index: 3, kind: output, shape index: {}]  }
   0x1   :  { %9 = vsyncpa [#allocation6], 0 }
   0x2   :  { %10 = vsyncpa [#allocation4], 0  ;;  %s226_s12 = smov [#allocation5]   ;;  %s227_s14 = smov [#allocation2]  }
   0x3   :  { %s29_s13 = sshll.u32 %s226_s12, 4  ;;  %s16_s15 = sshll.u32 %s227_s14, 4  ;;  %s30_s13 = int_to_ptr.vmem [resolvable:$true] %s29_s13  ;;  %s252_s15 = int_to_ptr.vmem [resolvable:$true] %s16_s15 }
   0x4   :  { %s132_s18 = scalar_lea.hbm %s320_s1, 16 }
   0x5   :  { %p133_p0 = scmp.ne.s32.totalorder %s320_s1, %s132_s18  ;;  %p136_p1 = scmp.lt.u32.totalorder %s132_s18, %s320_s1 }
   0x7   :  { %p138_p2 = pnand %p136_p1, %p133_p0 }
   0x9   :  { %141 = shalt.err (!%p138_p2)
}
   0xa   :  { %s142_s23 = scalar_lea.vmem %s30_s13, 16  ;;  %s146_s24 = scalar_lea.vmem %s30_s13, 32 }
   0xb   :  { %p143_p3 = scmp.ne.s32.totalorder %s30_s13, %s142_s23  ;;  %p147_p4 = scmp.lt.s32.totalorder %s30_s13, %s30_s13 }
   0xc   :  { %p148_p5 = scmp.lt.s32.totalorder %s146_s24, %s142_s23 }
   0xe   :  { %p149_p6 = por %p148_p5, %p147_p4 }
  0x10   :  { %p150_p7 = pnand %p149_p6, %p143_p3 }
  0x12   :  { %153 = shalt.err (!%p150_p7)
}
  0x13   :  { %32 = dma.hbm_to_vmem [thread:$0]  %s320_s1, 16, %s30_s13, [#allocation6]  }
  0x14   :  { %s154_s29 = scalar_lea.hbm %s319_s0, 256 }
  0x15   :  { %p155_p8 = scmp.ne.s32.totalorder %s319_s0, %s154_s29  ;;  %p158_p9 = scmp.lt.u32.totalorder %s154_s29, %s319_s0 }
  0x17   :  { %p160_p10 = pnand %p158_p9, %p155_p8 }
  0x19   :  { %163 = shalt.err (!%p160_p10)
}
  0x1a   :  { %s164_s7 = scalar_lea.vmem %s252_s15, 256  ;;  %p169_p12 = scmp.lt.s32.totalorder %s252_s15, %s252_s15 }
  0x1b   :  { %p165_p11 = scmp.ne.s32.totalorder %s252_s15, %s164_s7  ;;  %p170_p13 = scmp.lt.s32.totalorder %s164_s7, %s164_s7 }
  0x1d   :  { %p171_p0 = por %p170_p13, %p169_p12 }
  0x1f   :  { %p172_p1 = pnand %p171_p0, %p165_p11 }
  0x21   :  { %175 = shalt.err (!%p172_p1)
}
  0x22   :  { %s228_s1 = smov 128   ;;  %s229_s8 = smov 8  }
  0x23   :  { %22 = dma.hbm_to_vmem [thread:$0]  %s319_s0, 256, %s252_s15, [#allocation3], %s228_s1, %s228_s1, %s229_s8  }
  0x24   :  { %s230_s11 = smov [#allocation7]   ;;  %s176_s16 = scalar_lea.hbm %s321_s2, 16 }
  0x25   :  { %s39_s12 = sshll.u32 %s230_s11, 4  ;;  %p177_p2 = scmp.ne.s32.totalorder %s321_s2, %s176_s16  ;;  %s40_s12 = int_to_ptr.vmem [resolvable:$true] %s39_s12 }
  0x26   :  { %p180_p3 = scmp.lt.u32.totalorder %s176_s16, %s321_s2 }
  0x28   :  { %p182_p4 = pnand %p180_p3, %p177_p2 }
  0x2a   :  { %185 = shalt.err (!%p182_p4)
}
  0x2b   :  { %s186_s21 = scalar_lea.vmem %s40_s12, 16  ;;  %s190_s0 = scalar_lea.vmem %s40_s12, 32 }
  0x2c   :  { %p187_p5 = scmp.ne.s32.totalorder %s40_s12, %s186_s21  ;;  %p191_p6 = scmp.lt.s32.totalorder %s40_s12, %s40_s12 }
  0x2d   :  { %p192_p7 = scmp.lt.s32.totalorder %s190_s0, %s186_s21 }
  0x2f   :  { %p193_p8 = por %p192_p7, %p191_p6 }
  0x31   :  { %p194_p9 = pnand %p193_p8, %p187_p5 }
  0x33   :  { %197 = shalt.err (!%p194_p9)
}
  0x34   :  { %42 = dma.hbm_to_vmem [thread:$0]  %s321_s2, 16, %s40_s12, [#allocation6]  }
  0x35   :  { %220 = dma.done.wait [#allocation3], 256  }
  0x36   :  { %221 = vsyncadd [#allocation3], 4294967040 }
  0x37   :  { %222 = dma.done.wait [#allocation6], 32  }
  0x38   :  { %223 = vsyncadd [#allocation6], 4294967264  ;;  %vm54_vm0 = vcmask 261120   ;;  %v52_v0 = vld [vmem:[#allocation2] sm:$0xff]  ;;  %v53_v1 = vld [vmem:[#allocation2 + $0x8] sm:$0xff]  ;;  %s231_s2 = smov [#allocation8]  }
  0x39   :  { %v55_v2 = vsel %vm54_vm0, %v52_v0, 0.0  ;;  %v58_v3 = vsel %vm54_vm0, %v53_v1, 0.0  ;;  %v120_v21 = vld [vmem:[#allocation5] ss:$0 sm:$0xff]  ;;  %v121_v23 = vld [vmem:[#allocation7] ss:$0 sm:$0xff] }
  0x3a   :  { %56 = vadd.xlane.f32.xlu0 %v55_v2  ;;  %s107_s23 = sshll.u32 %s231_s2, 4  ;;  %s108_s23 = int_to_ptr.vmem [resolvable:$true] %s107_s23 }
  0x3b   :  { %s198_s24 = scalar_lea.vmem %s108_s23, 256  ;;  %p203_p11 = scmp.lt.s32.totalorder %s108_s23, %s108_s23 }
  0x3c   :  { %p199_p10 = scmp.ne.s32.totalorder %s108_s23, %s198_s24  ;;  %p204_p12 = scmp.lt.s32.totalorder %s198_s24, %s198_s24 }
  0x3e   :  { %59 = vadd.xlane.f32.xlu0 %v58_v3  ;;  %p205_p13 = por %p204_p12, %p203_p11 }
  0x40   :  { %p206_p0 = pnand %p205_p13, %p199_p10 }
  0xc7   :  { %v57_v4 = vpop.xlane.xlu0 %56 }
  0xc8   :  { %v62_v5 = vmul.f32 0.03125, %v57_v4 }
  0xca   :  { %v64_v6 = vsub.f32 %v52_v0, %v62_v5 }
  0xcb   :  { %v60_v7 = vpop.xlane.xlu0 %59 }
  0xcc   :  { %v63_v8 = vmul.f32 0.03125, %v60_v7  ;;  %v66_v9 = vmul.f32 %v64_v6, %v64_v6 }
  0xce   :  { %v65_v10 = vsub.f32 %v53_v1, %v63_v8  ;;  %v68_v11 = vsel %vm54_vm0, %v66_v9, 0.0 }
  0xcf   :  { %69 = vadd.xlane.f32.xlu1 %v68_v11 }
  0xd0   :  { %v67_v12 = vmul.f32 %v65_v10, %v65_v10 }
  0xd2   :  { %v71_v13 = vsel %vm54_vm0, %v67_v12, 0.0 }
  0xd3   :  { %72 = vadd.xlane.f32.xlu1 %v71_v13 }
 0x15c   :  { %v70_v14 = vpop.xlane.xlu1 %69 }
 0x15d   :  { %v74_v15 = vmul.f32 0.03125, %v70_v14 }
 0x15f   :  { %v76_v16 = vadd.f32 1e-12, %v74_v15 }
 0x160   :  { %v73_v17 = vpop.xlane.xlu1 %72 }
 0x161   :  { %128 = vrsqrt.f32 %v76_v16  ;;  %v75_v18 = vmul.f32 0.03125, %v73_v17 }
 0x163   :  { %v77_v19 = vadd.f32 1e-12, %v75_v18 }
 0x165   :  { %130 = vrsqrt.f32 %v77_v19 }
 0x16b   :  { %v129_v20 = vpop.eup %128 }
 0x16c   :  { %v80_v22 = vmul.f32 %v129_v20, %v64_v6 }
 0x16e   :  { %v89_v24 = vmul.f32 %v120_v21, %v80_v22 }
 0x16f   :  { %v131_v25 = vpop.eup %130 }
 0x170   :  { %v81_v26 = vmul.f32 %v131_v25, %v65_v10  ;;  %v98_v27 = vadd.f32 %v121_v23, %v89_v24 }
 0x172   :  { %v90_v28 = vmul.f32 %v120_v21, %v81_v26  ;;  %100 = vst.msk [vmem:[#allocation8] sm:$0xff] %vm54_vm0, %v98_v27 }
 0x174   :  { %v99_v29 = vadd.f32 %v121_v23, %v90_v28 }
 0x176   :  { %101 = vst.msk [vmem:[#allocation8 + $0x8] sm:$0xff] %vm54_vm0, %v99_v29 }
 0x177   :  { %209 = shalt.err (!%p206_p0)
}
 0x178   :  { %s210_s27 = scalar_lea.hbm %s322_s3, 256 }
 0x179   :  { %p211_p1 = scmp.ne.s32.totalorder %s322_s3, %s210_s27  ;;  %p214_p2 = scmp.lt.u32.totalorder %s210_s27, %s322_s3 }
 0x17b   :  { %p216_p3 = pnand %p214_p2, %p211_p1 }
 0x17d   :  { %219 = shalt.err (!%p216_p3)
}
 0x17e   :  { %113 = dma.vmem_to_hbm [thread:$0]  %s108_s23, 256, %s322_s3, [#allocation4], %s228_s1, %s228_s1, %s229_s8  }
 0x17f   :  { %224 = dma.done.wait [#allocation4], 256  }
 0x180   :  { %225 = vsyncadd [#allocation4], 4294967040 }
 0x181   :  { %117 = vsyncpa [#allocation3], 1 }
 0x182   :  { %118 = vsyncpa [#allocation6], 1 }
 0x183   :  { %119 = vsyncpa [#allocation4], 1 }

// kernel: bert_mid_layer_forward.12
= control target key start
LH: loop header
LB: loop body
LE: loop exit
PB: predicated region body
PF: predicated region fallthrough
CT: control target
= control target key end

     0   :  { %8 = vsyncpa [#allocation4], 0  ;;  %s389_s0 = inlined_call_operand.hbm [shape: f32[16,32], index: 0, kind: input, shape index: {}]   ;;  %s390_s1 = inlined_call_operand.hbm [shape: bf16[32,96], index: 1, kind: input, shape index: {}]   ;;  %s391_s2 = inlined_call_operand.hbm [shape: f32[1,96], index: 2, kind: input, shape index: {}]   ;;  %s392_s3 = inlined_call_operand.hbm [shape: bf16[16,96], index: 3, kind: output, shape index: {}]  }
   0x1   :  { %9 = vsyncpa [#allocation7], 0 }
   0x2   :  { %10 = vsyncpa [#allocation5], 0  ;;  %s301_s12 = smov [#allocation6]   ;;  %s207_s16 = scalar_lea.hbm %s390_s1, 256 }
   0x3   :  { %s28_s13 = sshll.u32 %s301_s12, 4  ;;  %p208_p0 = scmp.ne.s32.totalorder %s390_s1, %s207_s16  ;;  %s29_s13 = int_to_ptr.vmem [resolvable:$true] %s28_s13 }
   0x4   :  { %p211_p1 = scmp.lt.u32.totalorder %s207_s16, %s390_s1 }
   0x6   :  { %p213_p2 = pnand %p211_p1, %p208_p0 }
   0x8   :  { %216 = shalt.err (!%p213_p2)
}
   0x9   :  { %s217_s21 = scalar_lea.vmem %s29_s13, 256  ;;  %p222_p4 = scmp.lt.s32.totalorder %s29_s13, %s29_s13 }
   0xa   :  { %p218_p3 = scmp.ne.s32.totalorder %s29_s13, %s217_s21  ;;  %p223_p5 = scmp.lt.s32.totalorder %s217_s21, %s217_s21 }
   0xc   :  { %p224_p6 = por %p223_p5, %p222_p4 }
   0xe   :  { %p225_p7 = pnand %p224_p6, %p218_p3 }
  0x10   :  { %228 = shalt.err (!%p225_p7)
}
  0x11   :  { %s302_s22 = smov 64   ;;  %s303_s23 = smov 4  }
  0x12   :  { %34 = dma.hbm_to_vmem [thread:$0]  %s390_s1, 256, %s29_s13, [#allocation7], %s302_s22, %s302_s22, %s303_s23  }
  0x13   :  { %s304_s26 = smov [#allocation3]   ;;  %s229_s30 = scalar_lea.hbm %s389_s0, 256 }
  0x14   :  { %s16_s27 = sshll.u32 %s304_s26, 4  ;;  %p230_p8 = scmp.ne.s32.totalorder %s389_s0, %s229_s30  ;;  %s17_s27 = int_to_ptr.vmem [resolvable:$true] %s16_s27 }
  0x15   :  { %p233_p9 = scmp.lt.u32.totalorder %s229_s30, %s389_s0 }
  0x17   :  { %p235_p10 = pnand %p233_p9, %p230_p8 }
  0x19   :  { %238 = shalt.err (!%p235_p10)
}
  0x1a   :  { %s239_s8 = scalar_lea.vmem %s17_s27, 256  ;;  %p244_p12 = scmp.lt.s32.totalorder %s17_s27, %s17_s27 }
  0x1b   :  { %p240_p11 = scmp.ne.s32.totalorder %s17_s27, %s239_s8  ;;  %p245_p13 = scmp.lt.s32.totalorder %s239_s8, %s239_s8 }
  0x1d   :  { %p246_p0 = por %p245_p13, %p244_p12 }
  0x1f   :  { %p247_p1 = pnand %p246_p0, %p240_p11 }
  0x21   :  { %250 = shalt.err (!%p247_p1)
}
  0x22   :  { %s305_s1 = smov 128   ;;  %s306_s9 = smov 8  }
  0x23   :  { %22 = dma.hbm_to_vmem [thread:$0]  %s389_s0, 256, %s17_s27, [#allocation4], %s305_s1, %s305_s1, %s306_s9  }
  0x24   :  { %s307_s12 = smov [#allocation8]   ;;  %s251_s16 = scalar_lea.hbm %s391_s2, 16 }
  0x25   :  { %s41_s13 = sshll.u32 %s307_s12, 4  ;;  %p252_p2 = scmp.ne.s32.totalorder %s391_s2, %s251_s16  ;;  %s42_s13 = int_to_ptr.vmem [resolvable:$true] %s41_s13 }
  0x26   :  { %p255_p3 = scmp.lt.u32.totalorder %s251_s16, %s391_s2 }
  0x28   :  { %p257_p4 = pnand %p255_p3, %p252_p2 }
  0x2a   :  { %260 = shalt.err (!%p257_p4)
}
  0x2b   :  { %s261_s21 = scalar_lea.vmem %s42_s13, 16  ;;  %s265_s0 = scalar_lea.vmem %s42_s13, 32 }
  0x2c   :  { %p262_p5 = scmp.ne.s32.totalorder %s42_s13, %s261_s21  ;;  %p266_p6 = scmp.lt.s32.totalorder %s42_s13, %s42_s13 }
  0x2d   :  { %p267_p7 = scmp.lt.s32.totalorder %s265_s0, %s261_s21 }
  0x2f   :  { %p268_p8 = por %p267_p7, %p266_p6 }
  0x31   :  { %p269_p9 = pnand %p268_p8, %p262_p5 }
  0x33   :  { %272 = shalt.err (!%p269_p9)
}
  0x34   :  { %44 = dma.hbm_to_vmem [thread:$0]  %s391_s2, 16, %s42_s13, [#allocation7]  }
  0x35   :  { %295 = dma.done.wait [#allocation4], 256  }
  0x36   :  { %296 = vsyncadd [#allocation4], 4294967040 }
  0x37   :  { %297 = dma.done.wait [#allocation7], 272  }
  0x38   :  { %298 = vsyncadd [#allocation7], 4294967024  ;;  %vm59_vm0 = vcmask 785408   ;;  %v308_v0 = vmov 0.0   ;;  %vm309_vm1 = vmmov 0   ;;  %v205_v1 = vld [vmem:[#allocation6] sm:$0xff]  }
  0x39   :  { %60 = vst.msk [vmem:[#allocation2] sm:$0xff] %vm59_vm0, %v308_v0  ;;  %61 = vst.msk [vmem:[#allocation2 + $0x8] sm:$0xff] %vm59_vm0, %v308_v0  ;;  %187 = vmatprep.subr.bf16.mxu0 %v308_v0  ;;  %191 = vmatprep.mubr.msk.bf16.mxu0 %vm309_vm1, %v308_v0  ;;  %v206_v2 = vld [vmem:[#allocation6 + $0x8] sm:$0xff]   ;;  %v64_v3 = vld [vmem:[#allocation3] sm:$0xff]  ;;  %vm83_vm2 = vcmask 261120   ;;  %vm155_vm3 = vcmask 781312  }
  0x3a   :  { %188 = vmatpush3.bf16.msra.mxu0 %v205_v1  ;;  %v65_v4 = vld [vmem:[#allocation3 + $0x8] sm:$0xff]  ;;  %v179_v14 = vld [vmem:[#allocation8] ss:$0 sm:$0xff]  ;;  %s310_s2 = smov [#allocation9]  }
  0x3b   :  { %189 = vmatprep.subr.bf16.mxu0 %v308_v0  ;;  %v66_v5 = vpack.c.bf16 %v65_v4, %v64_v3  ;;  %s163_s26 = sshll.u32 %s310_s2, 4  ;;  %s164_s26 = int_to_ptr.vmem [resolvable:$true] %s163_s26 }
  0x3c   :  { %s273_s27 = scalar_lea.vmem %s164_s26, 128  ;;  %p278_p11 = scmp.lt.s32.totalorder %s164_s26, %s164_s26 }
  0x3d   :  { %p274_p10 = scmp.ne.s32.totalorder %s164_s26, %s273_s27  ;;  %p279_p12 = scmp.lt.s32.totalorder %s273_s27, %s273_s27 }
  0x3e   :  { %190 = vmatpush3.bf16.msra.mxu0 %v206_v2 }
  0x3f   :  { %p280_p13 = por %p279_p12, %p278_p11 }
  0x40   :  { %v62_v6 = vld [vmem:[#allocation2] sm:$0xff]  ;;  %v63_v8 = vld [vmem:[#allocation2 + $0x8] sm:$0xff] }
  0x41   :  { %192 = vmatmul.mubr.msk.bf16.vlgmr.msra.gmra.mrb[0].mxu0 %vm83_vm2, %v66_v5  ;;  %p281_p0 = pnand %p280_p13, %p274_p10 }
 0x114   :  { %v121_v7 = vpop.f32.mrb[0].mxu0 }
 0x115   :  { %v128_v9 = vadd.f32 %v121_v7, %v62_v6  ;;  %v193_v10 = vpop.f32.mrb[1].mxu0 }
 0x116   :  { %v124_v11 = vpop.f32.mrb[2].mxu0 }
 0x117   :  { %131 = vst.msk [vmem:[#allocation2] sm:$0xff] %vm59_vm0, %v128_v9  ;;  %v129_v12 = vadd.f32 %v124_v11, %v63_v8  ;;  %v194_v13 = vpop.f32.mrb[3].mxu0 }
 0x119   :  { %132 = vst.msk [vmem:[#allocation2 + $0x8] sm:$0xff] %vm59_vm0, %v129_v12 }
 0x11e   :  { %v136_v15 = vld [vmem:[#allocation2] sm:$0xff] }
 0x11f   :  { %v145_v16 = vadd.f32 %v179_v14, %v136_v15 }
 0x120   :  { %v137_v17 = vld [vmem:[#allocation2 + $0x8] sm:$0xff] }
 0x121   :  { %v146_v18 = vadd.f32 %v179_v14, %v137_v17  ;;  %v182_v19 = vpack.c.bf16 %v145_v16, %v145_v16 }
 0x123   :  { %v183_v20 = vpack.c.bf16 %v146_v18, %v146_v18  ;;  %156 = vst.msk [vmem:[#allocation9] sm:$0xf] %vm155_vm3, %v182_v19 }
 0x125   :  { %157 = vst.msk [vmem:[#allocation9 + $0x4] sm:$0xf] %vm155_vm3, %v183_v20 }
 0x126   :  { %284 = shalt.err (!%p281_p0)
}
 0x127   :  { %s285_s30 = scalar_lea.hbm %s392_s3, 128 }
 0x128   :  { %p286_p1 = scmp.ne.s32.totalorder %s392_s3, %s285_s30  ;;  %p289_p2 = scmp.lt.u32.totalorder %s285_s30, %s392_s3 }
 0x12a   :  { %p291_p3 = pnand %p289_p2, %p286_p1 }
 0x12c   :  { %294 = shalt.err (!%p291_p3)
}
 0x12d   :  { %169 = dma.vmem_to_hbm [thread:$0]  %s164_s26, 128, %s392_s3, [#allocation5], %s302_s22, %s302_s22, %s303_s23  }
 0x12e   :  { %299 = dma.done.wait [#allocation5], 128  }
 0x12f   :  { %300 = vsyncadd [#allocation5], 4294967168 }
 0x130   :  { %173 = vsyncpa [#allocation4], 1 }
 0x131   :  { %174 = vsyncpa [#allocation7], 1 }
 0x132   :  { %175 = vsyncpa [#allocation5], 1 }

// kernel: bert_mid_layer_forward.14
= control target key start
LH: loop header
LB: loop body
LE: loop exit
PB: predicated region body
PF: predicated region fallthrough
CT: control target
= control target key end

     0   :  { %11 = vsyncpa [#allocation4], 0  ;;  %s631_s0 = inlined_call_operand.hbm [shape: bf16[16,32], index: 0, kind: input, shape index: {}]   ;;  %s632_s1 = inlined_call_operand.hbm [shape: bf16[32,32], index: 1, kind: input, shape index: {}]   ;;  %s633_s2 = inlined_call_operand.hbm [shape: f32[1,32], index: 2, kind: input, shape index: {}]   ;;  %s634_s3 = inlined_call_operand.hbm [shape: f32[16,32], index: 3, kind: input, shape index: {}]   ;;  %s635_s4 = inlined_call_operand.hbm [shape: f32[1,32], index: 4, kind: input, shape index: {}]   ;;  %s636_s5 = inlined_call_operand.hbm [shape: f32[1,32], index: 5, kind: input, shape index: {}]   ;;  %s637_s6 = inlined_call_operand.hbm [shape: f32[16,32], index: 6, kind: output, shape index: {}]  }
   0x1   :  { %12 = vsyncpa [#allocation7], 0 }
   0x2   :  { %13 = vsyncpa [#allocation10], 0 }
   0x3   :  { %14 = vsyncpa [#allocation13], 0 }
   0x4   :  { %15 = vsyncpa [#allocation5], 0  ;;  %s469_s21 = smov [#allocation6]   ;;  %s470_s23 = smov [#allocation9]  }
   0x5   :  { %s33_s22 = sshll.u32 %s469_s21, 4  ;;  %s55_s24 = sshll.u32 %s470_s23, 4  ;;  %s34_s22 = int_to_ptr.vmem [resolvable:$true] %s33_s22  ;;  %s517_s24 = int_to_ptr.vmem [resolvable:$true] %s55_s24 }
   0x6   :  { %s305_s27 = scalar_lea.hbm %s632_s1, 256 }
   0x7   :  { %p306_p0 = scmp.ne.s32.totalorder %s632_s1, %s305_s27  ;;  %p309_p1 = scmp.lt.u32.totalorder %s305_s27, %s632_s1 }
   0x9   :  { %p311_p2 = pnand %p309_p1, %p306_p0 }
   0xb   :  { %314 = shalt.err (!%p311_p2)
}
   0xc   :  { %s315_s8 = scalar_lea.vmem %s34_s22, 256  ;;  %p320_p4 = scmp.lt.s32.totalorder %s34_s22, %s34_s22 }
   0xd   :  { %p316_p3 = scmp.ne.s32.totalorder %s34_s22, %s315_s8  ;;  %p321_p5 = scmp.lt.s32.totalorder %s315_s8, %s315_s8 }
   0xf   :  { %p322_p6 = por %p321_p5, %p320_p4 }
  0x11   :  { %p323_p7 = pnand %p322_p6, %p316_p3 }
  0x13   :  { %326 = shalt.err (!%p323_p7)
}
  0x14   :  { %s471_s9 = smov 64   ;;  %s472_s10 = smov 4  }
  0x15   :  { %39 = dma.hbm_to_vmem [thread:$0]  %s632_s1, 256, %s34_s22, [#allocation7], %s471_s9, %s471_s9, %s472_s10  }
  0x16   :  { %s327_s15 = scalar_lea.hbm %s634_s3, 256 }
  0x17   :  { %p328_p8 = scmp.ne.s32.totalorder %s634_s3, %s327_s15  ;;  %p331_p9 = scmp.lt.u32.totalorder %s327_s15, %s634_s3 }
  0x19   :  { %p333_p10 = pnand %p331_p9, %p328_p8 }
  0x1b   :  { %336 = shalt.err (!%p333_p10)
}
  0x1c   :  { %s337_s20 = scalar_lea.vmem %s517_s24, 256  ;;  %p342_p12 = scmp.lt.s32.totalorder %s517_s24, %s517_s24 }
  0x1d   :  { %p338_p11 = scmp.ne.s32.totalorder %s517_s24, %s337_s20  ;;  %p343_p13 = scmp.lt.s32.totalorder %s337_s20, %s337_s20 }
  0x1f   :  { %p344_p0 = por %p343_p13, %p342_p12 }
  0x21   :  { %p345_p1 = pnand %p344_p0, %p338_p11 }
  0x23   :  { %348 = shalt.err (!%p345_p1)
}
  0x24   :  { %s473_s1 = smov 128   ;;  %s474_s21 = smov 8  }
  0x25   :  { %61 = dma.hbm_to_vmem [thread:$0]  %s634_s3, 256, %s517_s24, [#allocation10], %s473_s1, %s473_s1, %s474_s21  }
  0x26   :  { %s475_s25 = smov [#allocation3]   ;;  %s476_s27 = smov [#allocation8]  }
  0x27   :  { %s21_s26 = sshll.u32 %s475_s25, 4  ;;  %s46_s28 = sshll.u32 %s476_s27, 4  ;;  %s22_s26 = int_to_ptr.vmem [resolvable:$true] %s21_s26  ;;  %s47_s28 = int_to_ptr.vmem [resolvable:$true] %s46_s28 }
  0x28   :  { %s349_s7 = scalar_lea.hbm %s631_s0, 128 }
  0x29   :  { %p350_p2 = scmp.ne.s32.totalorder %s631_s0, %s349_s7  ;;  %p353_p3 = scmp.lt.u32.totalorder %s349_s7, %s631_s0 }
  0x2b   :  { %p355_p4 = pnand %p353_p3, %p350_p2 }
  0x2d   :  { %358 = shalt.err (!%p355_p4)
}
  0x2e   :  { %s359_s3 = scalar_lea.vmem %s22_s26, 128  ;;  %p364_p6 = scmp.lt.s32.totalorder %s22_s26, %s22_s26 }
  0x2f   :  { %p360_p5 = scmp.ne.s32.totalorder %s22_s26, %s359_s3  ;;  %p365_p7 = scmp.lt.s32.totalorder %s359_s3, %s359_s3 }
  0x31   :  { %p366_p8 = por %p365_p7, %p364_p6 }
  0x33   :  { %p367_p9 = pnand %p366_p8, %p360_p5 }
  0x35   :  { %370 = shalt.err (!%p367_p9)
}
  0x36   :  { %27 = dma.hbm_to_vmem [thread:$0]  %s631_s0, 128, %s22_s26, [#allocation4], %s471_s9, %s471_s9, %s472_s10  }
  0x37   :  { %s371_s17 = scalar_lea.hbm %s633_s2, 16 }
  0x38   :  { %p372_p10 = scmp.ne.s32.totalorder %s633_s2, %s371_s17  ;;  %p375_p11 = scmp.lt.u32.totalorder %s371_s17, %s633_s2 }
  0x3a   :  { %p377_p12 = pnand %p375_p11, %p372_p10 }
  0x3c   :  { %380 = shalt.err (!%p377_p12)
}
  0x3d   :  { %s381_s23 = scalar_lea.vmem %s47_s28, 16  ;;  %s385_s25 = scalar_lea.vmem %s47_s28, 32 }
  0x3e   :  { %p382_p13 = scmp.ne.s32.totalorder %s47_s28, %s381_s23  ;;  %p386_p0 = scmp.lt.s32.totalorder %s47_s28, %s47_s28 }
  0x3f   :  { %p387_p1 = scmp.lt.s32.totalorder %s385_s25, %s381_s23 }
  0x41   :  { %p388_p2 = por %p387_p1, %p386_p0 }
  0x43   :  { %p389_p3 = pnand %p388_p2, %p382_p13 }
  0x45   :  { %392 = shalt.err (!%p389_p3)
}
  0x46   :  { %49 = dma.hbm_to_vmem [thread:$0]  %s633_s2, 16, %s47_s28, [#allocation7]  }
  0x47   :  { %s477_s10 = smov [#allocation11]   ;;  %s478_s27 = smov [#allocation12]  }
  0x48   :  { %s68_s26 = sshll.u32 %s477_s10, 4  ;;  %s78_s29 = sshll.u32 %s478_s27, 4  ;;  %s69_s26 = int_to_ptr.vmem [resolvable:$true] %s68_s26  ;;  %s79_s29 = int_to_ptr.vmem [resolvable:$true] %s78_s29 }
  0x49   :  { %s393_s8 = scalar_lea.hbm %s635_s4, 16 }
  0x4a   :  { %p394_p4 = scmp.ne.s32.totalorder %s635_s4, %s393_s8  ;;  %p397_p5 = scmp.lt.u32.totalorder %s393_s8, %s635_s4 }
  0x4c   :  { %p399_p6 = pnand %p397_p5, %p394_p4 }
  0x4e   :  { %402 = shalt.err (!%p399_p6)
}
  0x4f   :  { %s403_s2 = scalar_lea.vmem %s69_s26, 16  ;;  %s407_s28 = scalar_lea.vmem %s69_s26, 32 }
  0x50   :  { %p404_p7 = scmp.ne.s32.totalorder %s69_s26, %s403_s2  ;;  %p408_p8 = scmp.lt.s32.totalorder %s69_s26, %s69_s26 }
  0x51   :  { %p409_p9 = scmp.lt.s32.totalorder %s407_s28, %s403_s2 }
  0x53   :  { %p410_p10 = por %p409_p9, %p408_p8 }
  0x55   :  { %p411_p11 = pnand %p410_p10, %p404_p7 }
  0x57   :  { %414 = shalt.err (!%p411_p11)
}
  0x58   :  { %71 = dma.hbm_to_vmem [thread:$0]  %s635_s4, 16, %s69_s26, [#allocation10]  }
  0x59   :  { %s415_s17 = scalar_lea.hbm %s636_s5, 16 }
  0x5a   :  { %p416_p12 = scmp.ne.s32.totalorder %s636_s5, %s415_s17  ;;  %p419_p13 = scmp.lt.u32.totalorder %s415_s17, %s636_s5 }
  0x5c   :  { %p421_p0 = pnand %p419_p13, %p416_p12 }
  0x5e   :  { %424 = shalt.err (!%p421_p0)
}
  0x5f   :  { %s425_s23 = scalar_lea.vmem %s79_s29, 16  ;;  %s429_s25 = scalar_lea.vmem %s79_s29, 32 }
  0x60   :  { %p426_p1 = scmp.ne.s32.totalorder %s79_s29, %s425_s23  ;;  %p430_p2 = scmp.lt.s32.totalorder %s79_s29, %s79_s29 }
  0x61   :  { %p431_p3 = scmp.lt.s32.totalorder %s429_s25, %s425_s23 }
  0x63   :  { %p432_p4 = por %p431_p3, %p430_p2 }
  0x65   :  { %p433_p5 = pnand %p432_p4, %p426_p1 }
  0x67   :  { %436 = shalt.err (!%p433_p5)
}
  0x68   :  { %81 = dma.hbm_to_vmem [thread:$0]  %s636_s5, 16, %s79_s29, [#allocation13]  }
  0x69   :  { %459 = dma.done.wait [#allocation4], 128  }
  0x6a   :  { %460 = vsyncadd [#allocation4], 4294967168 }
  0x6b   :  { %461 = dma.done.wait [#allocation7], 272  }
  0x6c   :  { %462 = vsyncadd [#allocation7], 4294967024 }
  0x6d   :  { %463 = dma.done.wait [#allocation10], 272  }
  0x6e   :  { %464 = vsyncadd [#allocation10], 4294967024 }
  0x6f   :  { %465 = dma.done.wait [#allocation13], 16  }
  0x70   :  { %466 = vsyncadd [#allocation13], 4294967280  ;;  %vm105_vm0 = vcmask 261120   ;;  %v479_v0 = vmov 0.0   ;;  %vm480_vm1 = vmmov 0   ;;  %v298_v1 = vld [vmem:[#allocation6] sm:$0xff]  }
  0x71   :  { %106 = vst.msk [vmem:[#allocation2] sm:$0xff] %vm105_vm0, %v479_v0  ;;  %107 = vst.msk [vmem:[#allocation2 + $0x8] sm:$0xff] %vm105_vm0, %v479_v0  ;;  %277 = vmatprep.subr.bf16.mxu0 %v479_v0  ;;  %281 = vmatprep.mubr.msk.bf16.mxu0 %vm480_vm1, %v479_v0  ;;  %v299_v2 = vld [vmem:[#allocation6 + $0x8] sm:$0xff]   ;;  %v300_v3 = vld [vmem:[#allocation3] sm:$0xff]   ;;  %s481_s5 = smov [#allocation14]  }
  0x72   :  { %278 = vmatpush3.bf16.msra.mxu0 %v298_v1  ;;  %v271_v12 = vld [vmem:[#allocation8] ss:$0 sm:$0xff]  ;;  %v196_v14 = vld [vmem:[#allocation9] sm:$0xff]  ;;  %v197_v17 = vld [vmem:[#allocation9 + $0x8] sm:$0xff]  ;;  %s252_s9 = sshll.u32 %s481_s5, 4  ;;  %s253_s9 = int_to_ptr.vmem [resolvable:$true] %s252_s9 }
  0x73   :  { %279 = vmatprep.subr.bf16.mxu0 %v479_v0  ;;  %v272_v40 = vld [vmem:[#allocation11] ss:$0 sm:$0xff]  ;;  %v273_v42 = vld [vmem:[#allocation12] ss:$0 sm:$0xff]  ;;  %s437_s10 = scalar_lea.vmem %s253_s9, 256  ;;  %p442_p7 = scmp.lt.s32.totalorder %s253_s9, %s253_s9 }
  0x74   :  { %p438_p6 = scmp.ne.s32.totalorder %s253_s9, %s437_s10  ;;  %p443_p8 = scmp.lt.s32.totalorder %s437_s10, %s437_s10 }
  0x76   :  { %280 = vmatpush3.bf16.msra.mxu0 %v299_v2  ;;  %p444_p9 = por %p443_p8, %p442_p7 }
  0x78   :  { %v108_v4 = vld [vmem:[#allocation2] sm:$0xff]  ;;  %v109_v6 = vld [vmem:[#allocation2 + $0x8] sm:$0xff]  ;;  %p445_p10 = pnand %p444_p9, %p438_p6 }
  0x79   :  { %282 = vmatmul.mubr.msk.bf16.vlgmr.msra.gmra.mrb[0].mxu0 %vm105_vm0, %v300_v3 }
 0x14c   :  { %v171_v5 = vpop.f32.mrb[0].mxu0 }
 0x14d   :  { %v178_v7 = vadd.f32 %v171_v5, %v108_v4  ;;  %v283_v8 = vpop.f32.mrb[1].mxu0 }
 0x14e   :  { %v174_v9 = vpop.f32.mrb[2].mxu0 }
 0x14f   :  { %180 = vst.msk [vmem:[#allocation2] sm:$0xff] %vm105_vm0, %v178_v7  ;;  %v179_v10 = vadd.f32 %v174_v9, %v109_v6  ;;  %v284_v11 = vpop.f32.mrb[3].mxu0 }
 0x151   :  { %181 = vst.msk [vmem:[#allocation2 + $0x8] sm:$0xff] %vm105_vm0, %v179_v10 }
 0x156   :  { %v185_v13 = vld [vmem:[#allocation2] sm:$0xff] }
 0x157   :  { %v194_v15 = vadd.f32 %v271_v12, %v185_v13 }
 0x158   :  { %v186_v16 = vld [vmem:[#allocation2 + $0x8] sm:$0xff] }
 0x159   :  { %v198_v18 = vadd.f32 %v196_v14, %v194_v15  ;;  %v195_v19 = vadd.f32 %v271_v12, %v186_v16 }
 0x15b   :  { %v200_v20 = vsel %vm105_vm0, %v198_v18, 0.0  ;;  %v199_v21 = vadd.f32 %v197_v17, %v195_v19 }
 0x15c   :  { %201 = vadd.xlane.f32.xlu0 %v200_v20 }
 0x15d   :  { %v203_v22 = vsel %vm105_vm0, %v199_v21, 0.0 }
 0x160   :  { %204 = vadd.xlane.f32.xlu0 %v203_v22 }
 0x1e9   :  { %v202_v23 = vpop.xlane.xlu0 %201 }
 0x1ea   :  { %v207_v24 = vmul.f32 0.03125, %v202_v23 }
 0x1ec   :  { %v209_v25 = vsub.f32 %v198_v18, %v207_v24 }
 0x1ed   :  { %v205_v26 = vpop.xlane.xlu0 %204 }
 0x1ee   :  { %v208_v27 = vmul.f32 0.03125, %v205_v26  ;;  %v211_v28 = vmul.f32 %v209_v25, %v209_v25 }
 0x1f0   :  { %v210_v29 = vsub.f32 %v199_v21, %v208_v27  ;;  %v213_v30 = vsel %vm105_vm0, %v211_v28, 0.0 }
 0x1f1   :  { %214 = vadd.xlane.f32.xlu1 %v213_v30 }
 0x1f2   :  { %v212_v31 = vmul.f32 %v210_v29, %v210_v29 }
 0x1f4   :  { %v216_v32 = vsel %vm105_vm0, %v212_v31, 0.0 }
 0x1f5   :  { %217 = vadd.xlane.f32.xlu1 %v216_v32 }
 0x27e   :  { %v215_v33 = vpop.xlane.xlu1 %214 }
 0x27f   :  { %v219_v34 = vmul.f32 0.03125, %v215_v33 }
 0x281   :  { %v221_v35 = vadd.f32 1e-12, %v219_v34 }
 0x282   :  { %v218_v36 = vpop.xlane.xlu1 %217 }
 0x283   :  { %301 = vrsqrt.f32 %v221_v35  ;;  %v220_v37 = vmul.f32 0.03125, %v218_v36 }
 0x285   :  { %v222_v38 = vadd.f32 1e-12, %v220_v37 }
 0x287   :  { %303 = vrsqrt.f32 %v222_v38 }
 0x28d   :  { %v302_v39 = vpop.eup %301 }
 0x28e   :  { %v225_v41 = vmul.f32 %v302_v39, %v209_v25 }
 0x290   :  { %v234_v43 = vmul.f32 %v272_v40, %v225_v41 }
 0x291   :  { %v304_v44 = vpop.eup %303 }
 0x292   :  { %v226_v45 = vmul.f32 %v304_v44, %v210_v29  ;;  %v243_v46 = vadd.f32 %v273_v42, %v234_v43 }
 0x294   :  { %v235_v47 = vmul.f32 %v272_v40, %v226_v45  ;;  %245 = vst.msk [vmem:[#allocation14] sm:$0xff] %vm105_vm0, %v243_v46 }
 0x296   :  { %v244_v48 = vadd.f32 %v273_v42, %v235_v47 }
 0x298   :  { %246 = vst.msk [vmem:[#allocation14 + $0x8] sm:$0xff] %vm105_vm0, %v244_v48 }
 0x299   :  { %448 = shalt.err (!%p445_p10)
}
 0x29a   :  { %s449_s29 = scalar_lea.hbm %s637_s6, 256 }
 0x29b   :  { %p450_p11 = scmp.ne.s32.totalorder %s637_s6, %s449_s29  ;;  %p453_p12 = scmp.lt.u32.totalorder %s449_s29, %s637_s6 }
 0x29d   :  { %p455_p13 = pnand %p453_p12, %p450_p11 }
 0x29f   :  { %458 = shalt.err (!%p455_p13)
}
 0x2a0   :  { %258 = dma.vmem_to_hbm [thread:$0]  %s253_s9, 256, %s637_s6, [#allocation5], %s473_s1, %s473_s1, %s474_s21  }
 0x2a1   :  { %467 = dma.done.wait [#allocation5], 256  }
 0x2a2   :  { %468 = vsyncadd [#allocation5], 4294967040 }
 0x2a3   :  { %262 = vsyncpa [#allocation4], 1 }
 0x2a4   :  { %263 = vsyncpa [#allocation7], 1 }
 0x2a5   :  { %264 = vsyncpa [#allocation10], 1 }
 0x2a6   :  { %265 = vsyncpa [#allocation13], 1 }
 0x2a7   :  { %266 = vsyncpa [#allocation5], 1 }

// kernel: bert_mid_layer_forward.15
= control target key start
LH: loop header
LB: loop body
LE: loop exit
PB: predicated region body
PF: predicated region fallthrough
CT: control target
= control target key end

     0   :  { %8 = vsyncpa [#allocation4], 0  ;;  %s411_s0 = inlined_call_operand.hbm [shape: f32[16,32], index: 0, kind: input, shape index: {}]   ;;  %s412_s1 = inlined_call_operand.hbm [shape: bf16[32,64], index: 1, kind: input, shape index: {}]   ;;  %s413_s2 = inlined_call_operand.hbm [shape: f32[1,64], index: 2, kind: input, shape index: {}]   ;;  %s414_s3 = inlined_call_operand.hbm [shape: bf16[16,64], index: 3, kind: output, shape index: {}]  }
   0x1   :  { %9 = vsyncpa [#allocation7], 0 }
   0x2   :  { %10 = vsyncpa [#allocation5], 0  ;;  %s323_s12 = smov [#allocation6]   ;;  %s229_s16 = scalar_lea.hbm %s412_s1, 256 }
   0x3   :  { %s28_s13 = sshll.u32 %s323_s12, 4  ;;  %p230_p0 = scmp.ne.s32.totalorder %s412_s1, %s229_s16  ;;  %s29_s13 = int_to_ptr.vmem [resolvable:$true] %s28_s13 }
   0x4   :  { %p233_p1 = scmp.lt.u32.totalorder %s229_s16, %s412_s1 }
   0x6   :  { %p235_p2 = pnand %p233_p1, %p230_p0 }
   0x8   :  { %238 = shalt.err (!%p235_p2)
}
   0x9   :  { %s239_s21 = scalar_lea.vmem %s29_s13, 256  ;;  %p244_p4 = scmp.lt.s32.totalorder %s29_s13, %s29_s13 }
   0xa   :  { %p240_p3 = scmp.ne.s32.totalorder %s29_s13, %s239_s21  ;;  %p245_p5 = scmp.lt.s32.totalorder %s239_s21, %s239_s21 }
   0xc   :  { %p246_p6 = por %p245_p5, %p244_p4 }
   0xe   :  { %p247_p7 = pnand %p246_p6, %p240_p3 }
  0x10   :  { %250 = shalt.err (!%p247_p7)
}
  0x11   :  { %s324_s22 = smov 64   ;;  %s325_s23 = smov 4  }
  0x12   :  { %34 = dma.hbm_to_vmem [thread:$0]  %s412_s1, 256, %s29_s13, [#allocation7], %s324_s22, %s324_s22, %s325_s23  }
  0x13   :  { %s326_s26 = smov [#allocation3]   ;;  %s251_s30 = scalar_lea.hbm %s411_s0, 256 }
  0x14   :  { %s16_s27 = sshll.u32 %s326_s26, 4  ;;  %p252_p8 = scmp.ne.s32.totalorder %s411_s0, %s251_s30  ;;  %s17_s27 = int_to_ptr.vmem [resolvable:$true] %s16_s27 }
  0x15   :  { %p255_p9 = scmp.lt.u32.totalorder %s251_s30, %s411_s0 }
  0x17   :  { %p257_p10 = pnand %p255_p9, %p252_p8 }
  0x19   :  { %260 = shalt.err (!%p257_p10)
}
  0x1a   :  { %s261_s8 = scalar_lea.vmem %s17_s27, 256  ;;  %p266_p12 = scmp.lt.s32.totalorder %s17_s27, %s17_s27 }
  0x1b   :  { %p262_p11 = scmp.ne.s32.totalorder %s17_s27, %s261_s8  ;;  %p267_p13 = scmp.lt.s32.totalorder %s261_s8, %s261_s8 }
  0x1d   :  { %p268_p0 = por %p267_p13, %p266_p12 }
  0x1f   :  { %p269_p1 = pnand %p268_p0, %p262_p11 }
  0x21   :  { %272 = shalt.err (!%p269_p1)
}
  0x22   :  { %s327_s1 = smov 128   ;;  %s328_s9 = smov 8  }
  0x23   :  { %22 = dma.hbm_to_vmem [thread:$0]  %s411_s0, 256, %s17_s27, [#allocation4], %s327_s1, %s327_s1, %s328_s9  }
  0x24   :  { %s329_s12 = smov [#allocation8]   ;;  %s273_s16 = scalar_lea.hbm %s413_s2, 16 }
  0x25   :  { %s41_s13 = sshll.u32 %s329_s12, 4  ;;  %p274_p2 = scmp.ne.s32.totalorder %s413_s2, %s273_s16  ;;  %s42_s13 = int_to_ptr.vmem [resolvable:$true] %s41_s13 }
  0x26   :  { %p277_p3 = scmp.lt.u32.totalorder %s273_s16, %s413_s2 }
  0x28   :  { %p279_p4 = pnand %p277_p3, %p274_p2 }
  0x2a   :  { %282 = shalt.err (!%p279_p4)
}
  0x2b   :  { %s283_s21 = scalar_lea.vmem %s42_s13, 16  ;;  %s287_s0 = scalar_lea.vmem %s42_s13, 32 }
  0x2c   :  { %p284_p5 = scmp.ne.s32.totalorder %s42_s13, %s283_s21  ;;  %p288_p6 = scmp.lt.s32.totalorder %s42_s13, %s42_s13 }
  0x2d   :  { %p289_p7 = scmp.lt.s32.totalorder %s287_s0, %s283_s21 }
  0x2f   :  { %p290_p8 = por %p289_p7, %p288_p6 }
  0x31   :  { %p291_p9 = pnand %p290_p8, %p284_p5 }
  0x33   :  { %294 = shalt.err (!%p291_p9)
}
  0x34   :  { %44 = dma.hbm_to_vmem [thread:$0]  %s413_s2, 16, %s42_s13, [#allocation7]  }
  0x35   :  { %317 = dma.done.wait [#allocation4], 256  }
  0x36   :  { %318 = vsyncadd [#allocation4], 4294967040 }
  0x37   :  { %319 = dma.done.wait [#allocation7], 272  }
  0x38   :  { %320 = vsyncadd [#allocation7], 4294967024  ;;  %vm59_vm0 = vcmask 523264   ;;  %v330_v0 = vmov 0.0   ;;  %vm331_vm1 = vmmov 0   ;;  %v223_v1 = vld [vmem:[#allocation6] sm:$0xff]  }
  0x39   :  { %60 = vst.msk [vmem:[#allocation2] sm:$0xff] %vm59_vm0, %v330_v0  ;;  %61 = vst.msk [vmem:[#allocation2 + $0x8] sm:$0xff] %vm59_vm0, %v330_v0  ;;  %205 = vmatprep.subr.bf16.mxu0 %v330_v0  ;;  %209 = vmatprep.mubr.msk.bf16.mxu0 %vm331_vm1, %v330_v0  ;;  %v224_v2 = vld [vmem:[#allocation6 + $0x8] sm:$0xff]   ;;  %v64_v3 = vld [vmem:[#allocation3] sm:$0xff]  ;;  %vm83_vm2 = vcmask 261120   ;;  %vm173_vm3 = vcmask 519168  }
  0x3a   :  { %206 = vmatpush3.bf16.msra.mxu0 %v223_v1  ;;  %v65_v4 = vld [vmem:[#allocation3 + $0x8] sm:$0xff]  ;;  %v197_v14 = vld [vmem:[#allocation8] ss:$0 sm:$0xff]  ;;  %s332_s2 = smov [#allocation9]  }
  0x3b   :  { %207 = vmatprep.subr.bf16.mxu0 %v330_v0  ;;  %v66_v5 = vpack.c.bf16 %v65_v4, %v64_v3  ;;  %s181_s26 = sshll.u32 %s332_s2, 4  ;;  %s182_s26 = int_to_ptr.vmem [resolvable:$true] %s181_s26 }
  0x3c   :  { %s295_s27 = scalar_lea.vmem %s182_s26, 128  ;;  %p300_p11 = scmp.lt.s32.totalorder %s182_s26, %s182_s26 }
  0x3d   :  { %p296_p10 = scmp.ne.s32.totalorder %s182_s26, %s295_s27  ;;  %p301_p12 = scmp.lt.s32.totalorder %s295_s27, %s295_s27 }
  0x3e   :  { %208 = vmatpush3.bf16.msra.mxu0 %v224_v2 }
  0x3f   :  { %p302_p13 = por %p301_p12, %p300_p11 }
  0x40   :  { %v62_v6 = vld [vmem:[#allocation2] sm:$0xff]  ;;  %v63_v8 = vld [vmem:[#allocation2 + $0x8] sm:$0xff] }
  0x41   :  { %210 = vmatmul.mubr.msk.bf16.vlgmr.msra.gmra.mrb[0].mxu0 %vm83_vm2, %v66_v5  ;;  %p303_p0 = pnand %p302_p13, %p296_p10 }
 0x114   :  { %v121_v7 = vpop.f32.mrb[0].mxu0 }
 0x115   :  { %v128_v9 = vadd.f32 %v121_v7, %v62_v6  ;;  %v211_v10 = vpop.f32.mrb[1].mxu0 }
 0x116   :  { %v124_v11 = vpop.f32.mrb[2].mxu0 }
 0x117   :  { %131 = vst.msk [vmem:[#allocation2] sm:$0xff] %vm59_vm0, %v128_v9  ;;  %v129_v12 = vadd.f32 %v124_v11, %v63_v8  ;;  %v212_v13 = vpop.f32.mrb[3].mxu0 }
 0x119   :  { %132 = vst.msk [vmem:[#allocation2 + $0x8] sm:$0xff] %vm59_vm0, %v129_v12 }
 0x11e   :  { %v136_v15 = vld [vmem:[#allocation2] sm:$0xff] }
 0x11f   :  { %v145_v16 = vadd.f32 %v197_v14, %v136_v15 }
 0x120   :  { %v137_v17 = vld [vmem:[#allocation2 + $0x8] sm:$0xff] }
 0x121   :  { %v146_v18 = vadd.f32 %v197_v14, %v137_v17  ;;  %v149_v19 = vmul.f32 0.044715, %v145_v16  ;;  %v147_v30 = vmul.f32 0.5, %v145_v16 }
 0x123   :  { %v150_v20 = vmul.f32 0.044715, %v146_v18  ;;  %v151_v21 = vmul.f32 %v149_v19, %v145_v16  ;;  %v148_v33 = vmul.f32 0.5, %v146_v18 }
 0x125   :  { %v152_v22 = vmul.f32 %v150_v20, %v146_v18  ;;  %v153_v23 = vmul.f32 %v151_v21, %v145_v16 }
 0x127   :  { %v154_v24 = vmul.f32 %v152_v22, %v146_v18  ;;  %v155_v25 = vadd.f32 %v153_v23, %v145_v16 }
 0x129   :  { %v156_v26 = vadd.f32 %v154_v24, %v146_v18  ;;  %v157_v27 = vmul.f32 0.7978846, %v155_v25 }
 0x12b   :  { %v158_v28 = vmul.f32 0.7978846, %v156_v26  ;;  %225 = vtanh.f32 %v157_v27 }
 0x12d   :  { %227 = vtanh.f32 %v158_v28 }
 0x135   :  { %v226_v29 = vpop.eup %225 }
 0x136   :  { %v161_v31 = vadd.f32 1.0, %v226_v29 }
 0x137   :  { %v228_v32 = vpop.eup %227 }
 0x138   :  { %v162_v34 = vadd.f32 1.0, %v228_v32  ;;  %v163_v35 = vmul.f32 %v161_v31, %v147_v30 }
 0x13a   :  { %v164_v36 = vmul.f32 %v162_v34, %v148_v33  ;;  %v200_v37 = vpack.c.bf16 %v163_v35, %v163_v35 }
 0x13c   :  { %v201_v38 = vpack.c.bf16 %v164_v36, %v164_v36  ;;  %174 = vst.msk [vmem:[#allocation9] sm:$0xf] %vm173_vm3, %v200_v37 }
 0x13e   :  { %175 = vst.msk [vmem:[#allocation9 + $0x4] sm:$0xf] %vm173_vm3, %v201_v38 }
 0x13f   :  { %306 = shalt.err (!%p303_p0)
}
 0x140   :  { %s307_s30 = scalar_lea.hbm %s414_s3, 128 }
 0x141   :  { %p308_p1 = scmp.ne.s32.totalorder %s414_s3, %s307_s30  ;;  %p311_p2 = scmp.lt.u32.totalorder %s307_s30, %s414_s3 }
 0x143   :  { %p313_p3 = pnand %p311_p2, %p308_p1 }
 0x145   :  { %316 = shalt.err (!%p313_p3)
}
 0x146   :  { %187 = dma.vmem_to_hbm [thread:$0]  %s182_s26, 128, %s414_s3, [#allocation5], %s324_s22, %s324_s22, %s325_s23  }
 0x147   :  { %321 = dma.done.wait [#allocation5], 128  }
 0x148   :  { %322 = vsyncadd [#allocation5], 4294967168 }
 0x149   :  { %191 = vsyncpa [#allocation4], 1 }
 0x14a   :  { %192 = vsyncpa [#allocation7], 1 }
 0x14b   :  { %193 = vsyncpa [#allocation5], 1 }

// kernel: bert_mid_layer_forward.13
= control target key start
LH: loop header
LB: loop body
LE: loop exit
PB: predicated region body
PF: predicated region fallthrough
CT: control target
= control target key end

     0   :  { %s2676_s0 = inlined_call_operand.hbm [shape: bf16[2,8,3,2,16], index: 0, kind: input, shape index: {}, may-alias: {0,1,2}]   ;;  %s2677_s1 = inlined_call_operand.hbm [shape: bf16[2,8,3,2,16], index: 1, kind: input, shape index: {}, may-alias: {0,1,2}]   ;;  %s2678_s2 = inlined_call_operand.hbm [shape: bf16[2,8,3,2,16], index: 2, kind: input, shape index: {}, may-alias: {0,1,2}]   ;;  %s2679_s3 = inlined_call_operand.hbm [shape: bf16[2,8,2,16], index: 3, kind: output, shape index: {}]  }
   0x1   :  { %2691 = sst [smem:[#allocation15_spill]] %s2676_s0 }
   0x2   :  { %2692 = sst [smem:[#allocation16_spill]] %s2677_s1 }
   0x3   :  { %8 = vsyncpa [#allocation3], 0 }
   0x4   :  { %10 = vsyncpa [#allocation3 + $0x1], 0 }
   0x5   :  { %11 = vsyncpa [#allocation6], 0 }
   0x6   :  { %13 = vsyncpa [#allocation6 + $0x1], 0 }
   0x7   :  { %14 = vsyncpa [#allocation4], 0 }
   0x8   :  { %16 = vsyncpa [#allocation4 + $0x1], 0  ;;  %s2131_s12 = smov 0   ;;  %s2133_s13 = smov 0  }
   0x9   :  { %s2135_s14 = smov 0   ;;  %s2137_s15 = smov 0  }
   0xa   :  { %s2139_s16 = smov 0   ;;  %s2141_s17 = smov 0  }
   0xb LB: > { %2693 = sst [smem:[#allocation12_spill]] %s2093_s16  ;;  %s2162_s18 = sadd.s32 4294967295, %s2097_s17   ;;  %s2097_s17 = sphi %s2141_s17, %s22_s17   ;;  %s2093_s16 = sphi %s2139_s16, %s2720_s16   ;;  %s2089_s15 = sphi %s2137_s15, %s2719_s15   ;;  %s2085_s14 = sphi %s2135_s14, %s2723_s14   ;;  %s2081_s13 = sphi %s2133_s13, %s2722_s13   ;;  %s2077_s12 = sphi %s2131_s12, %s2721_s12  }
   0xc   : > { %s1718_s19 = sadd.s32 4294967294, %s2097_s17   ;;  %s34_s20 = sadd.s32 1, %s2093_s16 }
   0xd   : > { %s43_s21 = sadd.s32 1, %s2085_s14  ;;  %p36_p0 = scmp.ge.s32.totalorder %s34_s20, 2 }
   0xe   : > { %p50_p1 = scmp.ne.s32.totalorder %s2085_s14, %s2081_s13  ;;  %p51_p2 = scmp.eq.s32.totalorder %s2097_s17, 0 }
   0xf   : > { %p56_p3 = scmp.ne.s32.totalorder %s2081_s13, %s2077_s12  ;;  %s2725_s20 = smov (%p36_p0, %s34_s20), 0 }
  0x10   : > { %2694 = sst [smem:[#allocation13_spill]] %s2725_s20  ;;  %p2174_p4 = por %p51_p2, %p50_p1 }
  0x11   : > { %p57_p5 = scmp.eq.s32.totalorder %s2162_s18, 0  ;;  %s38_s23 = ssub.s32 %s2093_s16, %s2725_s20 }
  0x12   : > { %p134_p6 = scmp.eq.s32.totalorder %s2162_s18, 1  ;;  %p41_p7 = scmp.eq.s32.totalorder %s38_s23, 0 }
  0x13   : > { %p2182_p8 = por %p57_p5, %p56_p3  ;;  %p140_p10 = scmp.eq.s32.totalorder %s1718_s19, 1 }
  0x14   : > { %p2186_p9 = por %p134_p6, %p50_p1  ;;  %p1853_p13 = scmp.lt.s32.totalorder %s2097_s17, 2 }
  0x15   : > { %s2696_s24 = scalar_select %p2182_p8, 1, 0 }
  0x16   : > { %s2697_s25 = scalar_select %p2186_p9, 1, 0 }
  0x17   : > { %s2191_s26 = scalar_select %p41_p7, %s2085_s14, %s43_s21  }
  0x18   : > { %p2193_p11 = por %p140_p10, %p56_p3  ;;  %s2680_s28 = sand.u32 1, %s2085_s14  }
  0x19   : > { %2698 = sst [smem:[#allocation14_spill]] %s2191_s26  ;;  %s2202_s29 = sshll.u32 %s2680_s28, 3 }
  0x1a   : > { %s2699_s27 = scalar_select %p2193_p11, 1, 0 }
  0x1b   : > { %s2205_s30 = smul.u32 384, %s2093_s16  ;;  %p2209_p0 = pnand %p1853_p13, %p2174_p4 }
  0x1c   : > { %s184_s5 = sand.u32 1, %s2097_s17   ;;  %s2701_s1 = sld [smem:[#allocation16_spill]] }
  0x1d   : > { %s188_s9 = scalar_lea.vmem [#allocation5], %s2202_s29  ;;  %s2223_s19 = scalar_lea.sflag [#allocation6], %s184_s5 }
  0x1e   : > { %s196_s10 = sshll.u32 %s188_s9, 4  ;;  %p2228_p2 = pneg %p2209_p0  ;;  %s2221_s10 = int_to_ptr.vmem [resolvable:$true] %s196_s10 }
  0x22   : > { %s1626_s8 = scalar_lea.hbm %s2701_s1, %s2205_s30  ;;  %s1924_s7 = scalar_lea.hbm %s2701_s1, 768 }
  0x23   : > { %s2219_s11 = scalar_lea.hbm %s1626_s8, 16  ;;  %s1949_s21 = scalar_lea.hbm %s1626_s8, 144 }
  0x24   : > { %p1920_p1 = scmp.ne.s32.totalorder %s2219_s11, %s1949_s21  ;;  %p1925_p5 = scmp.lt.u32.totalorder %s2219_s11, %s2701_s1 }
  0x25   : > { %p1926_p6 = scmp.lt.u32.totalorder %s1924_s7, %s1949_s21  ;;  %p1928_p10 = scmp.lt.u32.totalorder %s1949_s21, %s2219_s11 }
  0x26   : > { %p1922_p3 = pnand %p2228_p2, %p1920_p1 }
  0x27   : > { %p1927_p7 = por %p1926_p6, %p1925_p5 }
  0x28   : > { %p1923_p4 = pneg %p1922_p3 }
  0x29   : > { %p1929_p13 = por %p1928_p10, %p1927_p7 }
  0x2b   : > { %p1930_p12 = pnand %p1929_p13, %p1923_p4 }
  0x2d   : > { %1933 = shalt.err (!%p1930_p12)
}
  0x2e   : > { %s1934_s5 = scalar_lea.vmem %s2221_s10, 128  ;;  %s2099_s8 = smov [#allocation5]  }
  0x2f   : > { %p1935_p1 = scmp.ne.s32.totalorder %s2221_s10, %s1934_s5  ;;  %s1939_s23 = sshll.u32 %s2099_s8, 4  ;;  %s1940_s23 = int_to_ptr.vmem [resolvable:$false] %s1939_s23 }
  0x30   : > { %s1941_s28 = scalar_lea.vmem %s1940_s23, 256  ;;  %p1942_p9 = scmp.lt.s32.totalorder %s2221_s10, %s1940_s23 }
  0x31   : > { %p1937_p3 = pnand %p1935_p1, %p2228_p2  ;;  %p1943_p8 = scmp.lt.s32.totalorder %s1941_s28, %s1934_s5 }
  0x33   : > { %p1938_p11 = pneg %p1937_p3  ;;  %p1944_p5 = por %p1943_p8, %p1942_p9 }
  0x35   : > { %p1945_p6 = pnand %p1944_p5, %p1938_p11 }
  0x37   : > { %1948 = shalt.err (!%p1945_p6)
}
  0x38   : > { %s2683_s21 = smov 48   ;;  %s2685_s6 = smov 16  }
  0x39   : > { %s2687_s7 = smov 1   ;;  %p1727_p8 = scmp.ge.s32.totalorder %s2097_s17, 1 }
  0x3a   : > { %1845 = dma.hbm_to_vmem [thread:$0]  (!%p2209_p0), %s2219_s11, 128, %s2221_s10, %s2223_s19, %s2683_s21, %s2685_s6, %s2687_s7  }
  0x3b   : > { %p226_p9 = scmp.lt.s32.totalorder %s2097_s17, 3  ;;  %s2704_s0 = sld [smem:[#allocation15_spill]] }
  0x3c   : > { %s164_s28 = scalar_lea.vmem [#allocation2], %s2202_s29  ;;  %s2274_s21 = scalar_lea.hbm %s2678_s2, %s2205_s30 }
  0x3d   : > { %p2257_p11 = pnand %p1727_p8, %p226_p9  ;;  %s174_s1 = sshll.u32 %s164_s28, 4  ;;  %s2268_s1 = int_to_ptr.vmem [resolvable:$true] %s174_s1 }
  0x3e   : > { %s2705_s6 = sand.u32 1, %s2085_s14  }
  0x3f   : > { %s2703_s9 = scalar_select %p2257_p11, 1, 0 }
  0x40   : > { %s2278_s7 = scalar_lea.sflag [#allocation3], %s2705_s6 }
  0x41   : > { %s2265_s23 = scalar_lea.hbm %s2704_s0, %s2205_s30  ;;  %s1955_s16 = scalar_lea.hbm %s2704_s0, 768 }
  0x42   : > { %s1950_s20 = scalar_lea.hbm %s2265_s23, 128  ;;  %p1956_p10 = scmp.lt.u32.totalorder %s2265_s23, %s2704_s0 }
  0x43   : > { %p1951_p12 = scmp.ne.s32.totalorder %s2265_s23, %s1950_s20  ;;  %p1957_p13 = scmp.lt.u32.totalorder %s1955_s16, %s1950_s20 }
  0x44   : > { %p1959_p3 = scmp.lt.u32.totalorder %s1950_s20, %s2265_s23 }
  0x45   : > { %p1953_p4 = pnand %p1951_p12, %p2228_p2  ;;  %p1958_p1 = por %p1957_p13, %p1956_p10 }
  0x47   : > { %p1954_p7 = pneg %p1953_p4  ;;  %p1960_p5 = por %p1959_p3, %p1958_p1 }
  0x49   : > { %p1961_p6 = pnand %p1960_p5, %p1954_p7 }
  0x4b   : > { %1964 = shalt.err (!%p1961_p6)
}
  0x4c   : > { %s1965_s30 = scalar_lea.vmem %s2268_s1, 128  ;;  %s2103_s6 = smov [#allocation2]  }
  0x4d   : > { %p1966_p8 = scmp.ne.s32.totalorder %s2268_s1, %s1965_s30  ;;  %s1970_s10 = sshll.u32 %s2103_s6, 4  ;;  %s1971_s10 = int_to_ptr.vmem [resolvable:$false] %s1970_s10 }
  0x4e   : > { %s1972_s26 = scalar_lea.vmem %s1971_s10, 256  ;;  %p1973_p4 = scmp.lt.s32.totalorder %s2268_s1, %s1971_s10 }
  0x4f   : > { %p1968_p9 = pnand %p1966_p8, %p2228_p2  ;;  %p1974_p11 = scmp.lt.s32.totalorder %s1972_s26, %s1965_s30 }
  0x51   : > { %p1969_p12 = pneg %p1968_p9  ;;  %p1975_p10 = por %p1974_p11, %p1973_p4 }
  0x53   : > { %p1976_p13 = pnand %p1975_p10, %p1969_p12 }
  0x55   : > { %1979 = shalt.err (!%p1976_p13)
}
  0x56   : > { %s2706_s16 = smov 1   ;;  %s2707_s20 = smov 16  }
  0x57   : > { %s2708_s11 = smov 48   ;;  %s2306_s5 = scalar_lea.hbm %s2274_s21, 32 }
  0x58   : > { %1842 = dma.hbm_to_vmem [thread:$0]  (!%p2209_p0), %s2265_s23, 128, %s2268_s1, %s2278_s7, %s2708_s11, %s2707_s20, %s2706_s16  }
  0x59   : > { %s210_s8 = scalar_lea.vmem [#allocation7], %s2202_s29  ;;  %s2010_s30 = scalar_lea.hbm %s2274_s21, 160 }
  0x5a   : > { %s218_s28 = sshll.u32 %s210_s8, 4  ;;  %p1981_p11 = scmp.ne.s32.totalorder %s2306_s5, %s2010_s30  ;;  %s2309_s28 = int_to_ptr.vmem [resolvable:$true] %s218_s28 }
  0x5b   : > { %s1985_s26 = scalar_lea.hbm %s2678_s2, 768  ;;  %p1986_p3 = scmp.lt.u32.totalorder %s2306_s5, %s2678_s2 }
  0x5c   : > { %p1983_p7 = pnand %p1981_p11, %p2228_p2  ;;  %p1987_p5 = scmp.lt.u32.totalorder %s1985_s26, %s2010_s30 }
  0x5d   : > { %p1989_p8 = scmp.lt.u32.totalorder %s2010_s30, %s2306_s5 }
  0x5e   : > { %p1984_p1 = pneg %p1983_p7  ;;  %p1988_p6 = por %p1987_p5, %p1986_p3 }
  0x60   : > { %p1990_p9 = por %p1989_p8, %p1988_p6 }
  0x62   : > { %p1991_p12 = pnand %p1990_p9, %p1984_p1 }
  0x64   : > { %1994 = shalt.err (!%p1991_p12)
}
  0x65   : > { %s1995_s29 = scalar_lea.vmem %s2309_s28, 128  ;;  %s2104_s21 = smov [#allocation7]  }
  0x66   : > { %p1996_p4 = scmp.ne.s32.totalorder %s2309_s28, %s1995_s29  ;;  %s2000_s7 = sshll.u32 %s2104_s21, 4  ;;  %s2001_s7 = int_to_ptr.vmem [resolvable:$false] %s2000_s7 }
  0x67   : > { %s2002_s0 = scalar_lea.vmem %s2001_s7, 256  ;;  %p2003_p11 = scmp.lt.s32.totalorder %s2309_s28, %s2001_s7 }
  0x68   : > { %p1998_p10 = pnand %p1996_p4, %p2228_p2  ;;  %p2004_p7 = scmp.lt.s32.totalorder %s2002_s0, %s1995_s29 }
  0x6a   : > { %p1999_p13 = pneg %p1998_p10  ;;  %p2005_p3 = por %p2004_p7, %p2003_p11 }
  0x6c   : > { %p2006_p5 = pnand %p2005_p3, %p1999_p13 }
  0x6e   : > { %2009 = shalt.err (!%p2006_p5)
}
  0x6f   : > { %1848 = dma.hbm_to_vmem [thread:$0]  (!%p2209_p0), %s2306_s5, 128, %s2309_s28, %s2223_s19, %s2708_s11, %s2707_s20, %s2706_s16  }
  0x70   : > { %p2709_p2 = scmp.ne.s32.totalorder %s2703_s9, 0 }
  0x71   : > { %s2339_s22 = sand.u32 (!%p2709_p2), 1, %s2081_s13   ;;  %p2710_p1 = scmp.ne.s32.totalorder (!%p2709_p2), %s2696_s24, 0 }
  0x72   : > { %230 = sbr.rel (%p2709_p2) target bundleno = 1152 (0x480), region = 32  ;;  %s2342_s23 = sshll.u32 (!%p2709_p2), %s2339_s22, 3 }
  0x73   : > { %s233_s4 = scalar_lea.sflag (!%p2709_p2), [#allocation3], %s2339_s22  ;;  %s2346_s8 = scalar_lea.vmem (!%p2709_p2), [#allocation2], %s2342_s23 }
  0x79   : > { %2064 = dma.done.wait (%p2710_p1), %s233_s4, 128  }
  0x7a   : > { %2066 = vsyncadd (%p2710_p1), %s233_s4, 4294967168  ;;  %s241_s19 = sand.u32 1, %s2162_s18   ;;  %s2354_s16 = scalar_lea.vmem [#allocation5], %s2342_s23 }
  0x7b   : > { %s242_s9 = scalar_lea.sflag [#allocation6], %s241_s19 }
  0x7c   : > { %2068 = dma.done.wait (%p2710_p1), %s242_s9, 256  }
  0x7d   : > { %2070 = vsyncadd (%p2710_p1), %s242_s9, 4294967040  ;;  %v332_v0 = vlaneseq  ;;  %v2105_v1 = vmov 0.0   ;;  %v2106_v2 = vmov 1966171168   ;;  %vm2107_vm0 = vmmov 0   ;;  %s254_s18 = scalar_lea.vmem [#allocation7], %s2342_s23 }
  0x7e   : > { %1806 = vmatprep.subr.bf16.mxu0 %v2105_v1  ;;  %v330_v3 = vunpack.c.l.s4 %v2106_v2  ;;  %1812 = vmatprep.subr.bf16.mxu1 %v2105_v1  ;;  %v1740_v7 = vld.sshfl [vmem:[%s2354_s16] sm:$0x1 pattern:$0x75316420]  ;;  %vm443_vm1 = vcmask 1041409   ;;  %vm446_vm2 = vcmask 1042434  }
  0x7f   : > { %v333_v4 = vshrl.u32 %v332_v0, 7  ;;  %1808 = vmatprep.mubr.msk.bf16.mxu0 %vm2107_vm0, %v2105_v1  ;;  %1814 = vmatprep.mubr.msk.bf16.mxu1 %vm2107_vm0, %v2105_v1  ;;  %v1741_v8 = vld.sshfl [vmem:[%s2354_s16 + $0x1] sm:$0x1 pattern:$0x75316420]  ;;  %vm449_vm3 = vcmask 1043459  }
  0x80   : > { %v331_v5 = vunpack.c.0.s8 %v330_v3  ;;  %v1742_v10 = vld.sshfl [vmem:[%s2354_s16 + $0x2] sm:$0x1 pattern:$0x75316420]  ;;  %vm452_vm4 = vcmask 1044484   ;;  %vm455_vm5 = vcmask 1045509  }
  0x81   : > { %v1743_v12 = vld.sshfl [vmem:[%s2354_s16 + $0x3] sm:$0x1 pattern:$0x75316420]  ;;  %vm458_vm6 = vcmask 1046534   ;;  %vm461_vm7 = vcmask 1047559  }
  0x82   : > { %v2366_v6 = vsub.s32 %v331_v5, %v333_v4  ;;  %v1744_v14 = vld.sshfl [vmem:[%s2354_s16 + $0x4] sm:$0x1 pattern:$0x75316420]  ;;  %vm607_vm8 = vcmask 130048   ;;  %vm654_vm9 = vcmask 64512  }
  0x83   : > { %v1745_v18 = vld.sshfl [vmem:[%s2354_s16 + $0x5] sm:$0x1 pattern:$0x75316420]  ;;  %vm811_vm10 = vcmask 1043456   ;;  %vm907_vm11 = vcmask 122880  }
  0x84   : > { %v485_v9 = vrot.slane %v1740_v7, %v2366_v6  ;;  %v499_v11 = vrot.slane %v1741_v8, %v2366_v6  ;;  %v513_v13 = vrot.slane %v1742_v10, %v2366_v6  ;;  %v527_v15 = vrot.slane %v1743_v12, %v2366_v6  ;;  %v1746_v21 = vld.sshfl [vmem:[%s2354_s16 + $0x6] sm:$0x1 pattern:$0x75316420]  ;;  %s2543_s24 = scalar_lea.vmem [#allocation8], %s2342_s23  ;;  %s1797_s20 = sshll.u32 %s2089_s15, 7 }
  0x85   : > { %v541_v19 = vrot.slane %v1744_v14, %v2366_v6  ;;  %v555_v22 = vrot.slane %v1745_v18, %v2366_v6  ;;  %v1747_v25 = vld.sshfl [vmem:[%s2354_s16 + $0x7] sm:$0x1 pattern:$0x75316420]  ;;  %v569_v26 = vrot.slane %v1746_v21, %v2366_v6  ;;  %vm908_vm12 = vsmask.f32 256  ;;  %s2618_s28 = scalar_lea.hbm %s2679_s3, %s1797_s20 }
  0x86   : > { %v2377_v16 = vunpack.c.l.b16 %v485_v9  ;;  %v2379_v17 = vunpack.c.l.b16 %v499_v11  ;;  %v2383_v20 = vunpack.c.l.b16 %v513_v13  ;;  %v2387_v23 = vunpack.c.l.b16 %v527_v15  ;;  %v1732_v33 = vld.sshfl [vmem:[%s2346_s8] sm:$0x1 pattern:$0x75316420]  ;;  %vm2538_vm13 = vmand %vm907_vm11, %vm908_vm12  ;;  %s1583_s11 = sshll.u32 %s2543_s24, 4  ;;  %s1568_s30 = scalar_lea.sflag [#allocation4], %s2339_s22  ;;  %s2620_s11 = int_to_ptr.vmem [resolvable:$true] %s1583_s11 }
  0x87   : > { %v2392_v27 = vunpack.c.l.b16 %v541_v19  ;;  %v583_v29 = vrot.slane %v1747_v25, %v2366_v6  ;;  %v2396_v30 = vunpack.c.l.b16 %v555_v22  ;;  %v2402_v34 = vunpack.c.l.b16 %v569_v26  ;;  %v1733_v37 = vld.sshfl [vmem:[%s2346_s8 + $0x1] sm:$0x1 pattern:$0x75316420]  ;;  %s2011_s6 = scalar_lea.vmem %s2620_s11, 128  ;;  %p2715_p6 = scmp.ne.s32.totalorder %s2697_s25, 0 }
  0x88   : > { %v592_v24 = vrot.slane %v2379_v17, 7  ;;  %v594_v28 = vrot.slane %v2383_v20, 6  ;;  %v596_v32 = vrot.slane %v2387_v23, 5  ;;  %v335_v38 = vrot.slane %v1732_v33, %v2366_v6  ;;  %p2012_p0 = scmp.ne.s32.totalorder %s2620_s11, %s2011_s6  ;;  %s2108_s10 = smov [#allocation8]  }
  0x89   : > { %v598_v36 = vrot.slane %v2392_v27, 4  ;;  %v2408_v39 = vunpack.c.l.b16 %v583_v29  ;;  %v600_v41 = vrot.slane %v2396_v30, 3  ;;  %v1734_v42 = vld.sshfl [vmem:[%s2346_s8 + $0x2] sm:$0x1 pattern:$0x75316420]  ;;  %v349_v43 = vrot.slane %v1733_v37, %v2366_v6 }
  0x8a   : > { %v593_v31 = vsel %vm443_vm1, %v592_v24, %v2377_v16  ;;  %v602_v45 = vrot.slane %v2402_v34, 2  ;;  %v1735_v46 = vld.sshfl [vmem:[%s2346_s8 + $0x3] sm:$0x1 pattern:$0x75316420]  ;;  %v363_v47 = vrot.slane %v1734_v42, %v2366_v6  ;;  %v2418_v48 = vunpack.c.l.b16 %v335_v38  ;;  %p2013_p8 = pnand %p2012_p0, %p2715_p6  ;;  %s2015_s26 = sshll.u32 %s2108_s10, 4  ;;  %s2016_s26 = int_to_ptr.vmem [resolvable:$false] %s2015_s26 }
  0x8b   : > { %v595_v35 = vsel %vm446_vm2, %v594_v28, %v593_v31  ;;  %v604_v50 = vrot.slane %v2408_v39, 1  ;;  %v1736_v51 = vld.sshfl [vmem:[%s2346_s8 + $0x4] sm:$0x1 pattern:$0x75316420]  ;;  %v377_v52 = vrot.slane %v1735_v46, %v2366_v6  ;;  %v2424_v53 = vunpack.c.l.b16 %v349_v43  ;;  %s2017_s1 = scalar_lea.vmem %s2016_s26, 256  ;;  %p2018_p12 = scmp.lt.s32.totalorder %s2620_s11, %s2016_s26 }
  0x8c   : > { %v597_v40 = vsel %vm449_vm3, %v596_v32, %v595_v35  ;;  %v1737_v55 = vld.sshfl [vmem:[%s2346_s8 + $0x5] sm:$0x1 pattern:$0x75316420]  ;;  %v391_v56 = vrot.slane %v1736_v51, %v2366_v6  ;;  %v2429_v57 = vunpack.c.l.b16 %v363_v47  ;;  %vm1541_vm14 = vsmask.f32 7938  ;;  %p2014_p9 = pneg %p2013_p8  ;;  %p2019_p4 = scmp.lt.s32.totalorder %s2017_s1, %s2011_s6 }
  0x8d   : > { %v599_v44 = vsel %vm452_vm4, %v598_v36, %v597_v40  ;;  %v1738_v59 = vld.sshfl [vmem:[%s2346_s8 + $0x6] sm:$0x1 pattern:$0x75316420]  ;;  %v405_v60 = vrot.slane %v1737_v55, %v2366_v6  ;;  %v2434_v61 = vunpack.c.l.b16 %v377_v52  ;;  %v442_v62 = vrot.slane %v2424_v53, 7  ;;  %vm2584_vm15 = vmand %vm907_vm11, %vm1541_vm14 }
  0x8e   : > { %v601_v49 = vsel %vm455_vm5, %v600_v41, %v599_v44  ;;  %v1739_v0 = vld.sshfl [vmem:[%s2346_s8 + $0x7] sm:$0x1 pattern:$0x75316420]  ;;  %v419_v2 = vrot.slane %v1738_v59, %v2366_v6  ;;  %v2439_v3 = vunpack.c.l.b16 %v391_v56  ;;  %v445_v4 = vrot.slane %v2429_v57, 6  ;;  %p2020_p10 = por %p2019_p4, %p2018_p12 }
  0x8f   : > { %v603_v54 = vsel %vm458_vm6, %v602_v45, %v601_v49  ;;  %v433_v5 = vrot.slane %v1739_v0, %v2366_v6  ;;  %v2443_v7 = vunpack.c.l.b16 %v405_v60  ;;  %v444_v8 = vsel %vm443_vm1, %v442_v62, %v2418_v48  ;;  %v1750_v36 = vld.sshfl [vmem:[%s254_s18 + $0x1] sm:$0x1 pattern:$0x75316420] }
  0x90   : > { %v605_v58 = vsel %vm461_vm7, %v604_v50, %v603_v54  ;;  %v448_v9 = vrot.slane %v2434_v61, 5  ;;  %v2449_v11 = vunpack.c.l.b16 %v419_v2  ;;  %v447_v12 = vsel %vm446_vm2, %v445_v4, %v444_v8  ;;  %v1751_v37 = vld.sshfl [vmem:[%s254_s18 + $0x2] sm:$0x1 pattern:$0x75316420]  ;;  %p2021_p13 = pnand %p2020_p10, %p2014_p9 }
  0x91   : > { %v606_v63 = vpack.c.b16 %v605_v58, %v605_v58  ;;  %v451_v13 = vrot.slane %v2439_v3, 4  ;;  %v2453_v14 = vunpack.c.l.b16 %v433_v5  ;;  %v454_v18 = vrot.slane %v2443_v7, 3  ;;  %v1749_v40 = vld.sshfl [vmem:[%s254_s18] sm:$0x1 pattern:$0x75316420] }
  0x92   : > { %v450_v15 = vsel %vm449_vm3, %v448_v9, %v447_v12  ;;  %v457_v21 = vrot.slane %v2449_v11, 2  ;;  %v700_v38 = vrot.slane %v1750_v36, %v2366_v6  ;;  %v714_v41 = vrot.slane %v1751_v37, %v2366_v6  ;;  %v1752_v42 = vld.sshfl [vmem:[%s254_s18 + $0x3] sm:$0x1 pattern:$0x75316420] }
  0x93   : > { %v612_v10 = vsel %vm607_vm8, %v606_v63, 0  ;;  %v453_v19 = vsel %vm452_vm4, %v451_v13, %v450_v15  ;;  %v460_v24 = vrot.slane %v2453_v14, 1  ;;  %v686_v43 = vrot.slane %v1749_v40, %v2366_v6  ;;  %v1753_v45 = vld.sshfl [vmem:[%s254_s18 + $0x4] sm:$0x1 pattern:$0x75316420] }
  0x94   : > { %1807 = vmatpush3.bf16.xpose.msra.mxu0 %v612_v10  ;;  %v456_v22 = vsel %vm455_vm5, %v454_v18, %v453_v19  ;;  %v786_v44 = vunpack.c.l.b16 %v700_v38  ;;  %v728_v46 = vrot.slane %v1752_v42, %v2366_v6  ;;  %v787_v47 = vunpack.c.l.b16 %v714_v41  ;;  %v1754_v49 = vld.sshfl [vmem:[%s254_s18 + $0x5] sm:$0x1 pattern:$0x75316420] }
  0x95   : > { %1824 = vmatprep.subr.bf16.mxu0 %v2105_v1  ;;  %v459_v25 = vsel %vm458_vm6, %v457_v21, %v456_v22  ;;  %v742_v50 = vrot.slane %v1753_v45, %v2366_v6  ;;  %v785_v51 = vunpack.c.l.b16 %v686_v43  ;;  %v1755_v54 = vld.sshfl [vmem:[%s254_s18 + $0x6] sm:$0x1 pattern:$0x75316420]  ;;  %v756_v55 = vrot.slane %v1754_v49, %v2366_v6 }
  0x96   : > { %v462_v26 = vsel %vm461_vm7, %v460_v24, %v459_v25  ;;  %v793_v52 = vrot.slane %v786_v44, 7  ;;  %v788_v56 = vunpack.c.l.b16 %v728_v46  ;;  %v795_v58 = vrot.slane %v787_v47, 6  ;;  %v1756_v59 = vld.sshfl [vmem:[%s254_s18 + $0x7] sm:$0x1 pattern:$0x75316420] }
  0x97   : > { %v463_v28 = vpack.c.b16 %v462_v26, %v462_v26  ;;  %v770_v60 = vrot.slane %v1755_v54, %v2366_v6  ;;  %v789_v62 = vunpack.c.l.b16 %v742_v50  ;;  %v784_v0 = vrot.slane %v1756_v59, %v2366_v6 }
  0x98   : > { %v794_v63 = vsel %vm443_vm1, %v793_v52, %v785_v51  ;;  %v790_v2 = vunpack.c.l.b16 %v756_v55  ;;  %v797_v5 = vrot.slane %v788_v56, 5  ;;  %v1428_v22 = vrot.slane %v785_v51, 1 }
  0x99   : > { %v796_v4 = vsel %vm446_vm2, %v795_v58, %v794_v63  ;;  %v791_v8 = vunpack.c.l.b16 %v770_v60  ;;  %v799_v9 = vrot.slane %v789_v62, 4  ;;  %v792_v10 = vunpack.c.l.b16 %v784_v0 }
  0x9a   : > { %v798_v12 = vsel %vm449_vm3, %v797_v5, %v796_v4  ;;  %v801_v13 = vrot.slane %v790_v2, 3  ;;  %v1430_v25 = vrot.slane %v787_v47, 7  ;;  %v1432_v26 = vrot.slane %v788_v56, 6 }
  0x9b   : > { %1809 = vmatmul.mubr.msk.bf16.vlgmr.msra.gmra.mrb[0].mxu0 %vm607_vm8, %v463_v28  ;;  %v800_v15 = vsel %vm452_vm4, %v799_v9, %v798_v12  ;;  %v803_v18 = vrot.slane %v791_v8, 2  ;;  %v805_v21 = vrot.slane %v792_v10, 1  ;;  %v1434_v28 = vrot.slane %v789_v62, 5 }
  0x9c   : > { %1826 = vmatprep.mubr.msk.bf16.mxu0 %vm2107_vm0, %v2105_v1  ;;  %v802_v19 = vsel %vm455_vm5, %v801_v13, %v800_v15  ;;  %v1438_v37 = vrot.slane %v791_v8, 3  ;;  %v1440_v40 = vrot.slane %v792_v10, 2  ;;  %v1229_v49 = vrot.slane %v2377_v16, 1 }
  0x9d   : > { %v804_v24 = vsel %vm458_vm6, %v803_v18, %v802_v19  ;;  %v1231_v50 = vrot.slane %v2383_v20, 7  ;;  %v1233_v52 = vrot.slane %v2387_v23, 6  ;;  %v1235_v55 = vrot.slane %v2392_v27, 5 }
  0x9e   : > { %v1230_v51 = vsel %vm443_vm1, %v2379_v17, %v1229_v49  ;;  %v1086_v58 = vrot.slane %v2418_v48, 1  ;;  %v1237_v59 = vrot.slane %v2396_v30, 4  ;;  %v1088_v20 = vrot.slane %v2429_v57, 7  ;;  %v916_v49 = vld [vmem:[%s2543_s24 + $0x2] sm:$0x1] }
  0x9f   : > { %v1232_v54 = vsel %vm446_vm2, %v1231_v50, %v1230_v51  ;;  %v1239_v23 = vrot.slane %v2402_v34, 3  ;;  %v1090_v0 = vrot.slane %v2434_v61, 6  ;;  %v1241_v30 = vrot.slane %v2408_v39, 2  ;;  %v922_v50 = vld [vmem:[%s2543_s24 + $0x4] sm:$0x1] }
  0xa0   : > { %v1234_v56 = vsel %vm449_vm3, %v1233_v52, %v1232_v54  ;;  %v1087_v17 = vsel %vm443_vm1, %v2424_v53, %v1086_v58  ;;  %v1092_v57 = vrot.slane %v2439_v3, 5  ;;  %v1094_v34 = vrot.slane %v2443_v7, 4  ;;  %v925_v58 = vld [vmem:[%s2543_s24 + $0x5] sm:$0x1] }
  0xa1   : > { %v1236_v16 = vsel %vm452_vm4, %v1235_v55, %v1234_v56  ;;  %v1089_v48 = vsel %vm446_vm2, %v1088_v20, %v1087_v17  ;;  %v1096_v61 = vrot.slane %v2449_v11, 3  ;;  %v1098_v39 = vrot.slane %v2453_v14, 2  ;;  %v919_v56 = vld [vmem:[%s2543_s24 + $0x3] sm:$0x1] }
  0xa2   : > { %v1238_v27 = vsel %vm455_vm5, %v1237_v59, %v1236_v16  ;;  %v928_v59 = vld [vmem:[%s2543_s24 + $0x6] sm:$0x1] }
 0x16e   : > { %v2467_v29 = vpop.f32.mrb[0].mxu0 }
 0x16f   : > { %v1810_v31 = vpop.f32.mrb[1].mxu0  ;;  %v655_v32 = vsel %vm654_vm9, %v2467_v29, -inf }
 0x170   : > { %656 = vmax.xlane.f32.xlu0 %v655_v32  ;;  %v651_v33 = vpop.f32.mrb[2].mxu0  ;;  %v806_v31 = vsel %vm461_vm7, %v805_v21, %v804_v24  ;;  %v1429_v32 = vsel %vm443_vm1, %v786_v44, %v1428_v22 }
 0x171   : > { %v1811_v35 = vpop.f32.mrb[3].mxu0  ;;  %v1436_v33 = vrot.slane %v790_v2, 4  ;;  %v1431_v36 = vsel %vm446_vm2, %v1430_v25, %v1429_v32  ;;  %v1240_v2 = vsel %vm458_vm6, %v1239_v23, %v1238_v27  ;;  %v931_v27 = vld [vmem:[%s2543_s24 + $0x7] sm:$0x1] }
 0x172   : > { %v807_v35 = vpack.c.b16 %v806_v31, %v806_v31  ;;  %v1433_v38 = vsel %vm449_vm3, %v1432_v26, %v1431_v36  ;;  %v1242_v53 = vsel %vm461_vm7, %v1241_v30, %v1240_v2 }
 0x173   : > { %v1435_v42 = vsel %vm452_vm4, %v1434_v28, %v1433_v38  ;;  %v1243_v5 = vpack.c.b16 %v1242_v53, %v1242_v53  ;;  %v910_v38 = vld [vmem:[%s2543_s24] sm:$0x1] }
 0x174   : > { %v813_v41 = vsel %vm811_vm10, %v807_v35, 0  ;;  %v1437_v43 = vsel %vm455_vm5, %v1436_v33, %v1435_v42 }
 0x175   : > { %1813 = vmatpush3.bf16.msra.mxu1 %v813_v41  ;;  %v1439_v45 = vsel %vm458_vm6, %v1438_v37, %v1437_v43  ;;  %v1248_v3 = vsel %vm607_vm8, %v1243_v5, 0  ;;  %v913_v41 = vld [vmem:[%s2543_s24 + $0x1] sm:$0x1] }
 0x176   : > { %1818 = vmatprep.subr.bf16.mxu1 %v2105_v1  ;;  %v1441_v44 = vsel %vm461_vm7, %v1440_v40, %v1439_v45 }
 0x177   : > { %v1442_v46 = vpack.c.b16 %v1441_v44, %v1441_v44 }
 0x179   : > { %v1447_v47 = vsel %vm811_vm10, %v1442_v46, 0 }
 0x17a   : > { %1825 = vmatpush3.bf16.msra.mxu0 %v1447_v47 }
 0x1fd   : > { %v657_v60 = vpop.xlane.xlu0 %656 }
 0x1fe   : > { %v658_v62 = vsub.f32 %v2467_v29, %v657_v60  ;;  %v1091_v29 = vsel %vm449_vm3, %v1090_v0, %v1089_v48 }
 0x1ff   : > { %v1093_v4 = vsel %vm452_vm4, %v1092_v57, %v1091_v29 }
 0x200   : > { %v659_v63 = vmul.f32 1.442695, %v658_v62  ;;  %v1095_v8 = vsel %vm455_vm5, %v1094_v34, %v1093_v4 }
 0x201   : > { %v1097_v13 = vsel %vm458_vm6, %v1096_v61, %v1095_v8 }
 0x202   : > { %1911 = vpow2.f32 %v659_v63  ;;  %v1099_v7 = vsel %vm461_vm7, %v1098_v39, %v1097_v13 }
 0x203   : > { %v1100_v11 = vpack.c.b16 %v1099_v7, %v1099_v7 }
 0x20c   : > { %v1912_v9 = vpop.eup %1911 }
 0x20d   : > { %v661_v10 = vsel %vm654_vm9, %v1912_v9, 0.0  ;;  %v664_v12 = vpack.c.bf16 %v1912_v9, %v1912_v9 }
 0x20e   : > { %662 = vadd.xlane.f32.xlu1 %v661_v10 }
 0x20f   : > { %1815 = vmatmul.mubr.msk.bf16.vlgmr.msra.gmra.mrb[0].mxu1 %vm654_vm9, %v664_v12 }
 0x210   : > { %1819 = vmatpush3.bf16.xpose.msra.mxu1 %v1248_v3  ;;  %1820 = vmatprep.mubr.msk.bf16.mxu1 %vm2107_vm0, %v2105_v1 }
 0x217   : > { %1821 = vmatmul.mubr.msk.bf16.vlgmr.msra.gmra.mrb[4].mxu1 %vm607_vm8, %v1100_v11 }
 0x29b   : > { %v663_v14 = vpop.xlane.xlu1 %662 }
 0x29c   : > { %1913 = vrcp.f32 %v663_v14 }
 0x2a6   : > { %v1914_v15 = vpop.eup %1913 }
 0x2e2   : > { %v849_v18 = vpop.f32.mrb[0].mxu1 }
 0x2e3   : > { %v856_v19 = vmul.f32 %v1914_v15, %v849_v18  ;;  %v1816_v21 = vpop.f32.mrb[1].mxu1 }
 0x2e4   : > { %v852_v22 = vpop.f32.mrb[2].mxu1 }
 0x2e5   : > { %v857_v24 = vpack.c.bf16 %v856_v19, %v856_v19  ;;  %v1817_v25 = vpop.f32.mrb[3].mxu1 }
 0x2e7   : > { %v865_v26 = vrot.slane %v857_v24, %v2366_v6 }
 0x2e9   : > { %v866_v1 = vcombine.high %v865_v26, %v865_v26  ;;  %v873_v28 = vrot.slane %v865_v26, %v2366_v6 }
 0x2ea   : > { %v1284_v31 = vpop.f32.mrb[4].mxu1 }
 0x2eb   : > { %v880_v32 = vrot.slane %v866_v1, %v2366_v6  ;;  %v881_v33 = vcombine.high %v873_v28, %v873_v28  ;;  %v884_v35 = vunpack.i.h.s16 %v873_v28  ;;  %v1758_v36 = vpack.i.b16 %v873_v28, %v873_v28  ;;  %v1822_v40 = vpop.f32.mrb[5].mxu1 }
 0x2ec   : > { %v1290_v42 = vsel %vm654_vm9, %v1284_v31, -inf  ;;  %v1287_v43 = vpop.f32.mrb[6].mxu1 }
 0x2ed   : > { %v882_v45 = vcombine.high %v880_v32, %v880_v32  ;;  %v886_v44 = vunpack.i.h.s16 %v880_v32  ;;  %v888_v46 = vunpack.i.h.s16 %v881_v33  ;;  %v892_v47 = vpack.i.b16 %v884_v35, %v884_v35  ;;  %1291 = vmax.xlane.f32.xlu0 %v1290_v42  ;;  %v1823_v51 = vpop.f32.mrb[7].mxu1 }
 0x2ee   : > { %v1759_v52 = vpack.i.b16 %v880_v32, %v880_v32  ;;  %v1760_v54 = vpack.i.b16 %v881_v33, %v881_v33  ;;  %v911_v55 = vsel %vm2538_vm13, %v1758_v36, %v910_v38 }
 0x2ef   : > { %v890_v60 = vunpack.i.h.s16 %v882_v45  ;;  %v894_v16 = vpack.i.b16 %v886_v44, %v886_v44  ;;  %v896_v20 = vpack.i.b16 %v888_v46, %v888_v46  ;;  %v1761_v62 = vpack.i.b16 %v882_v45, %v882_v45  ;;  %912 = vst [vmem:[%s2543_s24] sm:$0x1] %v911_v55 }
 0x2f0   : > { %v914_v17 = vsel %vm2538_vm13, %v892_v47, %v913_v41  ;;  %v917_v23 = vsel %vm2538_vm13, %v1759_v52, %v916_v49  ;;  %v923_v63 = vsel %vm2538_vm13, %v1760_v54, %v922_v50 }
 0x2f1   : > { %v898_v0 = vpack.i.b16 %v890_v60, %v890_v60  ;;  %915 = vst [vmem:[%s2543_s24 + $0x1] sm:$0x1] %v914_v17  ;;  %918 = vst [vmem:[%s2543_s24 + $0x2] sm:$0x1] %v917_v23  ;;  %v920_v48 = vsel %vm2538_vm13, %v894_v16, %v919_v56  ;;  %v926_v30 = vsel %vm2538_vm13, %v896_v20, %v925_v58 }
 0x2f2   : > { %924 = vst [vmem:[%s2543_s24 + $0x4] sm:$0x1] %v923_v63  ;;  %v929_v2 = vsel %vm2538_vm13, %v1761_v62, %v928_v59  ;;  %921 = vst [vmem:[%s2543_s24 + $0x3] sm:$0x1] %v920_v48 }
 0x2f3   : > { %927 = vst [vmem:[%s2543_s24 + $0x5] sm:$0x1] %v926_v30  ;;  %930 = vst [vmem:[%s2543_s24 + $0x6] sm:$0x1] %v929_v2  ;;  %v932_v57 = vsel %vm2538_vm13, %v898_v0, %v931_v27 }
 0x2f4   : > { %933 = vst [vmem:[%s2543_s24 + $0x7] sm:$0x1] %v932_v57 }
 0x2f8   : > { %v1546_v35 = vld [vmem:[%s2543_s24 + $0x1] sm:$0x1]  ;;  %v1549_v41 = vld [vmem:[%s2543_s24 + $0x2] sm:$0x1] }
 0x2f9   : > { %v1552_v42 = vld [vmem:[%s2543_s24 + $0x3] sm:$0x1]  ;;  %v1555_v43 = vld [vmem:[%s2543_s24 + $0x4] sm:$0x1] }
 0x2fa   : > { %v1558_v47 = vld [vmem:[%s2543_s24 + $0x5] sm:$0x1]  ;;  %v1561_v49 = vld [vmem:[%s2543_s24 + $0x6] sm:$0x1] }
 0x2fb   : > { %v1564_v55 = vld [vmem:[%s2543_s24 + $0x7] sm:$0x1] }
 0x37a   : > { %v1292_v29 = vpop.xlane.xlu0 %1291 }
 0x37b   : > { %v1293_v53 = vsub.f32 %v1284_v31, %v1292_v29  ;;  %v1543_v31 = vld [vmem:[%s2543_s24] sm:$0x1] }
 0x37d   : > { %v1294_v34 = vmul.f32 1.442695, %v1293_v53 }
 0x37f   : > { %1915 = vpow2.f32 %v1294_v34 }
 0x389   : > { %v1916_v4 = vpop.eup %1915 }
 0x38a   : > { %v1296_v5 = vsel %vm654_vm9, %v1916_v4, 0.0  ;;  %v1299_v61 = vpack.c.bf16 %v1916_v4, %v1916_v4 }
 0x38b   : > { %1297 = vadd.xlane.f32.xlu1 %v1296_v5 }
 0x38c   : > { %1827 = vmatmul.mubr.msk.bf16.vlgmr.msra.gmra.mrb[4].mxu0 %vm654_vm9, %v1299_v61 }
 0x418   : > { %v1298_v8 = vpop.xlane.xlu1 %1297 }
 0x419   : > { %1917 = vrcp.f32 %v1298_v8 }
 0x423   : > { %v1918_v9 = vpop.eup %1917 }
 0x45f   : > { %v1483_v39 = vpop.f32.mrb[4].mxu0 }
 0x460   : > { %v1490_v10 = vmul.f32 %v1918_v9, %v1483_v39  ;;  %v1828_v12 = vpop.f32.mrb[5].mxu0 }
 0x461   : > { %v1486_v3 = vpop.f32.mrb[6].mxu0 }
 0x462   : > { %v1491_v13 = vpack.c.bf16 %v1490_v10, %v1490_v10  ;;  %v1829_v7 = vpop.f32.mrb[7].mxu0 }
 0x464   : > { %v1499_v11 = vrot.slane %v1491_v13, %v2366_v6 }
 0x466   : > { %v1500_v14 = vcombine.high %v1499_v11, %v1499_v11  ;;  %v1507_v15 = vrot.slane %v1499_v11, %v2366_v6 }
 0x468   : > { %v1514_v18 = vrot.slane %v1500_v14, %v2366_v6  ;;  %v1515_v19 = vcombine.high %v1507_v15, %v1507_v15  ;;  %v1518_v21 = vunpack.i.h.s16 %v1507_v15  ;;  %v1788_v22 = vpack.i.b16 %v1507_v15, %v1507_v15 }
 0x46a   : > { %v1516_v25 = vcombine.high %v1514_v18, %v1514_v18  ;;  %v1520_v26 = vunpack.i.h.s16 %v1514_v18  ;;  %v1522_v1 = vunpack.i.h.s16 %v1515_v19  ;;  %v1526_v28 = vpack.i.b16 %v1518_v21, %v1518_v21 }
 0x46b   : > { %v1789_v32 = vpack.i.b16 %v1514_v18, %v1514_v18  ;;  %v1790_v33 = vpack.i.b16 %v1515_v19, %v1515_v19  ;;  %v1544_v6 = vsel %vm2584_vm15, %v1788_v22, %v1543_v31 }
 0x46c   : > { %v1524_v36 = vunpack.i.h.s16 %v1516_v25  ;;  %v1528_v37 = vpack.i.b16 %v1520_v26, %v1520_v26  ;;  %v1530_v38 = vpack.i.b16 %v1522_v1, %v1522_v1  ;;  %v1791_v40 = vpack.i.b16 %v1516_v25, %v1516_v25  ;;  %1545 = vst [vmem:[%s2543_s24] sm:$0x1] %v1544_v6 }
 0x46d   : > { %v1547_v45 = vsel %vm2584_vm15, %v1526_v28, %v1546_v35  ;;  %v1550_v44 = vsel %vm2584_vm15, %v1789_v32, %v1549_v41  ;;  %v1556_v46 = vsel %vm2584_vm15, %v1790_v33, %v1555_v43 }
 0x46e   : > { %v1532_v50 = vpack.i.b16 %v1524_v36, %v1524_v36  ;;  %1548 = vst [vmem:[%s2543_s24 + $0x1] sm:$0x1] %v1547_v45  ;;  %1551 = vst [vmem:[%s2543_s24 + $0x2] sm:$0x1] %v1550_v44  ;;  %v1553_v51 = vsel %vm2584_vm15, %v1528_v37, %v1552_v42  ;;  %v1559_v52 = vsel %vm2584_vm15, %v1530_v38, %v1558_v47 }
 0x46f   : > { %1557 = vst [vmem:[%s2543_s24 + $0x4] sm:$0x1] %v1556_v46  ;;  %v1562_v54 = vsel %vm2584_vm15, %v1791_v40, %v1561_v49  ;;  %1554 = vst [vmem:[%s2543_s24 + $0x3] sm:$0x1] %v1553_v51 }
 0x470   : > { %1560 = vst [vmem:[%s2543_s24 + $0x5] sm:$0x1] %v1559_v52  ;;  %1563 = vst [vmem:[%s2543_s24 + $0x6] sm:$0x1] %v1562_v54  ;;  %v1565_v56 = vsel %vm2584_vm15, %v1532_v50, %v1564_v55 }
 0x471   : > { %1566 = vst [vmem:[%s2543_s24 + $0x7] sm:$0x1] %v1565_v56 }
 0x472   : > { %2024 = shalt.err (!%p2021_p13)
}
 0x473   : > { %s2025_s29 = scalar_lea.hbm %s2618_s28, 128  ;;  %s2029_s0 = scalar_lea.hbm %s2679_s3, 256 }
 0x474   : > { %p2026_p11 = scmp.ne.s32.totalorder %s2618_s28, %s2025_s29  ;;  %p2030_p5 = scmp.lt.u32.totalorder %s2618_s28, %s2679_s3 }
 0x475   : > { %p2031_p2 = scmp.lt.u32.totalorder %s2029_s0, %s2025_s29  ;;  %p2033_p0 = scmp.lt.u32.totalorder %s2025_s29, %s2618_s28 }
 0x476   : > { %p2027_p7 = pnand %p2026_p11, %p2715_p6 }
 0x477   : > { %p2032_p1 = por %p2031_p2, %p2030_p5 }
 0x478   : > { %p2028_p3 = pneg %p2027_p7 }
 0x479   : > { %p2034_p8 = por %p2033_p0, %p2032_p1 }
 0x47b   : > { %p2035_p9 = pnand %p2034_p8, %p2028_p3 }
 0x47d   : > { %2038 = shalt.err (!%p2035_p9)
}
 0x47e   : > { %s2109_s8 = smov 16   ;;  %s2110_s19 = smov 1  }
 0x47f   : > { %1837 = dma.vmem_to_hbm [thread:$0]  (%p2715_p6), %s2620_s11, 128, %s2618_s28, %s1568_s30, %s2109_s8, %s2109_s8, %s2110_s19  }
 0x480 PF: > { %s1598_s9 = sand.u32 1, %s2077_s12   ;;  %p2716_p12 = scmp.ne.s32.totalorder %s2699_s27, 0 }
 0x481   : > { %p2717_p4 = scmp.ge.s32.totalorder %s2097_s17, 2  ;;  %s1599_s16 = scalar_lea.sflag [#allocation4], %s1598_s9 }
 0x483   : > { %p1850_p10 = pnand %p2717_p4, %p2716_p12 }
 0x485   : > { %2072 = dma.done.wait (!%p1850_p10), %s1599_s16, 128  }
 0x486   : > { %2074 = vsyncadd (!%p1850_p10), %s1599_s16, 4294967168  ;;  %s22_s17 = sadd.s32 1, %s2097_s17   ;;  %s2718_s18 = sld [smem:[#allocation14_spill]] }
 0x487   : > { %p19_p13 = scmp.ge.s32.totalorder %s22_s17, 4   ;;  %s2719_s15 = sld [smem:[#allocation12_spill]] }
 0x488   : > { %s2720_s16 = sld [smem:[#allocation13_spill]]  ;;  %s2721_s12 = smov %s2081_s13 }
 0x489   : > { %s2722_s13 = smov %s2085_s14  ;;  %21 = sbr.rel (!%p19_p13) target bundleno = 11 (0xb), region = 101 }
 0x48c   : > { %s2723_s14 = smov %s2718_s18 }
 0x490   :  { %1604 = vsyncpa [#allocation3], 1 }
 0x491   :  { %1606 = vsyncpa [#allocation3 + $0x1], 1 }
 0x492   :  { %1607 = vsyncpa [#allocation6], 1 }
 0x493   :  { %1609 = vsyncpa [#allocation6 + $0x1], 1 }
 0x494   :  { %1610 = vsyncpa [#allocation4], 1 }
 0x495   :  { %1612 = vsyncpa [#allocation4 + $0x1], 1 }

// kernel: bert_mid_layer_forward.16
= control target key start
LH: loop header
LB: loop body
LE: loop exit
PB: predicated region body
PF: predicated region fallthrough
CT: control target
= control target key end

     0   :  { %11 = vsyncpa [#allocation4], 0  ;;  %s657_s0 = inlined_call_operand.hbm [shape: bf16[16,64], index: 0, kind: input, shape index: {}]   ;;  %s658_s1 = inlined_call_operand.hbm [shape: bf16[64,32], index: 1, kind: input, shape index: {}]   ;;  %s659_s2 = inlined_call_operand.hbm [shape: f32[1,32], index: 2, kind: input, shape index: {}]   ;;  %s660_s3 = inlined_call_operand.hbm [shape: f32[16,32], index: 3, kind: input, shape index: {}]   ;;  %s661_s4 = inlined_call_operand.hbm [shape: f32[1,32], index: 4, kind: input, shape index: {}]   ;;  %s662_s5 = inlined_call_operand.hbm [shape: f32[1,32], index: 5, kind: input, shape index: {}]   ;;  %s663_s6 = inlined_call_operand.hbm [shape: f32[16,32], index: 6, kind: output, shape index: {}]  }
   0x1   :  { %12 = vsyncpa [#allocation7], 0 }
   0x2   :  { %13 = vsyncpa [#allocation10], 0 }
   0x3   :  { %14 = vsyncpa [#allocation13], 0 }
   0x4   :  { %15 = vsyncpa [#allocation5], 0  ;;  %s496_s21 = smov [#allocation6]   ;;  %s497_s23 = smov [#allocation9]  }
   0x5   :  { %s33_s22 = sshll.u32 %s496_s21, 4  ;;  %s55_s24 = sshll.u32 %s497_s23, 4  ;;  %s34_s22 = int_to_ptr.vmem [resolvable:$true] %s33_s22  ;;  %s544_s24 = int_to_ptr.vmem [resolvable:$true] %s55_s24 }
   0x6   :  { %s332_s27 = scalar_lea.hbm %s658_s1, 512 }
   0x7   :  { %p333_p0 = scmp.ne.s32.totalorder %s658_s1, %s332_s27  ;;  %p336_p1 = scmp.lt.u32.totalorder %s332_s27, %s658_s1 }
   0x9   :  { %p338_p2 = pnand %p336_p1, %p333_p0 }
   0xb   :  { %341 = shalt.err (!%p338_p2)
}
   0xc   :  { %s342_s8 = scalar_lea.vmem %s34_s22, 512  ;;  %p347_p4 = scmp.lt.s32.totalorder %s34_s22, %s34_s22 }
   0xd   :  { %p343_p3 = scmp.ne.s32.totalorder %s34_s22, %s342_s8  ;;  %p348_p5 = scmp.lt.s32.totalorder %s342_s8, %s342_s8 }
   0xf   :  { %p349_p6 = por %p348_p5, %p347_p4 }
  0x11   :  { %p350_p7 = pnand %p349_p6, %p343_p3 }
  0x13   :  { %353 = shalt.err (!%p350_p7)
}
  0x14   :  { %s498_s9 = smov 64   ;;  %s499_s10 = smov 4  }
  0x15   :  { %39 = dma.hbm_to_vmem [thread:$0]  %s658_s1, 512, %s34_s22, [#allocation7], %s498_s9, %s498_s9, %s499_s10  }
  0x16   :  { %s354_s15 = scalar_lea.hbm %s660_s3, 256 }
  0x17   :  { %p355_p8 = scmp.ne.s32.totalorder %s660_s3, %s354_s15  ;;  %p358_p9 = scmp.lt.u32.totalorder %s354_s15, %s660_s3 }
  0x19   :  { %p360_p10 = pnand %p358_p9, %p355_p8 }
  0x1b   :  { %363 = shalt.err (!%p360_p10)
}
  0x1c   :  { %s364_s20 = scalar_lea.vmem %s544_s24, 256  ;;  %p369_p12 = scmp.lt.s32.totalorder %s544_s24, %s544_s24 }
  0x1d   :  { %p365_p11 = scmp.ne.s32.totalorder %s544_s24, %s364_s20  ;;  %p370_p13 = scmp.lt.s32.totalorder %s364_s20, %s364_s20 }
  0x1f   :  { %p371_p0 = por %p370_p13, %p369_p12 }
  0x21   :  { %p372_p1 = pnand %p371_p0, %p365_p11 }
  0x23   :  { %375 = shalt.err (!%p372_p1)
}
  0x24   :  { %s500_s1 = smov 128   ;;  %s501_s21 = smov 8  }
  0x25   :  { %61 = dma.hbm_to_vmem [thread:$0]  %s660_s3, 256, %s544_s24, [#allocation10], %s500_s1, %s500_s1, %s501_s21  }
  0x26   :  { %s502_s25 = smov [#allocation3]   ;;  %s503_s27 = smov [#allocation8]  }
  0x27   :  { %s21_s26 = sshll.u32 %s502_s25, 4  ;;  %s46_s28 = sshll.u32 %s503_s27, 4  ;;  %s22_s26 = int_to_ptr.vmem [resolvable:$true] %s21_s26  ;;  %s47_s28 = int_to_ptr.vmem [resolvable:$true] %s46_s28 }
  0x28   :  { %s376_s7 = scalar_lea.hbm %s657_s0, 128 }
  0x29   :  { %p377_p2 = scmp.ne.s32.totalorder %s657_s0, %s376_s7  ;;  %p380_p3 = scmp.lt.u32.totalorder %s376_s7, %s657_s0 }
  0x2b   :  { %p382_p4 = pnand %p380_p3, %p377_p2 }
  0x2d   :  { %385 = shalt.err (!%p382_p4)
}
  0x2e   :  { %s386_s3 = scalar_lea.vmem %s22_s26, 128  ;;  %p391_p6 = scmp.lt.s32.totalorder %s22_s26, %s22_s26 }
  0x2f   :  { %p387_p5 = scmp.ne.s32.totalorder %s22_s26, %s386_s3  ;;  %p392_p7 = scmp.lt.s32.totalorder %s386_s3, %s386_s3 }
  0x31   :  { %p393_p8 = por %p392_p7, %p391_p6 }
  0x33   :  { %p394_p9 = pnand %p393_p8, %p387_p5 }
  0x35   :  { %397 = shalt.err (!%p394_p9)
}
  0x36   :  { %27 = dma.hbm_to_vmem [thread:$0]  %s657_s0, 128, %s22_s26, [#allocation4], %s498_s9, %s498_s9, %s499_s10  }
  0x37   :  { %s398_s17 = scalar_lea.hbm %s659_s2, 16 }
  0x38   :  { %p399_p10 = scmp.ne.s32.totalorder %s659_s2, %s398_s17  ;;  %p402_p11 = scmp.lt.u32.totalorder %s398_s17, %s659_s2 }
  0x3a   :  { %p404_p12 = pnand %p402_p11, %p399_p10 }
  0x3c   :  { %407 = shalt.err (!%p404_p12)
}
  0x3d   :  { %s408_s23 = scalar_lea.vmem %s47_s28, 16  ;;  %s412_s25 = scalar_lea.vmem %s47_s28, 32 }
  0x3e   :  { %p409_p13 = scmp.ne.s32.totalorder %s47_s28, %s408_s23  ;;  %p413_p0 = scmp.lt.s32.totalorder %s47_s28, %s47_s28 }
  0x3f   :  { %p414_p1 = scmp.lt.s32.totalorder %s412_s25, %s408_s23 }
  0x41   :  { %p415_p2 = por %p414_p1, %p413_p0 }
  0x43   :  { %p416_p3 = pnand %p415_p2, %p409_p13 }
  0x45   :  { %419 = shalt.err (!%p416_p3)
}
  0x46   :  { %49 = dma.hbm_to_vmem [thread:$0]  %s659_s2, 16, %s47_s28, [#allocation7]  }
  0x47   :  { %s504_s10 = smov [#allocation11]   ;;  %s505_s27 = smov [#allocation12]  }
  0x48   :  { %s68_s26 = sshll.u32 %s504_s10, 4  ;;  %s78_s29 = sshll.u32 %s505_s27, 4  ;;  %s69_s26 = int_to_ptr.vmem [resolvable:$true] %s68_s26  ;;  %s79_s29 = int_to_ptr.vmem [resolvable:$true] %s78_s29 }
  0x49   :  { %s420_s8 = scalar_lea.hbm %s661_s4, 16 }
  0x4a   :  { %p421_p4 = scmp.ne.s32.totalorder %s661_s4, %s420_s8  ;;  %p424_p5 = scmp.lt.u32.totalorder %s420_s8, %s661_s4 }
  0x4c   :  { %p426_p6 = pnand %p424_p5, %p421_p4 }
  0x4e   :  { %429 = shalt.err (!%p426_p6)
}
  0x4f   :  { %s430_s2 = scalar_lea.vmem %s69_s26, 16  ;;  %s434_s28 = scalar_lea.vmem %s69_s26, 32 }
  0x50   :  { %p431_p7 = scmp.ne.s32.totalorder %s69_s26, %s430_s2  ;;  %p435_p8 = scmp.lt.s32.totalorder %s69_s26, %s69_s26 }
  0x51   :  { %p436_p9 = scmp.lt.s32.totalorder %s434_s28, %s430_s2 }
  0x53   :  { %p437_p10 = por %p436_p9, %p435_p8 }
  0x55   :  { %p438_p11 = pnand %p437_p10, %p431_p7 }
  0x57   :  { %441 = shalt.err (!%p438_p11)
}
  0x58   :  { %71 = dma.hbm_to_vmem [thread:$0]  %s661_s4, 16, %s69_s26, [#allocation10]  }
  0x59   :  { %s442_s17 = scalar_lea.hbm %s662_s5, 16 }
  0x5a   :  { %p443_p12 = scmp.ne.s32.totalorder %s662_s5, %s442_s17  ;;  %p446_p13 = scmp.lt.u32.totalorder %s442_s17, %s662_s5 }
  0x5c   :  { %p448_p0 = pnand %p446_p13, %p443_p12 }
  0x5e   :  { %451 = shalt.err (!%p448_p0)
}
  0x5f   :  { %s452_s23 = scalar_lea.vmem %s79_s29, 16  ;;  %s456_s25 = scalar_lea.vmem %s79_s29, 32 }
  0x60   :  { %p453_p1 = scmp.ne.s32.totalorder %s79_s29, %s452_s23  ;;  %p457_p2 = scmp.lt.s32.totalorder %s79_s29, %s79_s29 }
  0x61   :  { %p458_p3 = scmp.lt.s32.totalorder %s456_s25, %s452_s23 }
  0x63   :  { %p459_p4 = por %p458_p3, %p457_p2 }
  0x65   :  { %p460_p5 = pnand %p459_p4, %p453_p1 }
  0x67   :  { %463 = shalt.err (!%p460_p5)
}
  0x68   :  { %81 = dma.hbm_to_vmem [thread:$0]  %s662_s5, 16, %s79_s29, [#allocation13]  }
  0x69   :  { %486 = dma.done.wait [#allocation4], 128  }
  0x6a   :  { %487 = vsyncadd [#allocation4], 4294967168 }
  0x6b   :  { %488 = dma.done.wait [#allocation7], 528  }
  0x6c   :  { %489 = vsyncadd [#allocation7], 4294966768 }
  0x6d   :  { %490 = dma.done.wait [#allocation10], 272  }
  0x6e   :  { %491 = vsyncadd [#allocation10], 4294967024 }
  0x6f   :  { %492 = dma.done.wait [#allocation13], 16  }
  0x70   :  { %493 = vsyncadd [#allocation13], 4294967280  ;;  %vm105_vm0 = vcmask 261120   ;;  %v506_v0 = vmov 0.0   ;;  %vm507_vm1 = vmmov 0   ;;  %v323_v1 = vld [vmem:[#allocation6] sm:$0xff]  }
  0x71   :  { %298 = vmatprep.subr.bf16.mxu0 %v506_v0  ;;  %306 = vmatprep.mubr.msk.bf16.mxu0 %vm507_vm1, %v506_v0  ;;  %106 = vst.msk [vmem:[#allocation2] sm:$0xff] %vm105_vm0, %v506_v0  ;;  %107 = vst.msk [vmem:[#allocation2 + $0x8] sm:$0xff] %vm105_vm0, %v506_v0  ;;  %v324_v2 = vld [vmem:[#allocation6 + $0x8] sm:$0xff]   ;;  %v325_v3 = vld [vmem:[#allocation6 + $0x10] sm:$0xff]   ;;  %vm149_vm2 = vcmask 523264   ;;  %s508_s5 = smov [#allocation14]  }
  0x72   :  { %299 = vmatpush3.bf16.msra.mxu0 %v323_v1  ;;  %v326_v4 = vld [vmem:[#allocation6 + $0x18] sm:$0xff]   ;;  %v290_v14 = vld [vmem:[#allocation8] ss:$0 sm:$0xff]  ;;  %v213_v16 = vld [vmem:[#allocation9] sm:$0xff]  ;;  %s269_s9 = sshll.u32 %s508_s5, 4  ;;  %s270_s9 = int_to_ptr.vmem [resolvable:$true] %s269_s9 }
  0x73   :  { %300 = vmatprep.subr.bf16.mxu0 %v506_v0  ;;  %v327_v5 = vld [vmem:[#allocation3] sm:$0xff]   ;;  %v214_v19 = vld [vmem:[#allocation9 + $0x8] sm:$0xff]  ;;  %v291_v42 = vld [vmem:[#allocation11] ss:$0 sm:$0xff]  ;;  %s464_s10 = scalar_lea.vmem %s270_s9, 256  ;;  %p469_p7 = scmp.lt.s32.totalorder %s270_s9, %s270_s9 }
  0x74   :  { %v292_v44 = vld [vmem:[#allocation12] ss:$0 sm:$0xff]  ;;  %p465_p6 = scmp.ne.s32.totalorder %s270_s9, %s464_s10  ;;  %p470_p8 = scmp.lt.s32.totalorder %s464_s10, %s464_s10 }
  0x76   :  { %301 = vmatpush3.bf16.msra.mxu0 %v324_v2  ;;  %p471_p9 = por %p470_p8, %p469_p7 }
  0x77   :  { %302 = vmatprep.subr.bf16.mxu0 %v506_v0 }
  0x78   :  { %v108_v6 = vld [vmem:[#allocation2] sm:$0xff]  ;;  %v109_v8 = vld [vmem:[#allocation2 + $0x8] sm:$0xff]  ;;  %p472_p10 = pnand %p471_p9, %p465_p6 }
  0x7a   :  { %303 = vmatpush3.bf16.msra.mxu0 %v325_v3 }
  0x7b   :  { %304 = vmatprep.subr.bf16.mxu0 %v506_v0 }
  0x7e   :  { %305 = vmatpush3.bf16.msra.mxu0 %v326_v4 }
  0x81   :  { %307 = vmatmul.mubr.msk.bf16.vlgmr.msra.gmra.mrb[0].mxu0 %vm149_vm2, %v327_v5 }
 0x154   :  { %v187_v7 = vpop.f32.mrb[0].mxu0 }
 0x155   :  { %v194_v9 = vadd.f32 %v187_v7, %v108_v6  ;;  %v308_v10 = vpop.f32.mrb[1].mxu0 }
 0x156   :  { %v190_v11 = vpop.f32.mrb[2].mxu0 }
 0x157   :  { %197 = vst.msk [vmem:[#allocation2] sm:$0xff] %vm105_vm0, %v194_v9  ;;  %v195_v12 = vadd.f32 %v190_v11, %v109_v8  ;;  %v309_v13 = vpop.f32.mrb[3].mxu0 }
 0x159   :  { %198 = vst.msk [vmem:[#allocation2 + $0x8] sm:$0xff] %vm105_vm0, %v195_v12 }
 0x15e   :  { %v202_v15 = vld [vmem:[#allocation2] sm:$0xff] }
 0x15f   :  { %v211_v17 = vadd.f32 %v290_v14, %v202_v15 }
 0x160   :  { %v203_v18 = vld [vmem:[#allocation2 + $0x8] sm:$0xff] }
 0x161   :  { %v215_v20 = vadd.f32 %v213_v16, %v211_v17  ;;  %v212_v21 = vadd.f32 %v290_v14, %v203_v18 }
 0x163   :  { %v217_v22 = vsel %vm105_vm0, %v215_v20, 0.0  ;;  %v216_v23 = vadd.f32 %v214_v19, %v212_v21 }
 0x164   :  { %218 = vadd.xlane.f32.xlu0 %v217_v22 }
 0x165   :  { %v220_v24 = vsel %vm105_vm0, %v216_v23, 0.0 }
 0x168   :  { %221 = vadd.xlane.f32.xlu0 %v220_v24 }
 0x1f1   :  { %v219_v25 = vpop.xlane.xlu0 %218 }
 0x1f2   :  { %v224_v26 = vmul.f32 0.03125, %v219_v25 }
 0x1f4   :  { %v226_v27 = vsub.f32 %v215_v20, %v224_v26 }
 0x1f5   :  { %v222_v28 = vpop.xlane.xlu0 %221 }
 0x1f6   :  { %v225_v29 = vmul.f32 0.03125, %v222_v28  ;;  %v228_v30 = vmul.f32 %v226_v27, %v226_v27 }
 0x1f8   :  { %v227_v31 = vsub.f32 %v216_v23, %v225_v29  ;;  %v230_v32 = vsel %vm105_vm0, %v228_v30, 0.0 }
 0x1f9   :  { %231 = vadd.xlane.f32.xlu1 %v230_v32 }
 0x1fa   :  { %v229_v33 = vmul.f32 %v227_v31, %v227_v31 }
 0x1fc   :  { %v233_v34 = vsel %vm105_vm0, %v229_v33, 0.0 }
 0x1fd   :  { %234 = vadd.xlane.f32.xlu1 %v233_v34 }
 0x286   :  { %v232_v35 = vpop.xlane.xlu1 %231 }
 0x287   :  { %v236_v36 = vmul.f32 0.03125, %v232_v35 }
 0x289   :  { %v238_v37 = vadd.f32 1e-12, %v236_v36 }
 0x28a   :  { %v235_v38 = vpop.xlane.xlu1 %234 }
 0x28b   :  { %328 = vrsqrt.f32 %v238_v37  ;;  %v237_v39 = vmul.f32 0.03125, %v235_v38 }
 0x28d   :  { %v239_v40 = vadd.f32 1e-12, %v237_v39 }
 0x28f   :  { %330 = vrsqrt.f32 %v239_v40 }
 0x295   :  { %v329_v41 = vpop.eup %328 }
 0x296   :  { %v242_v43 = vmul.f32 %v329_v41, %v226_v27 }
 0x298   :  { %v251_v45 = vmul.f32 %v291_v42, %v242_v43 }
 0x299   :  { %v331_v46 = vpop.eup %330 }
 0x29a   :  { %v243_v47 = vmul.f32 %v331_v46, %v227_v31  ;;  %v260_v48 = vadd.f32 %v292_v44, %v251_v45 }
 0x29c   :  { %v252_v49 = vmul.f32 %v291_v42, %v243_v47  ;;  %262 = vst.msk [vmem:[#allocation14] sm:$0xff] %vm105_vm0, %v260_v48 }
 0x29e   :  { %v261_v50 = vadd.f32 %v292_v44, %v252_v49 }
 0x2a0   :  { %263 = vst.msk [vmem:[#allocation14 + $0x8] sm:$0xff] %vm105_vm0, %v261_v50 }
 0x2a1   :  { %475 = shalt.err (!%p472_p10)
}
 0x2a2   :  { %s476_s29 = scalar_lea.hbm %s663_s6, 256 }
 0x2a3   :  { %p477_p11 = scmp.ne.s32.totalorder %s663_s6, %s476_s29  ;;  %p480_p12 = scmp.lt.u32.totalorder %s476_s29, %s663_s6 }
 0x2a5   :  { %p482_p13 = pnand %p480_p12, %p477_p11 }
 0x2a7   :  { %485 = shalt.err (!%p482_p13)
}
 0x2a8   :  { %275 = dma.vmem_to_hbm [thread:$0]  %s270_s9, 256, %s663_s6, [#allocation5], %s500_s1, %s500_s1, %s501_s21  }
 0x2a9   :  { %494 = dma.done.wait [#allocation5], 256  }
 0x2aa   :  { %495 = vsyncadd [#allocation5], 4294967040 }
 0x2ab   :  { %279 = vsyncpa [#allocation4], 1 }
 0x2ac   :  { %280 = vsyncpa [#allocation7], 1 }
 0x2ad   :  { %281 = vsyncpa [#allocation10], 1 }
 0x2ae   :  { %282 = vsyncpa [#allocation13], 1 }
 0x2af   :  { %283 = vsyncpa [#allocation5], 1 }

// kernel: bert_mid_layer_forward.21
= control target key start
LH: loop header
LB: loop body
LE: loop exit
PB: predicated region body
PF: predicated region fallthrough
CT: control target
= control target key end

     0   :  { %12 = vsyncpa [#allocation4], 0  ;;  %s728_s0 = inlined_call_operand.hbm [shape: bf16[16,64], index: 0, kind: input, shape index: {}]   ;;  %s729_s1 = inlined_call_operand.hbm [shape: bf16[64,32], index: 1, kind: input, shape index: {}]   ;;  %s730_s2 = inlined_call_operand.hbm [shape: f32[1,32], index: 2, kind: input, shape index: {}]   ;;  %s731_s3 = inlined_call_operand.hbm [shape: f32[16,32], index: 3, kind: input, shape index: {}]   ;;  %s732_s4 = inlined_call_operand.hbm [shape: f32[1,32], index: 4, kind: input, shape index: {}]   ;;  %s733_s5 = inlined_call_operand.hbm [shape: f32[1,32], index: 5, kind: input, shape index: {}]   ;;  %s734_s6 = inlined_call_operand.hbm [shape: f32[16,32], index: 6, kind: input, shape index: {}]   ;;  %s735_s7 = inlined_call_operand.hbm [shape: f32[16,32], index: 7, kind: output, shape index: {}]  }
   0x1   :  { %13 = vsyncpa [#allocation7], 0 }
   0x2   :  { %14 = vsyncpa [#allocation10], 0 }
   0x3   :  { %15 = vsyncpa [#allocation13], 0 }
   0x4   :  { %16 = vsyncpa [#allocation5], 0  ;;  %s539_s24 = smov [#allocation6]   ;;  %s540_s26 = smov [#allocation9]  }
   0x5   :  { %s34_s25 = sshll.u32 %s539_s24, 4  ;;  %s56_s27 = sshll.u32 %s540_s26, 4  ;;  %s35_s25 = int_to_ptr.vmem [resolvable:$true] %s34_s25  ;;  %s593_s27 = int_to_ptr.vmem [resolvable:$true] %s56_s27 }
   0x6   :  { %s353_s30 = scalar_lea.hbm %s729_s1, 512 }
   0x7   :  { %p354_p0 = scmp.ne.s32.totalorder %s729_s1, %s353_s30  ;;  %p357_p1 = scmp.lt.u32.totalorder %s353_s30, %s729_s1 }
   0x9   :  { %p359_p2 = pnand %p357_p1, %p354_p0 }
   0xb   :  { %362 = shalt.err (!%p359_p2)
}
   0xc   :  { %s363_s12 = scalar_lea.vmem %s35_s25, 512  ;;  %p368_p4 = scmp.lt.s32.totalorder %s35_s25, %s35_s25 }
   0xd   :  { %p364_p3 = scmp.ne.s32.totalorder %s35_s25, %s363_s12  ;;  %p369_p5 = scmp.lt.s32.totalorder %s363_s12, %s363_s12 }
   0xf   :  { %p370_p6 = por %p369_p5, %p368_p4 }
  0x11   :  { %p371_p7 = pnand %p370_p6, %p364_p3 }
  0x13   :  { %374 = shalt.err (!%p371_p7)
}
  0x14   :  { %s541_s13 = smov 64   ;;  %s542_s14 = smov 4  }
  0x15   :  { %40 = dma.hbm_to_vmem [thread:$0]  %s729_s1, 512, %s35_s25, [#allocation7], %s541_s13, %s541_s13, %s542_s14  }
  0x16   :  { %s375_s19 = scalar_lea.hbm %s731_s3, 256 }
  0x17   :  { %p376_p8 = scmp.ne.s32.totalorder %s731_s3, %s375_s19  ;;  %p379_p9 = scmp.lt.u32.totalorder %s375_s19, %s731_s3 }
  0x19   :  { %p381_p10 = pnand %p379_p9, %p376_p8 }
  0x1b   :  { %384 = shalt.err (!%p381_p10)
}
  0x1c   :  { %s385_s24 = scalar_lea.vmem %s593_s27, 256  ;;  %p390_p12 = scmp.lt.s32.totalorder %s593_s27, %s593_s27 }
  0x1d   :  { %p386_p11 = scmp.ne.s32.totalorder %s593_s27, %s385_s24  ;;  %p391_p13 = scmp.lt.s32.totalorder %s385_s24, %s385_s24 }
  0x1f   :  { %p392_p0 = por %p391_p13, %p390_p12 }
  0x21   :  { %p393_p1 = pnand %p392_p0, %p386_p11 }
  0x23   :  { %396 = shalt.err (!%p393_p1)
}
  0x24   :  { %s543_s1 = smov 128   ;;  %s544_s25 = smov 8  }
  0x25   :  { %62 = dma.hbm_to_vmem [thread:$0]  %s731_s3, 256, %s593_s27, [#allocation10], %s543_s1, %s543_s1, %s544_s25  }
  0x26   :  { %s545_s29 = smov [#allocation12]   ;;  %s546_s8 = smov [#allocation3]  }
  0x27   :  { %s79_s30 = sshll.u32 %s545_s29, 4  ;;  %s22_s9 = sshll.u32 %s546_s8, 4  ;;  %s80_s30 = int_to_ptr.vmem [resolvable:$true] %s79_s30  ;;  %s630_s9 = int_to_ptr.vmem [resolvable:$true] %s22_s9 }
  0x28   :  { %s397_s12 = scalar_lea.hbm %s733_s5, 16 }
  0x29   :  { %p398_p2 = scmp.ne.s32.totalorder %s733_s5, %s397_s12  ;;  %p401_p3 = scmp.lt.u32.totalorder %s397_s12, %s733_s5 }
  0x2b   :  { %p403_p4 = pnand %p401_p3, %p398_p2 }
  0x2d   :  { %406 = shalt.err (!%p403_p4)
}
  0x2e   :  { %s407_s3 = scalar_lea.vmem %s80_s30, 16  ;;  %s411_s27 = scalar_lea.vmem %s80_s30, 32 }
  0x2f   :  { %p408_p5 = scmp.ne.s32.totalorder %s80_s30, %s407_s3  ;;  %p412_p6 = scmp.lt.s32.totalorder %s80_s30, %s80_s30 }
  0x30   :  { %p413_p7 = scmp.lt.s32.totalorder %s411_s27, %s407_s3 }
  0x32   :  { %p414_p8 = por %p413_p7, %p412_p6 }
  0x34   :  { %p415_p9 = pnand %p414_p8, %p408_p5 }
  0x36   :  { %418 = shalt.err (!%p415_p9)
}
  0x37   :  { %82 = dma.hbm_to_vmem [thread:$0]  %s733_s5, 16, %s80_s30, [#allocation13]  }
  0x38   :  { %s419_s23 = scalar_lea.hbm %s728_s0, 128 }
  0x39   :  { %p420_p10 = scmp.ne.s32.totalorder %s728_s0, %s419_s23  ;;  %p423_p11 = scmp.lt.u32.totalorder %s419_s23, %s728_s0 }
  0x3b   :  { %p425_p12 = pnand %p423_p11, %p420_p10 }
  0x3d   :  { %428 = shalt.err (!%p425_p12)
}
  0x3e   :  { %s429_s8 = scalar_lea.vmem %s630_s9, 128  ;;  %p434_p0 = scmp.lt.s32.totalorder %s630_s9, %s630_s9 }
  0x3f   :  { %p430_p13 = scmp.ne.s32.totalorder %s630_s9, %s429_s8  ;;  %p435_p1 = scmp.lt.s32.totalorder %s429_s8, %s429_s8 }
  0x41   :  { %p436_p2 = por %p435_p1, %p434_p0 }
  0x43   :  { %p437_p3 = pnand %p436_p2, %p430_p13 }
  0x45   :  { %440 = shalt.err (!%p437_p3)
}
  0x46   :  { %28 = dma.hbm_to_vmem [thread:$0]  %s728_s0, 128, %s630_s9, [#allocation4], %s541_s13, %s541_s13, %s542_s14  }
  0x47   :  { %s547_s10 = smov [#allocation8]   ;;  %s548_s12 = smov [#allocation11]  }
  0x48   :  { %s47_s11 = sshll.u32 %s547_s10, 4  ;;  %s69_s15 = sshll.u32 %s548_s12, 4  ;;  %s48_s11 = int_to_ptr.vmem [resolvable:$true] %s47_s11  ;;  %s70_s15 = int_to_ptr.vmem [resolvable:$true] %s69_s15 }
  0x49   :  { %s441_s18 = scalar_lea.hbm %s730_s2, 16 }
  0x4a   :  { %p442_p4 = scmp.ne.s32.totalorder %s730_s2, %s441_s18  ;;  %p445_p5 = scmp.lt.u32.totalorder %s441_s18, %s730_s2 }
  0x4c   :  { %p447_p6 = pnand %p445_p5, %p442_p4 }
  0x4e   :  { %450 = shalt.err (!%p447_p6)
}
  0x4f   :  { %s451_s0 = scalar_lea.vmem %s48_s11, 16  ;;  %s455_s13 = scalar_lea.vmem %s48_s11, 32 }
  0x50   :  { %p452_p7 = scmp.ne.s32.totalorder %s48_s11, %s451_s0  ;;  %p456_p8 = scmp.lt.s32.totalorder %s48_s11, %s48_s11 }
  0x51   :  { %p457_p9 = scmp.lt.s32.totalorder %s455_s13, %s451_s0 }
  0x53   :  { %p458_p10 = por %p457_p9, %p456_p8 }
  0x55   :  { %p459_p11 = pnand %p458_p10, %p452_p7 }
  0x57   :  { %462 = shalt.err (!%p459_p11)
}
  0x58   :  { %50 = dma.hbm_to_vmem [thread:$0]  %s730_s2, 16, %s48_s11, [#allocation7]  }
  0x59   :  { %s463_s23 = scalar_lea.hbm %s732_s4, 16 }
  0x5a   :  { %p464_p12 = scmp.ne.s32.totalorder %s732_s4, %s463_s23  ;;  %p467_p13 = scmp.lt.u32.totalorder %s463_s23, %s732_s4 }
  0x5c   :  { %p469_p0 = pnand %p467_p13, %p464_p12 }
  0x5e   :  { %472 = shalt.err (!%p469_p0)
}
  0x5f   :  { %s473_s8 = scalar_lea.vmem %s70_s15, 16  ;;  %s477_s5 = scalar_lea.vmem %s70_s15, 32 }
  0x60   :  { %p474_p1 = scmp.ne.s32.totalorder %s70_s15, %s473_s8  ;;  %p478_p2 = scmp.lt.s32.totalorder %s70_s15, %s70_s15 }
  0x61   :  { %p479_p3 = scmp.lt.s32.totalorder %s477_s5, %s473_s8 }
  0x63   :  { %p480_p4 = por %p479_p3, %p478_p2 }
  0x65   :  { %p481_p5 = pnand %p480_p4, %p474_p1 }
  0x67   :  { %484 = shalt.err (!%p481_p5)
}
  0x68   :  { %72 = dma.hbm_to_vmem [thread:$0]  %s732_s4, 16, %s70_s15, [#allocation10]  }
  0x69   :  { %s549_s10 = smov [#allocation14]   ;;  %s485_s17 = scalar_lea.hbm %s734_s6, 256 }
  0x6a   :  { %s88_s11 = sshll.u32 %s549_s10, 4  ;;  %p486_p6 = scmp.ne.s32.totalorder %s734_s6, %s485_s17  ;;  %s89_s11 = int_to_ptr.vmem [resolvable:$true] %s88_s11 }
  0x6b   :  { %p489_p7 = scmp.lt.u32.totalorder %s485_s17, %s734_s6 }
  0x6d   :  { %p491_p8 = pnand %p489_p7, %p486_p6 }
  0x6f   :  { %494 = shalt.err (!%p491_p8)
}
  0x70   :  { %s495_s20 = scalar_lea.vmem %s89_s11, 256  ;;  %p500_p10 = scmp.lt.s32.totalorder %s89_s11, %s89_s11 }
  0x71   :  { %p496_p9 = scmp.ne.s32.totalorder %s89_s11, %s495_s20  ;;  %p501_p11 = scmp.lt.s32.totalorder %s495_s20, %s495_s20 }
  0x73   :  { %p502_p12 = por %p501_p11, %p500_p10 }
  0x75   :  { %p503_p13 = pnand %p502_p12, %p496_p9 }
  0x77   :  { %506 = shalt.err (!%p503_p13)
}
  0x78   :  { %94 = dma.hbm_to_vmem [thread:$0]  %s734_s6, 256, %s89_s11, [#allocation13], %s543_s1, %s543_s1, %s544_s25  }
  0x79   :  { %529 = dma.done.wait [#allocation4], 128  }
  0x7a   :  { %530 = vsyncadd [#allocation4], 4294967168 }
  0x7b   :  { %531 = dma.done.wait [#allocation7], 528  }
  0x7c   :  { %532 = vsyncadd [#allocation7], 4294966768 }
  0x7d   :  { %533 = dma.done.wait [#allocation10], 272  }
  0x7e   :  { %534 = vsyncadd [#allocation10], 4294967024 }
  0x7f   :  { %535 = dma.done.wait [#allocation13], 272  }
  0x80   :  { %536 = vsyncadd [#allocation13], 4294967024  ;;  %vm121_vm0 = vcmask 261120   ;;  %v550_v0 = vmov 0.0   ;;  %vm551_vm1 = vmmov 0   ;;  %v344_v1 = vld [vmem:[#allocation6] sm:$0xff]  }
  0x81   :  { %318 = vmatprep.subr.bf16.mxu0 %v550_v0  ;;  %326 = vmatprep.mubr.msk.bf16.mxu0 %vm551_vm1, %v550_v0  ;;  %122 = vst.msk [vmem:[#allocation2] sm:$0xff] %vm121_vm0, %v550_v0  ;;  %123 = vst.msk [vmem:[#allocation2 + $0x8] sm:$0xff] %vm121_vm0, %v550_v0  ;;  %v345_v2 = vld [vmem:[#allocation6 + $0x8] sm:$0xff]   ;;  %v346_v3 = vld [vmem:[#allocation6 + $0x10] sm:$0xff]   ;;  %vm165_vm2 = vcmask 523264   ;;  %s552_s6 = smov [#allocation15]  }
  0x82   :  { %319 = vmatpush3.bf16.msra.mxu0 %v344_v1  ;;  %v347_v4 = vld [vmem:[#allocation6 + $0x18] sm:$0xff]   ;;  %v310_v14 = vld [vmem:[#allocation8] ss:$0 sm:$0xff]  ;;  %v229_v16 = vld [vmem:[#allocation9] sm:$0xff]  ;;  %s289_s0 = sshll.u32 %s552_s6, 4  ;;  %s290_s0 = int_to_ptr.vmem [resolvable:$true] %s289_s0 }
  0x83   :  { %320 = vmatprep.subr.bf16.mxu0 %v550_v0  ;;  %v348_v5 = vld [vmem:[#allocation3] sm:$0xff]   ;;  %v230_v19 = vld [vmem:[#allocation9 + $0x8] sm:$0xff]  ;;  %v311_v42 = vld [vmem:[#allocation11] ss:$0 sm:$0xff]  ;;  %s507_s13 = scalar_lea.vmem %s290_s0, 256  ;;  %p512_p1 = scmp.lt.s32.totalorder %s290_s0, %s290_s0 }
  0x84   :  { %v312_v44 = vld [vmem:[#allocation12] ss:$0 sm:$0xff]  ;;  %v278_v47 = vld [vmem:[#allocation14] sm:$0xff]  ;;  %v279_v52 = vld [vmem:[#allocation14 + $0x8] sm:$0xff]  ;;  %p508_p0 = scmp.ne.s32.totalorder %s290_s0, %s507_s13  ;;  %p513_p2 = scmp.lt.s32.totalorder %s507_s13, %s507_s13 }
  0x86   :  { %321 = vmatpush3.bf16.msra.mxu0 %v345_v2  ;;  %p514_p3 = por %p513_p2, %p512_p1 }
  0x87   :  { %322 = vmatprep.subr.bf16.mxu0 %v550_v0 }
  0x88   :  { %v124_v6 = vld [vmem:[#allocation2] sm:$0xff]  ;;  %v125_v8 = vld [vmem:[#allocation2 + $0x8] sm:$0xff]  ;;  %p515_p4 = pnand %p514_p3, %p508_p0 }
  0x8a   :  { %323 = vmatpush3.bf16.msra.mxu0 %v346_v3 }
  0x8b   :  { %324 = vmatprep.subr.bf16.mxu0 %v550_v0 }
  0x8e   :  { %325 = vmatpush3.bf16.msra.mxu0 %v347_v4 }
  0x91   :  { %327 = vmatmul.mubr.msk.bf16.vlgmr.msra.gmra.mrb[0].mxu0 %vm165_vm2, %v348_v5 }
 0x164   :  { %v203_v7 = vpop.f32.mrb[0].mxu0 }
 0x165   :  { %v210_v9 = vadd.f32 %v203_v7, %v124_v6  ;;  %v328_v10 = vpop.f32.mrb[1].mxu0 }
 0x166   :  { %v206_v11 = vpop.f32.mrb[2].mxu0 }
 0x167   :  { %213 = vst.msk [vmem:[#allocation2] sm:$0xff] %vm121_vm0, %v210_v9  ;;  %v211_v12 = vadd.f32 %v206_v11, %v125_v8  ;;  %v329_v13 = vpop.f32.mrb[3].mxu0 }
 0x169   :  { %214 = vst.msk [vmem:[#allocation2 + $0x8] sm:$0xff] %vm121_vm0, %v211_v12 }
 0x16e   :  { %v218_v15 = vld [vmem:[#allocation2] sm:$0xff] }
 0x16f   :  { %v227_v17 = vadd.f32 %v310_v14, %v218_v15 }
 0x170   :  { %v219_v18 = vld [vmem:[#allocation2 + $0x8] sm:$0xff] }
 0x171   :  { %v231_v20 = vadd.f32 %v229_v16, %v227_v17  ;;  %v228_v21 = vadd.f32 %v310_v14, %v219_v18 }
 0x173   :  { %v233_v22 = vsel %vm121_vm0, %v231_v20, 0.0  ;;  %v232_v23 = vadd.f32 %v230_v19, %v228_v21 }
 0x174   :  { %234 = vadd.xlane.f32.xlu0 %v233_v22 }
 0x175   :  { %v236_v24 = vsel %vm121_vm0, %v232_v23, 0.0 }
 0x178   :  { %237 = vadd.xlane.f32.xlu0 %v236_v24 }
 0x201   :  { %v235_v25 = vpop.xlane.xlu0 %234 }
 0x202   :  { %v240_v26 = vmul.f32 0.03125, %v235_v25 }
 0x204   :  { %v242_v27 = vsub.f32 %v231_v20, %v240_v26 }
 0x205   :  { %v238_v28 = vpop.xlane.xlu0 %237 }
 0x206   :  { %v241_v29 = vmul.f32 0.03125, %v238_v28  ;;  %v244_v30 = vmul.f32 %v242_v27, %v242_v27 }
 0x208   :  { %v243_v31 = vsub.f32 %v232_v23, %v241_v29  ;;  %v246_v32 = vsel %vm121_vm0, %v244_v30, 0.0 }
 0x209   :  { %247 = vadd.xlane.f32.xlu1 %v246_v32 }
 0x20a   :  { %v245_v33 = vmul.f32 %v243_v31, %v243_v31 }
 0x20c   :  { %v249_v34 = vsel %vm121_vm0, %v245_v33, 0.0 }
 0x20d   :  { %250 = vadd.xlane.f32.xlu1 %v249_v34 }
 0x296   :  { %v248_v35 = vpop.xlane.xlu1 %247 }
 0x297   :  { %v252_v36 = vmul.f32 0.03125, %v248_v35 }
 0x299   :  { %v254_v37 = vadd.f32 1e-12, %v252_v36 }
 0x29a   :  { %v251_v38 = vpop.xlane.xlu1 %250 }
 0x29b   :  { %349 = vrsqrt.f32 %v254_v37  ;;  %v253_v39 = vmul.f32 0.03125, %v251_v38 }
 0x29d   :  { %v255_v40 = vadd.f32 1e-12, %v253_v39 }
 0x29f   :  { %351 = vrsqrt.f32 %v255_v40 }
 0x2a5   :  { %v350_v41 = vpop.eup %349 }
 0x2a6   :  { %v258_v43 = vmul.f32 %v350_v41, %v242_v27 }
 0x2a8   :  { %v267_v45 = vmul.f32 %v311_v42, %v258_v43 }
 0x2a9   :  { %v352_v46 = vpop.eup %351 }
 0x2aa   :  { %v259_v48 = vmul.f32 %v352_v46, %v243_v31  ;;  %v276_v49 = vadd.f32 %v312_v44, %v267_v45 }
 0x2ac   :  { %v268_v50 = vmul.f32 %v311_v42, %v259_v48  ;;  %v280_v51 = vadd.f32 %v278_v47, %v276_v49 }
 0x2ae   :  { %v277_v53 = vadd.f32 %v312_v44, %v268_v50  ;;  %282 = vst.msk [vmem:[#allocation15] sm:$0xff] %vm121_vm0, %v280_v51 }
 0x2b0   :  { %v281_v54 = vadd.f32 %v279_v52, %v277_v53 }
 0x2b2   :  { %283 = vst.msk [vmem:[#allocation15 + $0x8] sm:$0xff] %vm121_vm0, %v281_v54 }
 0x2b3   :  { %518 = shalt.err (!%p515_p4)
}
 0x2b4   :  { %s519_s21 = scalar_lea.hbm %s735_s7, 256 }
 0x2b5   :  { %p520_p5 = scmp.ne.s32.totalorder %s735_s7, %s519_s21  ;;  %p523_p6 = scmp.lt.u32.totalorder %s519_s21, %s735_s7 }
 0x2b7   :  { %p525_p7 = pnand %p523_p6, %p520_p5 }
 0x2b9   :  { %528 = shalt.err (!%p525_p7)
}
 0x2ba   :  { %295 = dma.vmem_to_hbm [thread:$0]  %s290_s0, 256, %s735_s7, [#allocation5], %s543_s1, %s543_s1, %s544_s25  }
 0x2bb   :  { %537 = dma.done.wait [#allocation5], 256  }
 0x2bc   :  { %538 = vsyncadd [#allocation5], 4294967040 }
 0x2bd   :  { %299 = vsyncpa [#allocation4], 1 }
 0x2be   :  { %300 = vsyncpa [#allocation7], 1 }
 0x2bf   :  { %301 = vsyncpa [#allocation10], 1 }
 0x2c0   :  { %302 = vsyncpa [#allocation13], 1 }
 0x2c1   :  { %303 = vsyncpa [#allocation5], 1 }

</bundles_post_ra>
